<compile_context>
chip_gen: v5e
topology: v5e:2x2
jax: 0.10.0
libtpu: 0.0.40
codegen_flags: <defaults>
</compile_context>

<pallas_src>
import functools

import jax
import jax.numpy as jnp
from jax import lax
from jax.experimental import pallas as pl
from jax.experimental.pallas import tpu as pltpu

F32 = jnp.float32
LN_EPS = 1e-12   # HF ViT layer_norm_eps default
BN_EPS = 1e-5    # torch.nn.BatchNorm1d default


def _round_up(x, m):
    return (x + m - 1) // m * m


# ---------------------------------------------------------------------------
# Fused whole-model kernel (no grid: single invocation, everything in VMEM)
# ---------------------------------------------------------------------------
def _make_kernel(B, S, S_pad, D, DI, NH, L, NLBL, CPP, H1, H2):
    Dh = D // NH
    scale = 1.0 / float(Dh) ** 0.5
    M = B * S_pad

    def layernorm(x, g, b):
        mu = jnp.mean(x, axis=-1, keepdims=True)
        var = jnp.mean(jnp.square(x - mu), axis=-1, keepdims=True)
        return (x - mu) * lax.rsqrt(var + LN_EPS) * g + b

    def kernel(x_in_ref, lab_ref, emb_ref, lconst_ref, wqkv_ref, wo_ref,
               wfc1_ref, wfc2_ref, hconst_ref, w1_ref, w23_ref,
               logits_ref, loss_ref):
        # ---- patch embedding (Conv2d k=s=P as matmul); CLS/pos/conv-bias folded ----
        w_emb = emb_ref[0:CPP, :]                    # [CPP, D]
        tok_bias = emb_ref[CPP:CPP + M, :]           # [M, D] (tiled over batch)
        x2 = jnp.dot(x_in_ref[...], w_emb,
                     preferred_element_type=F32) + tok_bias          # [M, D]

        # ---- attention constants, hoisted once for all layers / heads ----
        dim_ids = lax.broadcasted_iota(jnp.int32, (1, 1, D), 2)
        key_ids = lax.broadcasted_iota(jnp.int32, (1, 1, S_pad), 2)
        key_bias = jnp.where(key_ids < S, 0.0, -1e30)                 # mask padded keys
        head_masks = [jnp.logical_and(dim_ids >= h * Dh, dim_ids < (h + 1) * Dh)
                      for h in range(NH)]

        # ---- encoder layers, statically unrolled (no grid carry) ----
        for l in range(L):
            lc = lconst_ref[l]                       # [8, 3D] packed per-layer vectors
            ln1_g, ln1_b = lc[0:1, 0:D], lc[1:2, 0:D]
            ln2_g, ln2_b = lc[2:3, 0:D], lc[3:4, 0:D]
            bqkv = lc[4:5, :]                        # [1, 3D]
            bo = lc[5:6, 0:D]
            bfc1 = lc[6:7, 0:DI]
            bfc2 = lc[7:8, 0:D]

            # pre-LN MHSA
            h = layernorm(x2, ln1_g, ln1_b)
            qkv = jnp.dot(h, wqkv_ref[l],
                          preferred_element_type=F32) + bqkv          # [M, 3D]
            q = qkv[:, 0:D].reshape(B, S_pad, D)
            k = qkv[:, D:2 * D].reshape(B, S_pad, D)
            v = qkv[:, 2 * D:3 * D].reshape(B, S_pad, D)

            # Multi-head attention with lane-dense [B,S,D] operands: head h selected by
            # zeroing the other heads' feature columns (no Dh=8 lane dim, no 4-D transpose).
            attn = jnp.zeros((B, S_pad, D), F32)
            for hd in range(NH):
                mh = head_masks[hd]
                qh = jnp.where(mh, q, 0.0)
                vh = jnp.where(mh, v, 0.0)
                s = jnp.einsum("bqd,bkd->bqk", qh, k,
                               preferred_element_type=F32) * scale + key_bias
                mmax = jnp.max(s, axis=-1, keepdims=True)
                p = jnp.exp(s - mmax)
                p = p * pl.reciprocal(jnp.sum(p, axis=-1, keepdims=True), approx=True)
                attn = attn + jnp.einsum("bqk,bkd->bqd", p, vh,
                                         preferred_element_type=F32)

            a2 = jnp.dot(attn.reshape(M, D), wo_ref[l],
                         preferred_element_type=F32) + bo
            x2 = x2 + a2                                              # residual

            # pre-LN GELU MLP
            hm = layernorm(x2, ln2_g, ln2_b)
            hm = jnp.dot(hm, wfc1_ref[l], preferred_element_type=F32) + bfc1
            # TODO(synk): HF ViT uses exact erf GELU; tanh approximation used here.
            hm = jax.nn.gelu(hm, approximate=True)
            hm = jnp.dot(hm, wfc2_ref[l], preferred_element_type=F32) + bfc2
            x2 = x2 + hm                                              # residual

        # ---- final LN on CLS + classifier head + focal loss ----
        hc = hconst_ref[...]                          # [8, H1]
        lnf_g, lnf_b = hc[0:1, 0:D], hc[1:2, 0:D]
        b1 = hc[2:3, :]
        b2 = hc[3:4, 0:H2]
        b3 = hc[4:5, 0:NLBL]

        cls_tok = x2.reshape(B, S_pad, D)[:, 0, :]    # [B, D]
        pooled = layernorm(cls_tok, lnf_g, lnf_b)
        # BatchNorm1d folded into the Linears; Dropout(0.5/0.3) identity in eval.
        h1 = jnp.maximum(jnp.dot(pooled, w1_ref[...],
                                 preferred_element_type=F32) + b1, 0.0)
        w2 = w23_ref[0:H1, :]                         # [H1, H2]
        w3 = w23_ref[H1:H1 + H2, 0:NLBL]              # [H2, NLBL]
        h2 = jnp.maximum(jnp.dot(h1, w2, preferred_element_type=F32) + b2, 0.0)
        logits = jnp.dot(h2, w3, preferred_element_type=F32) + b3
        logits_ref[...] = logits

        # focal loss: mean((1 - exp(-ce))**2 * ce)
        cls_ids = lax.broadcasted_iota(jnp.int32, (B, NLBL), 1)
        onehot = (cls_ids == lab_ref[...]).astype(F32)
        mx = jnp.max(logits, axis=-1, keepdims=True)
        lse = mx + jnp.log(jnp.sum(jnp.exp(logits - mx), axis=-1, keepdims=True))
        ce = lse - jnp.sum(logits * onehot, axis=-1, keepdims=True)   # [B, 1]
        pt = jnp.exp(-ce)
        fl = jnp.square(1.0 - pt) * ce
        loss_ref[...] = jnp.sum(fl, axis=0, keepdims=True) * (1.0 / B)

    return kernel


# ---------------------------------------------------------------------------
# One-time weight preprocessing (BN folding, packing) -- NOT in the per-call path
# ---------------------------------------------------------------------------
def prepare_model(params, *, batch_size, patch=4, num_heads=4):
    D = params["patch_w"].shape[1]
    CPP = params["patch_w"].shape[0]
    L = params["wqkv"].shape[0]
    DI = params["w_fc1"].shape[2]
    S = params["pos"].shape[1]
    S_pad = _round_up(S, 8)
    B = batch_size
    cp = params["cls_head"]
    NLBL = cp["w3"].shape[1]
    H1 = cp["w1"].shape[1]
    H2 = cp["w2"].shape[1]
    W3D = 3 * D

    # Per-token additive constant: CLS embedding at row 0, conv bias at patch rows,
    # zeros at pad rows, plus (zero-padded) position embeddings; tiled over batch.
    tok = jnp.concatenate(
        [params["cls"].reshape(1, D),
         jnp.broadcast_to(params["patch_b"].reshape(1, D), (S - 1, D)),
         jnp.zeros((S_pad - S, D), F32)], axis=0)
    tok = tok + jnp.pad(params["pos"].reshape(S, D), ((0, S_pad - S), (0, 0)))
    emb_pack = jnp.concatenate([params["patch_w"], jnp.tile(tok, (B, 1))],
                               axis=0)                               # [CPP + B*S_pad, D]

    # Per-layer small vectors packed into one [L, 8, 3D] tensor.
    def padw(a):
        a = a.reshape(L, 1, -1)
        return jnp.pad(a, ((0, 0), (0, 0), (0, W3D - a.shape[-1])))

    lconst = jnp.concatenate(
        [padw(params["ln1"][:, 0]), padw(params["ln1"][:, 1]),
         padw(params["ln2"][:, 0]), padw(params["ln2"][:, 1]),
         padw(params["bqkv"]), padw(params["bo"]),
         padw(params["b_fc1"]), padw(params["b_fc2"])], axis=1)      # [L, 8, 3D]

    # BatchNorm1d (eval, running stats) folded into the adjacent Linear.
    def fold_bn(w, b, g, beta, m, v):
        s = g * lax.rsqrt(v + BN_EPS)
        return w * s[None, :], b * s + beta - m * s

    w1f, b1f = fold_bn(cp["w1"], cp["b1"], cp["bn1_g"], cp["bn1_b"],
                       cp["bn1_m"], cp["bn1_v"])
    w2f, b2f = fold_bn(cp["w2"], cp["b2"], cp["bn2_g"], cp["bn2_b"],
                       cp["bn2_m"], cp["bn2_v"])

    def padrow(a):
        a = a.reshape(1, -1)
        return jnp.pad(a, ((0, 0), (0, H1 - a.shape[-1])))

    hconst = jnp.concatenate(
        [padrow(params["ln_f_g"]), padrow(params["ln_f_b"]),
         padrow(b1f), padrow(b2f), padrow(cp["b3"]),
         jnp.zeros((3, H1), F32)], axis=0)                           # [8, H1]

    w23 = jnp.concatenate(
        [w2f, jnp.pad(cp["w3"], ((0, 0), (0, H2 - NLBL)))], axis=0)  # [H1+H2, H2]

    packed = {
        "emb_pack": emb_pack, "lconst": lconst,
        "wqkv": params["wqkv"], "wo": params["wo"],
        "w_fc1": params["w_fc1"], "w_fc2": params["w_fc2"],
        "hconst": hconst, "w1": w1f, "w23": w23,
    }
    cfg = dict(B=B, S=S, S_pad=S_pad, D=D, DI=DI, NH=num_heads, L=L,
               NLBL=NLBL, CPP=CPP, H1=H1, H2=H2, patch=patch)
    return packed, cfg


# ---------------------------------------------------------------------------
# Forward: per-call work is only the pixel im2col + one pallas_call
# ---------------------------------------------------------------------------
def image_sarcasm_forward(packed, pixel_values, labels=None, *, cfg):
    B, S, S_pad = cfg["B"], cfg["S"], cfg["S_pad"]
    P, NLBL = cfg["patch"], cfg["NLBL"]
    _, C, H, W = pixel_values.shape
    Np = (H // P) * (W // P)

    # im2col for Conv2d(kernel=stride=P); zero row at CLS slot + zero pad rows.
    x = pixel_values.reshape(B, C, H // P, P, W // P, P)
    x = x.transpose(0, 2, 4, 1, 3, 5).reshape(B, Np, C * P * P)
    x = jnp.pad(x, ((0, 0), (1, S_pad - S), (0, 0)))
    x_in = x.reshape(B * S_pad, C * P * P)

    if labels is None:
        lab = jnp.zeros((B, 1), jnp.int32)
    else:
        lab = labels.astype(jnp.int32).reshape(B, 1)

    kernel = _make_kernel(B, S, S_pad, cfg["D"], cfg["DI"], cfg["NH"], cfg["L"],
                          NLBL, cfg["CPP"], cfg["H1"], cfg["H2"])

    args = (x_in, lab, packed["emb_pack"], packed["lconst"], packed["wqkv"],
            packed["wo"], packed["w_fc1"], packed["w_fc2"], packed["hconst"],
            packed["w1"], packed["w23"])
    vmem = pl.BlockSpec(memory_space=pltpu.MemorySpace.VMEM)

    logits, loss = pl.pallas_call(
        kernel,
        in_specs=[vmem] * len(args),
        out_specs=(vmem, vmem),
        out_shape=(jax.ShapeDtypeStruct((B, NLBL), F32),
                   jax.ShapeDtypeStruct((1, 1), F32)),
    )(*args)

    if labels is None:
        return logits
    return loss[0, 0], logits


# ---------------------------------------------------------------------------
# Deterministic synthetic parameters (per-layer params stacked on a leading L axis)
# ---------------------------------------------------------------------------
def init_params(key, *, channels=3, patch=4, img=16, hidden=32, heads=4,
                layers=2, intermediate=64, num_labels=2):
    del heads
    n_patches = (img // patch) ** 2
    seq = n_patches + 1
    L = layers
    it = iter(jax.random.split(key, 32))

    def nrm(shape, scale=0.02):
        return (scale * jax.random.normal(next(it), shape)).astype(F32)

    ln_stack = jnp.stack([jnp.ones((L, hidden), F32),
                          jnp.zeros((L, hidden), F32)], axis=1)       # [L, 2, D]

    params = {
        "patch_w": nrm((channels * patch * patch, hidden)),
        "patch_b": jnp.zeros((hidden,), F32),
        "cls": nrm((1, 1, hidden)),
        "pos": nrm((1, seq, hidden)),
        "ln_f_g": jnp.ones((hidden,), F32),
        "ln_f_b": jnp.zeros((hidden,), F32),
        "ln1": ln_stack,
        "wqkv": nrm((L, hidden, 3 * hidden)),          # fused [Wq | Wk | Wv]
        "bqkv": jnp.zeros((L, 1, 3 * hidden), F32),
        "wo": nrm((L, hidden, hidden)),
        "bo": jnp.zeros((L, 1, hidden), F32),
        "ln2": ln_stack,
        "w_fc1": nrm((L, hidden, intermediate)),
        "b_fc1": jnp.zeros((L, 1, intermediate), F32),
        "w_fc2": nrm((L, intermediate, hidden)),
        "b_fc2": jnp.zeros((L, 1, hidden), F32),
        "cls_head": {
            "w1": nrm((hidden, 512)), "b1": jnp.zeros((512,), F32),
            "bn1_g": jnp.ones((512,), F32), "bn1_b": jnp.zeros((512,), F32),
            "bn1_m": jnp.zeros((512,), F32), "bn1_v": jnp.ones((512,), F32),
            "w2": nrm((512, 256)), "b2": jnp.zeros((256,), F32),
            "bn2_g": jnp.ones((256,), F32), "bn2_b": jnp.zeros((256,), F32),
            "bn2_m": jnp.zeros((256,), F32), "bn2_v": jnp.ones((256,), F32),
            "w3": nrm((256, num_labels)), "b3": jnp.zeros((num_labels,), F32),
        },
    }
    return params


if __name__ == "__main__":
    key = jax.random.PRNGKey(0)
    k_param, k_pix = jax.random.split(key)

    params = init_params(k_param)
    pixel_values = jax.random.normal(k_pix, (2, 3, 16, 16), dtype=F32)  # NCHW
    labels = jnp.array([0, 1], dtype=jnp.int32)

    # One-time weight preprocessing (outside the per-call path).
    packed, cfg = prepare_model(params, batch_size=2, patch=4, num_heads=4)
    packed = jax.tree_util.tree_map(jax.block_until_ready, packed)

    fwd = jax.jit(functools.partial(image_sarcasm_forward, cfg=cfg))
    focal, logits = fwd(packed, pixel_values, labels)
    jax.block_until_ready((focal, logits))

    assert logits.shape == (2, 2) and focal.shape == ()
    assert bool(jnp.all(jnp.isfinite(logits))) and bool(jnp.isfinite(focal))
    print("KERNEL_OK")
</pallas_src>

<mosaic_0001>
module attributes {stable_mosaic.version = 11 : i64} {
  func.func @kernel(%arg0: memref<48x48xf32, #tpu.memory_space<vmem>>, %arg1: memref<2x1xi32, #tpu.memory_space<vmem>>, %arg2: memref<96x32xf32, #tpu.memory_space<vmem>>, %arg3: memref<2x8x96xf32, #tpu.memory_space<vmem>>, %arg4: memref<2x32x96xf32, #tpu.memory_space<vmem>>, %arg5: memref<2x32x32xf32, #tpu.memory_space<vmem>>, %arg6: memref<2x32x64xf32, #tpu.memory_space<vmem>>, %arg7: memref<2x64x32xf32, #tpu.memory_space<vmem>>, %arg8: memref<8x512xf32, #tpu.memory_space<vmem>>, %arg9: memref<32x512xf32, #tpu.memory_space<vmem>>, %arg10: memref<768x256xf32, #tpu.memory_space<vmem>>, %arg11: memref<2x2xf32, #tpu.memory_space<vmem>>, %arg12: memref<1x1xf32, #tpu.memory_space<vmem>>) attributes {dimension_semantics = [], scalar_prefetch = 0 : i64, scratch_operands = 0 : i64, tpu.core_type = #tpu.core_type<tc>} {
    %c0 = arith.constant 0 : index
    %c0_0 = arith.constant 0 : index
    %0 = vector.load %arg2[%c0, %c0_0] : memref<96x32xf32, #tpu.memory_space<vmem>>, vector<48x32xf32>
    %c48 = arith.constant 48 : index
    %c0_1 = arith.constant 0 : index
    %1 = vector.load %arg2[%c48, %c0_1] : memref<96x32xf32, #tpu.memory_space<vmem>>, vector<48x32xf32>
    %c0_2 = arith.constant 0 : index
    %c0_3 = arith.constant 0 : index
    %2 = vector.load %arg0[%c0_2, %c0_3] : memref<48x48xf32, #tpu.memory_space<vmem>>, vector<48x48xf32>
    %cst = arith.constant dense<0.000000e+00> : vector<48x32xf32>
    %3 = tpu.matmul %2, %0, %cst {dimension_numbers = #tpu.dot_dimension_numbers<[1], [0], [0], [1], [0, 0, 1, 1], [], []>} : vector<48x48xf32>, vector<48x32xf32>, vector<48x32xf32> -> vector<48x32xf32>
    %4 = arith.addf %3, %1 : vector<48x32xf32>
    %5 = tpu.iota {dimensions = array<i32: 2>} : vector<1x1x32xi32>
    %6 = tpu.iota {dimensions = array<i32: 2>} : vector<1x1x24xi32>
    %c17_i32 = arith.constant 17 : i32
    %7 = vector.broadcast %c17_i32 : i32 to vector<1x1x24xi32>
    %8 = arith.cmpi slt, %6, %7 : vector<1x1x24xi32>
    %cst_4 = arith.constant 0.000000e+00 : f32
    %cst_5 = arith.constant -1.000000e+30 : f32
    %9 = vector.broadcast %cst_4 : f32 to vector<1x1x24xf32>
    %10 = vector.broadcast %cst_5 : f32 to vector<1x1x24xf32>
    %11 = arith.select %8, %9, %10 : vector<1x1x24xi1>, vector<1x1x24xf32>
    %c0_i32 = arith.constant 0 : i32
    %12 = vector.broadcast %c0_i32 : i32 to vector<1x1x32xi32>
    %13 = arith.cmpi sge, %5, %12 : vector<1x1x32xi32>
    %c8_i32 = arith.constant 8 : i32
    %14 = vector.broadcast %c8_i32 : i32 to vector<1x1x32xi32>
    %15 = arith.cmpi slt, %5, %14 : vector<1x1x32xi32>
    %16 = arith.andi %13, %15 : vector<1x1x32xi1>
    %c8_i32_6 = arith.constant 8 : i32
    %17 = vector.broadcast %c8_i32_6 : i32 to vector<1x1x32xi32>
    %18 = arith.cmpi sge, %5, %17 : vector<1x1x32xi32>
    %c16_i32 = arith.constant 16 : i32
    %19 = vector.broadcast %c16_i32 : i32 to vector<1x1x32xi32>
    %20 = arith.cmpi slt, %5, %19 : vector<1x1x32xi32>
    %21 = arith.andi %18, %20 : vector<1x1x32xi1>
    %c16_i32_7 = arith.constant 16 : i32
    %22 = vector.broadcast %c16_i32_7 : i32 to vector<1x1x32xi32>
    %23 = arith.cmpi sge, %5, %22 : vector<1x1x32xi32>
    %c24_i32 = arith.constant 24 : i32
    %24 = vector.broadcast %c24_i32 : i32 to vector<1x1x32xi32>
    %25 = arith.cmpi slt, %5, %24 : vector<1x1x32xi32>
    %26 = arith.andi %23, %25 : vector<1x1x32xi1>
    %c24_i32_8 = arith.constant 24 : i32
    %27 = vector.broadcast %c24_i32_8 : i32 to vector<1x1x32xi32>
    %28 = arith.cmpi sge, %5, %27 : vector<1x1x32xi32>
    %c32_i32 = arith.constant 32 : i32
    %29 = vector.broadcast %c32_i32 : i32 to vector<1x1x32xi32>
    %30 = arith.cmpi slt, %5, %29 : vector<1x1x32xi32>
    %31 = arith.andi %28, %30 : vector<1x1x32xi1>
    %c0_9 = arith.constant 0 : index
    %c0_10 = arith.constant 0 : index
    %c0_11 = arith.constant 0 : index
    %32 = vector.load %arg3[%c0_9, %c0_10, %c0_11] : memref<2x8x96xf32, #tpu.memory_space<vmem>>, vector<1x8x96xf32>
    %33 = vector.shape_cast %32 : vector<1x8x96xf32> to vector<8x96xf32>
    %34 = vector.extract_strided_slice %33 {offsets = [0, 0], sizes = [1, 32], strides = [1, 1]} : vector<8x96xf32> to vector<1x32xf32>
    %35 = vector.extract_strided_slice %33 {offsets = [1, 0], sizes = [1, 32], strides = [1, 1]} : vector<8x96xf32> to vector<1x32xf32>
    %36 = vector.extract_strided_slice %33 {offsets = [2, 0], sizes = [1, 32], strides = [1, 1]} : vector<8x96xf32> to vector<1x32xf32>
    %37 = vector.extract_strided_slice %33 {offsets = [3, 0], sizes = [1, 32], strides = [1, 1]} : vector<8x96xf32> to vector<1x32xf32>
    %38 = vector.extract_strided_slice %33 {offsets = [4, 0], sizes = [1, 96], strides = [1, 1]} : vector<8x96xf32> to vector<1x96xf32>
    %39 = vector.extract_strided_slice %33 {offsets = [5, 0], sizes = [1, 32], strides = [1, 1]} : vector<8x96xf32> to vector<1x32xf32>
    %40 = vector.extract_strided_slice %33 {offsets = [6, 0], sizes = [1, 64], strides = [1, 1]} : vector<8x96xf32> to vector<1x64xf32>
    %41 = vector.extract_strided_slice %33 {offsets = [7, 0], sizes = [1, 32], strides = [1, 1]} : vector<8x96xf32> to vector<1x32xf32>
    %cst_12 = arith.constant dense<0.000000e+00> : vector<48xf32>
    %42 = vector.multi_reduction <add>, %4, %cst_12 [1] : vector<48x32xf32> to vector<48xf32>
    %43 = vector.shape_cast %42 : vector<48xf32> to vector<48x1xf32>
    %cst_13 = arith.constant 3.200000e+01 : f32
    %44 = vector.broadcast %cst_13 : f32 to vector<48x1xf32>
    %45 = arith.divf %43, %44 : vector<48x1xf32>
    %46 = vector.broadcast %45 : vector<48x1xf32> to vector<48x32xf32>
    %47 = arith.subf %4, %46 : vector<48x32xf32>
    %48 = arith.mulf %47, %47 : vector<48x32xf32>
    %cst_14 = arith.constant dense<0.000000e+00> : vector<48xf32>
    %49 = vector.multi_reduction <add>, %48, %cst_14 [1] : vector<48x32xf32> to vector<48xf32>
    %50 = vector.shape_cast %49 : vector<48xf32> to vector<48x1xf32>
    %cst_15 = arith.constant 3.200000e+01 : f32
    %51 = vector.broadcast %cst_15 : f32 to vector<48x1xf32>
    %52 = arith.divf %50, %51 : vector<48x1xf32>
    %53 = vector.broadcast %45 : vector<48x1xf32> to vector<48x32xf32>
    %54 = arith.subf %4, %53 : vector<48x32xf32>
    %cst_16 = arith.constant 9.99999996E-13 : f32
    %55 = vector.broadcast %cst_16 : f32 to vector<48x1xf32>
    %56 = arith.addf %52, %55 : vector<48x1xf32>
    %57 = math.rsqrt %56 : vector<48x1xf32>
    %58 = vector.broadcast %57 : vector<48x1xf32> to vector<48x32xf32>
    %59 = arith.mulf %54, %58 : vector<48x32xf32>
    %60 = vector.broadcast %34 : vector<1x32xf32> to vector<48x32xf32>
    %61 = arith.mulf %59, %60 : vector<48x32xf32>
    %62 = vector.broadcast %35 : vector<1x32xf32> to vector<48x32xf32>
    %63 = arith.addf %61, %62 : vector<48x32xf32>
    %c0_17 = arith.constant 0 : index
    %c0_18 = arith.constant 0 : index
    %c0_19 = arith.constant 0 : index
    %64 = vector.load %arg4[%c0_17, %c0_18, %c0_19] : memref<2x32x96xf32, #tpu.memory_space<vmem>>, vector<1x32x96xf32>
    %65 = vector.shape_cast %64 : vector<1x32x96xf32> to vector<32x96xf32>
    %cst_20 = arith.constant dense<0.000000e+00> : vector<48x96xf32>
    %66 = tpu.matmul %63, %65, %cst_20 {dimension_numbers = #tpu.dot_dimension_numbers<[1], [0], [0], [1], [0, 0, 1, 1], [], []>} : vector<48x32xf32>, vector<32x96xf32>, vector<48x96xf32> -> vector<48x96xf32>
    %67 = vector.broadcast %38 : vector<1x96xf32> to vector<48x96xf32>
    %68 = arith.addf %66, %67 : vector<48x96xf32>
    %69 = vector.extract_strided_slice %68 {offsets = [0, 0], sizes = [48, 32], strides = [1, 1]} : vector<48x96xf32> to vector<48x32xf32>
    %70 = vector.shape_cast %69 : vector<48x32xf32> to vector<2x24x32xf32>
    %71 = vector.extract_strided_slice %68 {offsets = [0, 32], sizes = [48, 32], strides = [1, 1]} : vector<48x96xf32> to vector<48x32xf32>
    %72 = vector.shape_cast %71 : vector<48x32xf32> to vector<2x24x32xf32>
    %73 = vector.extract_strided_slice %68 {offsets = [0, 64], sizes = [48, 32], strides = [1, 1]} : vector<48x96xf32> to vector<48x32xf32>
    %74 = vector.shape_cast %73 : vector<48x32xf32> to vector<2x24x32xf32>
    %cst_21 = arith.constant 0.000000e+00 : f32
    %75 = vector.broadcast %cst_21 : f32 to vector<2x24x32xf32>
    %cst_22 = arith.constant 0.000000e+00 : f32
    %76 = vector.shape_cast %16 : vector<1x1x32xi1> to vector<1x1x32xi1>
    %77 = vector.broadcast %76 : vector<1x1x32xi1> to vector<2x24x32xi1>
    %78 = vector.broadcast %cst_22 : f32 to vector<2x24x32xf32>
    %79 = arith.select %77, %70, %78 : vector<2x24x32xi1>, vector<2x24x32xf32>
    %cst_23 = arith.constant 0.000000e+00 : f32
    %80 = vector.shape_cast %16 : vector<1x1x32xi1> to vector<1x1x32xi1>
    %81 = vector.broadcast %80 : vector<1x1x32xi1> to vector<2x24x32xi1>
    %82 = vector.broadcast %cst_23 : f32 to vector<2x24x32xf32>
    %83 = arith.select %81, %74, %82 : vector<2x24x32xi1>, vector<2x24x32xf32>
    "tpu.trace_start"() <{level = 10 : i32, message = "bqd,bkd->bqk"}> : () -> ()
    %cst_24 = arith.constant dense<0.000000e+00> : vector<2x24x24xf32>
    %84 = tpu.matmul %79, %72, %cst_24 {dimension_numbers = #tpu.dot_dimension_numbers<[2], [2], [1], [1], [0, 0, 0, 1, 1, 1], [0], [0]>} : vector<2x24x32xf32>, vector<2x24x32xf32>, vector<2x24x24xf32> -> vector<2x24x24xf32>
    "tpu.trace_stop"() : () -> ()
    %cst_25 = arith.constant 0.353553385 : f32
    %85 = vector.broadcast %cst_25 : f32 to vector<2x24x24xf32>
    %86 = arith.mulf %84, %85 : vector<2x24x24xf32>
    %87 = vector.broadcast %11 : vector<1x1x24xf32> to vector<2x24x24xf32>
    %88 = arith.addf %86, %87 : vector<2x24x24xf32>
    %cst_26 = arith.constant dense<0xFF800000> : vector<2x24xf32>
    %89 = vector.multi_reduction <maximumf>, %88, %cst_26 [2] : vector<2x24x24xf32> to vector<2x24xf32>
    %90 = vector.shape_cast %89 : vector<2x24xf32> to vector<2x24x1xf32>
    %91 = vector.broadcast %90 : vector<2x24x1xf32> to vector<2x24x24xf32>
    %92 = arith.subf %88, %91 : vector<2x24x24xf32>
    %93 = math.exp %92 : vector<2x24x24xf32>
    %cst_27 = arith.constant dense<0.000000e+00> : vector<2x24xf32>
    %94 = vector.multi_reduction <add>, %93, %cst_27 [2] : vector<2x24x24xf32> to vector<2x24xf32>
    %95 = vector.shape_cast %94 : vector<2x24xf32> to vector<2x24x1xf32>
    %96 = tpu.reciprocal %95 {approx = true} : vector<2x24x1xf32> -> vector<2x24x1xf32>
    %97 = vector.broadcast %96 : vector<2x24x1xf32> to vector<2x24x24xf32>
    %98 = arith.mulf %93, %97 : vector<2x24x24xf32>
    "tpu.trace_start"() <{level = 10 : i32, message = "bqk,bkd->bqd"}> : () -> ()
    %cst_28 = arith.constant dense<0.000000e+00> : vector<2x24x32xf32>
    %99 = tpu.matmul %98, %83, %cst_28 {dimension_numbers = #tpu.dot_dimension_numbers<[2], [1], [1], [2], [0, 0, 0, 1, 1, 2], [0], [0]>} : vector<2x24x24xf32>, vector<2x24x32xf32>, vector<2x24x32xf32> -> vector<2x24x32xf32>
    "tpu.trace_stop"() : () -> ()
    %100 = arith.addf %75, %99 : vector<2x24x32xf32>
    %cst_29 = arith.constant 0.000000e+00 : f32
    %101 = vector.shape_cast %21 : vector<1x1x32xi1> to vector<1x1x32xi1>
    %102 = vector.broadcast %101 : vector<1x1x32xi1> to vector<2x24x32xi1>
    %103 = vector.broadcast %cst_29 : f32 to vector<2x24x32xf32>
    %104 = arith.select %102, %70, %103 : vector<2x24x32xi1>, vector<2x24x32xf32>
    %cst_30 = arith.constant 0.000000e+00 : f32
    %105 = vector.shape_cast %21 : vector<1x1x32xi1> to vector<1x1x32xi1>
    %106 = vector.broadcast %105 : vector<1x1x32xi1> to vector<2x24x32xi1>
    %107 = vector.broadcast %cst_30 : f32 to vector<2x24x32xf32>
    %108 = arith.select %106, %74, %107 : vector<2x24x32xi1>, vector<2x24x32xf32>
    "tpu.trace_start"() <{level = 10 : i32, message = "bqd,bkd->bqk"}> : () -> ()
    %cst_31 = arith.constant dense<0.000000e+00> : vector<2x24x24xf32>
    %109 = tpu.matmul %104, %72, %cst_31 {dimension_numbers = #tpu.dot_dimension_numbers<[2], [2], [1], [1], [0, 0, 0, 1, 1, 1], [0], [0]>} : vector<2x24x32xf32>, vector<2x24x32xf32>, vector<2x24x24xf32> -> vector<2x24x24xf32>
    "tpu.trace_stop"() : () -> ()
    %cst_32 = arith.constant 0.353553385 : f32
    %110 = vector.broadcast %cst_32 : f32 to vector<2x24x24xf32>
    %111 = arith.mulf %109, %110 : vector<2x24x24xf32>
    %112 = vector.broadcast %11 : vector<1x1x24xf32> to vector<2x24x24xf32>
    %113 = arith.addf %111, %112 : vector<2x24x24xf32>
    %cst_33 = arith.constant dense<0xFF800000> : vector<2x24xf32>
    %114 = vector.multi_reduction <maximumf>, %113, %cst_33 [2] : vector<2x24x24xf32> to vector<2x24xf32>
    %115 = vector.shape_cast %114 : vector<2x24xf32> to vector<2x24x1xf32>
    %116 = vector.broadcast %115 : vector<2x24x1xf32> to vector<2x24x24xf32>
    %117 = arith.subf %113, %116 : vector<2x24x24xf32>
    %118 = math.exp %117 : vector<2x24x24xf32>
    %cst_34 = arith.constant dense<0.000000e+00> : vector<2x24xf32>
    %119 = vector.multi_reduction <add>, %118, %cst_34 [2] : vector<2x24x24xf32> to vector<2x24xf32>
    %120 = vector.shape_cast %119 : vector<2x24xf32> to vector<2x24x1xf32>
    %121 = tpu.reciprocal %120 {approx = true} : vector<2x24x1xf32> -> vector<2x24x1xf32>
    %122 = vector.broadcast %121 : vector<2x24x1xf32> to vector<2x24x24xf32>
    %123 = arith.mulf %118, %122 : vector<2x24x24xf32>
    "tpu.trace_start"() <{level = 10 : i32, message = "bqk,bkd->bqd"}> : () -> ()
    %cst_35 = arith.constant dense<0.000000e+00> : vector<2x24x32xf32>
    %124 = tpu.matmul %123, %108, %cst_35 {dimension_numbers = #tpu.dot_dimension_numbers<[2], [1], [1], [2], [0, 0, 0, 1, 1, 2], [0], [0]>} : vector<2x24x24xf32>, vector<2x24x32xf32>, vector<2x24x32xf32> -> vector<2x24x32xf32>
    "tpu.trace_stop"() : () -> ()
    %125 = arith.addf %100, %124 : vector<2x24x32xf32>
    %cst_36 = arith.constant 0.000000e+00 : f32
    %126 = vector.shape_cast %26 : vector<1x1x32xi1> to vector<1x1x32xi1>
    %127 = vector.broadcast %126 : vector<1x1x32xi1> to vector<2x24x32xi1>
    %128 = vector.broadcast %cst_36 : f32 to vector<2x24x32xf32>
    %129 = arith.select %127, %70, %128 : vector<2x24x32xi1>, vector<2x24x32xf32>
    %cst_37 = arith.constant 0.000000e+00 : f32
    %130 = vector.shape_cast %26 : vector<1x1x32xi1> to vector<1x1x32xi1>
    %131 = vector.broadcast %130 : vector<1x1x32xi1> to vector<2x24x32xi1>
    %132 = vector.broadcast %cst_37 : f32 to vector<2x24x32xf32>
    %133 = arith.select %131, %74, %132 : vector<2x24x32xi1>, vector<2x24x32xf32>
    "tpu.trace_start"() <{level = 10 : i32, message = "bqd,bkd->bqk"}> : () -> ()
    %cst_38 = arith.constant dense<0.000000e+00> : vector<2x24x24xf32>
    %134 = tpu.matmul %129, %72, %cst_38 {dimension_numbers = #tpu.dot_dimension_numbers<[2], [2], [1], [1], [0, 0, 0, 1, 1, 1], [0], [0]>} : vector<2x24x32xf32>, vector<2x24x32xf32>, vector<2x24x24xf32> -> vector<2x24x24xf32>
    "tpu.trace_stop"() : () -> ()
    %cst_39 = arith.constant 0.353553385 : f32
    %135 = vector.broadcast %cst_39 : f32 to vector<2x24x24xf32>
    %136 = arith.mulf %134, %135 : vector<2x24x24xf32>
    %137 = vector.broadcast %11 : vector<1x1x24xf32> to vector<2x24x24xf32>
    %138 = arith.addf %136, %137 : vector<2x24x24xf32>
    %cst_40 = arith.constant dense<0xFF800000> : vector<2x24xf32>
    %139 = vector.multi_reduction <maximumf>, %138, %cst_40 [2] : vector<2x24x24xf32> to vector<2x24xf32>
    %140 = vector.shape_cast %139 : vector<2x24xf32> to vector<2x24x1xf32>
    %141 = vector.broadcast %140 : vector<2x24x1xf32> to vector<2x24x24xf32>
    %142 = arith.subf %138, %141 : vector<2x24x24xf32>
    %143 = math.exp %142 : vector<2x24x24xf32>
    %cst_41 = arith.constant dense<0.000000e+00> : vector<2x24xf32>
    %144 = vector.multi_reduction <add>, %143, %cst_41 [2] : vector<2x24x24xf32> to vector<2x24xf32>
    %145 = vector.shape_cast %144 : vector<2x24xf32> to vector<2x24x1xf32>
    %146 = tpu.reciprocal %145 {approx = true} : vector<2x24x1xf32> -> vector<2x24x1xf32>
    %147 = vector.broadcast %146 : vector<2x24x1xf32> to vector<2x24x24xf32>
    %148 = arith.mulf %143, %147 : vector<2x24x24xf32>
    "tpu.trace_start"() <{level = 10 : i32, message = "bqk,bkd->bqd"}> : () -> ()
    %cst_42 = arith.constant dense<0.000000e+00> : vector<2x24x32xf32>
    %149 = tpu.matmul %148, %133, %cst_42 {dimension_numbers = #tpu.dot_dimension_numbers<[2], [1], [1], [2], [0, 0, 0, 1, 1, 2], [0], [0]>} : vector<2x24x24xf32>, vector<2x24x32xf32>, vector<2x24x32xf32> -> vector<2x24x32xf32>
    "tpu.trace_stop"() : () -> ()
    %150 = arith.addf %125, %149 : vector<2x24x32xf32>
    %cst_43 = arith.constant 0.000000e+00 : f32
    %151 = vector.shape_cast %31 : vector<1x1x32xi1> to vector<1x1x32xi1>
    %152 = vector.broadcast %151 : vector<1x1x32xi1> to vector<2x24x32xi1>
    %153 = vector.broadcast %cst_43 : f32 to vector<2x24x32xf32>
    %154 = arith.select %152, %70, %153 : vector<2x24x32xi1>, vector<2x24x32xf32>
    %cst_44 = arith.constant 0.000000e+00 : f32
    %155 = vector.shape_cast %31 : vector<1x1x32xi1> to vector<1x1x32xi1>
    %156 = vector.broadcast %155 : vector<1x1x32xi1> to vector<2x24x32xi1>
    %157 = vector.broadcast %cst_44 : f32 to vector<2x24x32xf32>
    %158 = arith.select %156, %74, %157 : vector<2x24x32xi1>, vector<2x24x32xf32>
    "tpu.trace_start"() <{level = 10 : i32, message = "bqd,bkd->bqk"}> : () -> ()
    %cst_45 = arith.constant dense<0.000000e+00> : vector<2x24x24xf32>
    %159 = tpu.matmul %154, %72, %cst_45 {dimension_numbers = #tpu.dot_dimension_numbers<[2], [2], [1], [1], [0, 0, 0, 1, 1, 1], [0], [0]>} : vector<2x24x32xf32>, vector<2x24x32xf32>, vector<2x24x24xf32> -> vector<2x24x24xf32>
    "tpu.trace_stop"() : () -> ()
    %cst_46 = arith.constant 0.353553385 : f32
    %160 = vector.broadcast %cst_46 : f32 to vector<2x24x24xf32>
    %161 = arith.mulf %159, %160 : vector<2x24x24xf32>
    %162 = vector.broadcast %11 : vector<1x1x24xf32> to vector<2x24x24xf32>
    %163 = arith.addf %161, %162 : vector<2x24x24xf32>
    %cst_47 = arith.constant dense<0xFF800000> : vector<2x24xf32>
    %164 = vector.multi_reduction <maximumf>, %163, %cst_47 [2] : vector<2x24x24xf32> to vector<2x24xf32>
    %165 = vector.shape_cast %164 : vector<2x24xf32> to vector<2x24x1xf32>
    %166 = vector.broadcast %165 : vector<2x24x1xf32> to vector<2x24x24xf32>
    %167 = arith.subf %163, %166 : vector<2x24x24xf32>
    %168 = math.exp %167 : vector<2x24x24xf32>
    %cst_48 = arith.constant dense<0.000000e+00> : vector<2x24xf32>
    %169 = vector.multi_reduction <add>, %168, %cst_48 [2] : vector<2x24x24xf32> to vector<2x24xf32>
    %170 = vector.shape_cast %169 : vector<2x24xf32> to vector<2x24x1xf32>
    %171 = tpu.reciprocal %170 {approx = true} : vector<2x24x1xf32> -> vector<2x24x1xf32>
    %172 = vector.broadcast %171 : vector<2x24x1xf32> to vector<2x24x24xf32>
    %173 = arith.mulf %168, %172 : vector<2x24x24xf32>
    "tpu.trace_start"() <{level = 10 : i32, message = "bqk,bkd->bqd"}> : () -> ()
    %cst_49 = arith.constant dense<0.000000e+00> : vector<2x24x32xf32>
    %174 = tpu.matmul %173, %158, %cst_49 {dimension_numbers = #tpu.dot_dimension_numbers<[2], [1], [1], [2], [0, 0, 0, 1, 1, 2], [0], [0]>} : vector<2x24x24xf32>, vector<2x24x32xf32>, vector<2x24x32xf32> -> vector<2x24x32xf32>
    "tpu.trace_stop"() : () -> ()
    %175 = arith.addf %150, %174 : vector<2x24x32xf32>
    %176 = vector.shape_cast %175 : vector<2x24x32xf32> to vector<48x32xf32>
    %c0_50 = arith.constant 0 : index
    %c0_51 = arith.constant 0 : index
    %c0_52 = arith.constant 0 : index
    %177 = vector.load %arg5[%c0_50, %c0_51, %c0_52] : memref<2x32x32xf32, #tpu.memory_space<vmem>>, vector<1x32x32xf32>
    %178 = vector.shape_cast %177 : vector<1x32x32xf32> to vector<32x32xf32>
    %cst_53 = arith.constant dense<0.000000e+00> : vector<48x32xf32>
    %179 = tpu.matmul %176, %178, %cst_53 {dimension_numbers = #tpu.dot_dimension_numbers<[1], [0], [0], [1], [0, 0, 1, 1], [], []>} : vector<48x32xf32>, vector<32x32xf32>, vector<48x32xf32> -> vector<48x32xf32>
    %180 = vector.broadcast %39 : vector<1x32xf32> to vector<48x32xf32>
    %181 = arith.addf %179, %180 : vector<48x32xf32>
    %182 = arith.addf %4, %181 : vector<48x32xf32>
    %cst_54 = arith.constant dense<0.000000e+00> : vector<48xf32>
    %183 = vector.multi_reduction <add>, %182, %cst_54 [1] : vector<48x32xf32> to vector<48xf32>
    %184 = vector.shape_cast %183 : vector<48xf32> to vector<48x1xf32>
    %cst_55 = arith.constant 3.200000e+01 : f32
    %185 = vector.broadcast %cst_55 : f32 to vector<48x1xf32>
    %186 = arith.divf %184, %185 : vector<48x1xf32>
    %187 = vector.broadcast %186 : vector<48x1xf32> to vector<48x32xf32>
    %188 = arith.subf %182, %187 : vector<48x32xf32>
    %189 = arith.mulf %188, %188 : vector<48x32xf32>
    %cst_56 = arith.constant dense<0.000000e+00> : vector<48xf32>
    %190 = vector.multi_reduction <add>, %189, %cst_56 [1] : vector<48x32xf32> to vector<48xf32>
    %191 = vector.shape_cast %190 : vector<48xf32> to vector<48x1xf32>
    %cst_57 = arith.constant 3.200000e+01 : f32
    %192 = vector.broadcast %cst_57 : f32 to vector<48x1xf32>
    %193 = arith.divf %191, %192 : vector<48x1xf32>
    %194 = vector.broadcast %186 : vector<48x1xf32> to vector<48x32xf32>
    %195 = arith.subf %182, %194 : vector<48x32xf32>
    %cst_58 = arith.constant 9.99999996E-13 : f32
    %196 = vector.broadcast %cst_58 : f32 to vector<48x1xf32>
    %197 = arith.addf %193, %196 : vector<48x1xf32>
    %198 = math.rsqrt %197 : vector<48x1xf32>
    %199 = vector.broadcast %198 : vector<48x1xf32> to vector<48x32xf32>
    %200 = arith.mulf %195, %199 : vector<48x32xf32>
    %201 = vector.broadcast %36 : vector<1x32xf32> to vector<48x32xf32>
    %202 = arith.mulf %200, %201 : vector<48x32xf32>
    %203 = vector.broadcast %37 : vector<1x32xf32> to vector<48x32xf32>
    %204 = arith.addf %202, %203 : vector<48x32xf32>
    %c0_59 = arith.constant 0 : index
    %c0_60 = arith.constant 0 : index
    %c0_61 = arith.constant 0 : index
    %205 = vector.load %arg6[%c0_59, %c0_60, %c0_61] : memref<2x32x64xf32, #tpu.memory_space<vmem>>, vector<1x32x64xf32>
    %206 = vector.shape_cast %205 : vector<1x32x64xf32> to vector<32x64xf32>
    %cst_62 = arith.constant dense<0.000000e+00> : vector<48x64xf32>
    %207 = tpu.matmul %204, %206, %cst_62 {dimension_numbers = #tpu.dot_dimension_numbers<[1], [0], [0], [1], [0, 0, 1, 1], [], []>} : vector<48x32xf32>, vector<32x64xf32>, vector<48x64xf32> -> vector<48x64xf32>
    %208 = vector.broadcast %40 : vector<1x64xf32> to vector<48x64xf32>
    %209 = arith.addf %207, %208 : vector<48x64xf32>
    %210 = arith.mulf %209, %209 : vector<48x64xf32>
    %211 = arith.mulf %209, %210 : vector<48x64xf32>
    %cst_63 = arith.constant 4.471500e-02 : f32
    %212 = vector.broadcast %cst_63 : f32 to vector<48x64xf32>
    %213 = arith.mulf %212, %211 : vector<48x64xf32>
    %214 = arith.addf %209, %213 : vector<48x64xf32>
    %cst_64 = arith.constant 0.797884583 : f32
    %215 = vector.broadcast %cst_64 : f32 to vector<48x64xf32>
    %216 = arith.mulf %215, %214 : vector<48x64xf32>
    %217 = math.tanh %216 : vector<48x64xf32>
    %cst_65 = arith.constant 1.000000e+00 : f32
    %218 = vector.broadcast %cst_65 : f32 to vector<48x64xf32>
    %219 = arith.addf %218, %217 : vector<48x64xf32>
    %cst_66 = arith.constant 5.000000e-01 : f32
    %220 = vector.broadcast %cst_66 : f32 to vector<48x64xf32>
    %221 = arith.mulf %220, %219 : vector<48x64xf32>
    %222 = arith.mulf %209, %221 : vector<48x64xf32>
    %c0_67 = arith.constant 0 : index
    %c0_68 = arith.constant 0 : index
    %c0_69 = arith.constant 0 : index
    %223 = vector.load %arg7[%c0_67, %c0_68, %c0_69] : memref<2x64x32xf32, #tpu.memory_space<vmem>>, vector<1x64x32xf32>
    %224 = vector.shape_cast %223 : vector<1x64x32xf32> to vector<64x32xf32>
    %cst_70 = arith.constant dense<0.000000e+00> : vector<48x32xf32>
    %225 = tpu.matmul %222, %224, %cst_70 {dimension_numbers = #tpu.dot_dimension_numbers<[1], [0], [0], [1], [0, 0, 1, 1], [], []>} : vector<48x64xf32>, vector<64x32xf32>, vector<48x32xf32> -> vector<48x32xf32>
    %226 = vector.broadcast %41 : vector<1x32xf32> to vector<48x32xf32>
    %227 = arith.addf %225, %226 : vector<48x32xf32>
    %228 = arith.addf %182, %227 : vector<48x32xf32>
    %c1 = arith.constant 1 : index
    %c0_71 = arith.constant 0 : index
    %c0_72 = arith.constant 0 : index
    %229 = vector.load %arg3[%c1, %c0_71, %c0_72] : memref<2x8x96xf32, #tpu.memory_space<vmem>>, vector<1x8x96xf32>
    %230 = vector.shape_cast %229 : vector<1x8x96xf32> to vector<8x96xf32>
    %231 = vector.extract_strided_slice %230 {offsets = [0, 0], sizes = [1, 32], strides = [1, 1]} : vector<8x96xf32> to vector<1x32xf32>
    %232 = vector.extract_strided_slice %230 {offsets = [1, 0], sizes = [1, 32], strides = [1, 1]} : vector<8x96xf32> to vector<1x32xf32>
    %233 = vector.extract_strided_slice %230 {offsets = [2, 0], sizes = [1, 32], strides = [1, 1]} : vector<8x96xf32> to vector<1x32xf32>
    %234 = vector.extract_strided_slice %230 {offsets = [3, 0], sizes = [1, 32], strides = [1, 1]} : vector<8x96xf32> to vector<1x32xf32>
    %235 = vector.extract_strided_slice %230 {offsets = [4, 0], sizes = [1, 96], strides = [1, 1]} : vector<8x96xf32> to vector<1x96xf32>
    %236 = vector.extract_strided_slice %230 {offsets = [5, 0], sizes = [1, 32], strides = [1, 1]} : vector<8x96xf32> to vector<1x32xf32>
    %237 = vector.extract_strided_slice %230 {offsets = [6, 0], sizes = [1, 64], strides = [1, 1]} : vector<8x96xf32> to vector<1x64xf32>
    %238 = vector.extract_strided_slice %230 {offsets = [7, 0], sizes = [1, 32], strides = [1, 1]} : vector<8x96xf32> to vector<1x32xf32>
    %cst_73 = arith.constant dense<0.000000e+00> : vector<48xf32>
    %239 = vector.multi_reduction <add>, %228, %cst_73 [1] : vector<48x32xf32> to vector<48xf32>
    %240 = vector.shape_cast %239 : vector<48xf32> to vector<48x1xf32>
    %cst_74 = arith.constant 3.200000e+01 : f32
    %241 = vector.broadcast %cst_74 : f32 to vector<48x1xf32>
    %242 = arith.divf %240, %241 : vector<48x1xf32>
    %243 = vector.broadcast %242 : vector<48x1xf32> to vector<48x32xf32>
    %244 = arith.subf %228, %243 : vector<48x32xf32>
    %245 = arith.mulf %244, %244 : vector<48x32xf32>
    %cst_75 = arith.constant dense<0.000000e+00> : vector<48xf32>
    %246 = vector.multi_reduction <add>, %245, %cst_75 [1] : vector<48x32xf32> to vector<48xf32>
    %247 = vector.shape_cast %246 : vector<48xf32> to vector<48x1xf32>
    %cst_76 = arith.constant 3.200000e+01 : f32
    %248 = vector.broadcast %cst_76 : f32 to vector<48x1xf32>
    %249 = arith.divf %247, %248 : vector<48x1xf32>
    %250 = vector.broadcast %242 : vector<48x1xf32> to vector<48x32xf32>
    %251 = arith.subf %228, %250 : vector<48x32xf32>
    %cst_77 = arith.constant 9.99999996E-13 : f32
    %252 = vector.broadcast %cst_77 : f32 to vector<48x1xf32>
    %253 = arith.addf %249, %252 : vector<48x1xf32>
    %254 = math.rsqrt %253 : vector<48x1xf32>
    %255 = vector.broadcast %254 : vector<48x1xf32> to vector<48x32xf32>
    %256 = arith.mulf %251, %255 : vector<48x32xf32>
    %257 = vector.broadcast %231 : vector<1x32xf32> to vector<48x32xf32>
    %258 = arith.mulf %256, %257 : vector<48x32xf32>
    %259 = vector.broadcast %232 : vector<1x32xf32> to vector<48x32xf32>
    %260 = arith.addf %258, %259 : vector<48x32xf32>
    %c1_78 = arith.constant 1 : index
    %c0_79 = arith.constant 0 : index
    %c0_80 = arith.constant 0 : index
    %261 = vector.load %arg4[%c1_78, %c0_79, %c0_80] : memref<2x32x96xf32, #tpu.memory_space<vmem>>, vector<1x32x96xf32>
    %262 = vector.shape_cast %261 : vector<1x32x96xf32> to vector<32x96xf32>
    %cst_81 = arith.constant dense<0.000000e+00> : vector<48x96xf32>
    %263 = tpu.matmul %260, %262, %cst_81 {dimension_numbers = #tpu.dot_dimension_numbers<[1], [0], [0], [1], [0, 0, 1, 1], [], []>} : vector<48x32xf32>, vector<32x96xf32>, vector<48x96xf32> -> vector<48x96xf32>
    %264 = vector.broadcast %235 : vector<1x96xf32> to vector<48x96xf32>
    %265 = arith.addf %263, %264 : vector<48x96xf32>
    %266 = vector.extract_strided_slice %265 {offsets = [0, 0], sizes = [48, 32], strides = [1, 1]} : vector<48x96xf32> to vector<48x32xf32>
    %267 = vector.shape_cast %266 : vector<48x32xf32> to vector<2x24x32xf32>
    %268 = vector.extract_strided_slice %265 {offsets = [0, 32], sizes = [48, 32], strides = [1, 1]} : vector<48x96xf32> to vector<48x32xf32>
    %269 = vector.shape_cast %268 : vector<48x32xf32> to vector<2x24x32xf32>
    %270 = vector.extract_strided_slice %265 {offsets = [0, 64], sizes = [48, 32], strides = [1, 1]} : vector<48x96xf32> to vector<48x32xf32>
    %271 = vector.shape_cast %270 : vector<48x32xf32> to vector<2x24x32xf32>
    %cst_82 = arith.constant 0.000000e+00 : f32
    %272 = vector.broadcast %cst_82 : f32 to vector<2x24x32xf32>
    %cst_83 = arith.constant 0.000000e+00 : f32
    %273 = vector.shape_cast %16 : vector<1x1x32xi1> to vector<1x1x32xi1>
    %274 = vector.broadcast %273 : vector<1x1x32xi1> to vector<2x24x32xi1>
    %275 = vector.broadcast %cst_83 : f32 to vector<2x24x32xf32>
    %276 = arith.select %274, %267, %275 : vector<2x24x32xi1>, vector<2x24x32xf32>
    %cst_84 = arith.constant 0.000000e+00 : f32
    %277 = vector.shape_cast %16 : vector<1x1x32xi1> to vector<1x1x32xi1>
    %278 = vector.broadcast %277 : vector<1x1x32xi1> to vector<2x24x32xi1>
    %279 = vector.broadcast %cst_84 : f32 to vector<2x24x32xf32>
    %280 = arith.select %278, %271, %279 : vector<2x24x32xi1>, vector<2x24x32xf32>
    "tpu.trace_start"() <{level = 10 : i32, message = "bqd,bkd->bqk"}> : () -> ()
    %cst_85 = arith.constant dense<0.000000e+00> : vector<2x24x24xf32>
    %281 = tpu.matmul %276, %269, %cst_85 {dimension_numbers = #tpu.dot_dimension_numbers<[2], [2], [1], [1], [0, 0, 0, 1, 1, 1], [0], [0]>} : vector<2x24x32xf32>, vector<2x24x32xf32>, vector<2x24x24xf32> -> vector<2x24x24xf32>
    "tpu.trace_stop"() : () -> ()
    %cst_86 = arith.constant 0.353553385 : f32
    %282 = vector.broadcast %cst_86 : f32 to vector<2x24x24xf32>
    %283 = arith.mulf %281, %282 : vector<2x24x24xf32>
    %284 = vector.broadcast %11 : vector<1x1x24xf32> to vector<2x24x24xf32>
    %285 = arith.addf %283, %284 : vector<2x24x24xf32>
    %cst_87 = arith.constant dense<0xFF800000> : vector<2x24xf32>
    %286 = vector.multi_reduction <maximumf>, %285, %cst_87 [2] : vector<2x24x24xf32> to vector<2x24xf32>
    %287 = vector.shape_cast %286 : vector<2x24xf32> to vector<2x24x1xf32>
    %288 = vector.broadcast %287 : vector<2x24x1xf32> to vector<2x24x24xf32>
    %289 = arith.subf %285, %288 : vector<2x24x24xf32>
    %290 = math.exp %289 : vector<2x24x24xf32>
    %cst_88 = arith.constant dense<0.000000e+00> : vector<2x24xf32>
    %291 = vector.multi_reduction <add>, %290, %cst_88 [2] : vector<2x24x24xf32> to vector<2x24xf32>
    %292 = vector.shape_cast %291 : vector<2x24xf32> to vector<2x24x1xf32>
    %293 = tpu.reciprocal %292 {approx = true} : vector<2x24x1xf32> -> vector<2x24x1xf32>
    %294 = vector.broadcast %293 : vector<2x24x1xf32> to vector<2x24x24xf32>
    %295 = arith.mulf %290, %294 : vector<2x24x24xf32>
    "tpu.trace_start"() <{level = 10 : i32, message = "bqk,bkd->bqd"}> : () -> ()
    %cst_89 = arith.constant dense<0.000000e+00> : vector<2x24x32xf32>
    %296 = tpu.matmul %295, %280, %cst_89 {dimension_numbers = #tpu.dot_dimension_numbers<[2], [1], [1], [2], [0, 0, 0, 1, 1, 2], [0], [0]>} : vector<2x24x24xf32>, vector<2x24x32xf32>, vector<2x24x32xf32> -> vector<2x24x32xf32>
    "tpu.trace_stop"() : () -> ()
    %297 = arith.addf %272, %296 : vector<2x24x32xf32>
    %cst_90 = arith.constant 0.000000e+00 : f32
    %298 = vector.shape_cast %21 : vector<1x1x32xi1> to vector<1x1x32xi1>
    %299 = vector.broadcast %298 : vector<1x1x32xi1> to vector<2x24x32xi1>
    %300 = vector.broadcast %cst_90 : f32 to vector<2x24x32xf32>
    %301 = arith.select %299, %267, %300 : vector<2x24x32xi1>, vector<2x24x32xf32>
    %cst_91 = arith.constant 0.000000e+00 : f32
    %302 = vector.shape_cast %21 : vector<1x1x32xi1> to vector<1x1x32xi1>
    %303 = vector.broadcast %302 : vector<1x1x32xi1> to vector<2x24x32xi1>
    %304 = vector.broadcast %cst_91 : f32 to vector<2x24x32xf32>
    %305 = arith.select %303, %271, %304 : vector<2x24x32xi1>, vector<2x24x32xf32>
    "tpu.trace_start"() <{level = 10 : i32, message = "bqd,bkd->bqk"}> : () -> ()
    %cst_92 = arith.constant dense<0.000000e+00> : vector<2x24x24xf32>
    %306 = tpu.matmul %301, %269, %cst_92 {dimension_numbers = #tpu.dot_dimension_numbers<[2], [2], [1], [1], [0, 0, 0, 1, 1, 1], [0], [0]>} : vector<2x24x32xf32>, vector<2x24x32xf32>, vector<2x24x24xf32> -> vector<2x24x24xf32>
    "tpu.trace_stop"() : () -> ()
    %cst_93 = arith.constant 0.353553385 : f32
    %307 = vector.broadcast %cst_93 : f32 to vector<2x24x24xf32>
    %308 = arith.mulf %306, %307 : vector<2x24x24xf32>
    %309 = vector.broadcast %11 : vector<1x1x24xf32> to vector<2x24x24xf32>
    %310 = arith.addf %308, %309 : vector<2x24x24xf32>
    %cst_94 = arith.constant dense<0xFF800000> : vector<2x24xf32>
    %311 = vector.multi_reduction <maximumf>, %310, %cst_94 [2] : vector<2x24x24xf32> to vector<2x24xf32>
    %312 = vector.shape_cast %311 : vector<2x24xf32> to vector<2x24x1xf32>
    %313 = vector.broadcast %312 : vector<2x24x1xf32> to vector<2x24x24xf32>
    %314 = arith.subf %310, %313 : vector<2x24x24xf32>
    %315 = math.exp %314 : vector<2x24x24xf32>
    %cst_95 = arith.constant dense<0.000000e+00> : vector<2x24xf32>
    %316 = vector.multi_reduction <add>, %315, %cst_95 [2] : vector<2x24x24xf32> to vector<2x24xf32>
    %317 = vector.shape_cast %316 : vector<2x24xf32> to vector<2x24x1xf32>
    %318 = tpu.reciprocal %317 {approx = true} : vector<2x24x1xf32> -> vector<2x24x1xf32>
    %319 = vector.broadcast %318 : vector<2x24x1xf32> to vector<2x24x24xf32>
    %320 = arith.mulf %315, %319 : vector<2x24x24xf32>
    "tpu.trace_start"() <{level = 10 : i32, message = "bqk,bkd->bqd"}> : () -> ()
    %cst_96 = arith.constant dense<0.000000e+00> : vector<2x24x32xf32>
    %321 = tpu.matmul %320, %305, %cst_96 {dimension_numbers = #tpu.dot_dimension_numbers<[2], [1], [1], [2], [0, 0, 0, 1, 1, 2], [0], [0]>} : vector<2x24x24xf32>, vector<2x24x32xf32>, vector<2x24x32xf32> -> vector<2x24x32xf32>
    "tpu.trace_stop"() : () -> ()
    %322 = arith.addf %297, %321 : vector<2x24x32xf32>
    %cst_97 = arith.constant 0.000000e+00 : f32
    %323 = vector.shape_cast %26 : vector<1x1x32xi1> to vector<1x1x32xi1>
    %324 = vector.broadcast %323 : vector<1x1x32xi1> to vector<2x24x32xi1>
    %325 = vector.broadcast %cst_97 : f32 to vector<2x24x32xf32>
    %326 = arith.select %324, %267, %325 : vector<2x24x32xi1>, vector<2x24x32xf32>
    %cst_98 = arith.constant 0.000000e+00 : f32
    %327 = vector.shape_cast %26 : vector<1x1x32xi1> to vector<1x1x32xi1>
    %328 = vector.broadcast %327 : vector<1x1x32xi1> to vector<2x24x32xi1>
    %329 = vector.broadcast %cst_98 : f32 to vector<2x24x32xf32>
    %330 = arith.select %328, %271, %329 : vector<2x24x32xi1>, vector<2x24x32xf32>
    "tpu.trace_start"() <{level = 10 : i32, message = "bqd,bkd->bqk"}> : () -> ()
    %cst_99 = arith.constant dense<0.000000e+00> : vector<2x24x24xf32>
    %331 = tpu.matmul %326, %269, %cst_99 {dimension_numbers = #tpu.dot_dimension_numbers<[2], [2], [1], [1], [0, 0, 0, 1, 1, 1], [0], [0]>} : vector<2x24x32xf32>, vector<2x24x32xf32>, vector<2x24x24xf32> -> vector<2x24x24xf32>
    "tpu.trace_stop"() : () -> ()
    %cst_100 = arith.constant 0.353553385 : f32
    %332 = vector.broadcast %cst_100 : f32 to vector<2x24x24xf32>
    %333 = arith.mulf %331, %332 : vector<2x24x24xf32>
    %334 = vector.broadcast %11 : vector<1x1x24xf32> to vector<2x24x24xf32>
    %335 = arith.addf %333, %334 : vector<2x24x24xf32>
    %cst_101 = arith.constant dense<0xFF800000> : vector<2x24xf32>
    %336 = vector.multi_reduction <maximumf>, %335, %cst_101 [2] : vector<2x24x24xf32> to vector<2x24xf32>
    %337 = vector.shape_cast %336 : vector<2x24xf32> to vector<2x24x1xf32>
    %338 = vector.broadcast %337 : vector<2x24x1xf32> to vector<2x24x24xf32>
    %339 = arith.subf %335, %338 : vector<2x24x24xf32>
    %340 = math.exp %339 : vector<2x24x24xf32>
    %cst_102 = arith.constant dense<0.000000e+00> : vector<2x24xf32>
    %341 = vector.multi_reduction <add>, %340, %cst_102 [2] : vector<2x24x24xf32> to vector<2x24xf32>
    %342 = vector.shape_cast %341 : vector<2x24xf32> to vector<2x24x1xf32>
    %343 = tpu.reciprocal %342 {approx = true} : vector<2x24x1xf32> -> vector<2x24x1xf32>
    %344 = vector.broadcast %343 : vector<2x24x1xf32> to vector<2x24x24xf32>
    %345 = arith.mulf %340, %344 : vector<2x24x24xf32>
    "tpu.trace_start"() <{level = 10 : i32, message = "bqk,bkd->bqd"}> : () -> ()
    %cst_103 = arith.constant dense<0.000000e+00> : vector<2x24x32xf32>
    %346 = tpu.matmul %345, %330, %cst_103 {dimension_numbers = #tpu.dot_dimension_numbers<[2], [1], [1], [2], [0, 0, 0, 1, 1, 2], [0], [0]>} : vector<2x24x24xf32>, vector<2x24x32xf32>, vector<2x24x32xf32> -> vector<2x24x32xf32>
    "tpu.trace_stop"() : () -> ()
    %347 = arith.addf %322, %346 : vector<2x24x32xf32>
    %cst_104 = arith.constant 0.000000e+00 : f32
    %348 = vector.shape_cast %31 : vector<1x1x32xi1> to vector<1x1x32xi1>
    %349 = vector.broadcast %348 : vector<1x1x32xi1> to vector<2x24x32xi1>
    %350 = vector.broadcast %cst_104 : f32 to vector<2x24x32xf32>
    %351 = arith.select %349, %267, %350 : vector<2x24x32xi1>, vector<2x24x32xf32>
    %cst_105 = arith.constant 0.000000e+00 : f32
    %352 = vector.shape_cast %31 : vector<1x1x32xi1> to vector<1x1x32xi1>
    %353 = vector.broadcast %352 : vector<1x1x32xi1> to vector<2x24x32xi1>
    %354 = vector.broadcast %cst_105 : f32 to vector<2x24x32xf32>
    %355 = arith.select %353, %271, %354 : vector<2x24x32xi1>, vector<2x24x32xf32>
    "tpu.trace_start"() <{level = 10 : i32, message = "bqd,bkd->bqk"}> : () -> ()
    %cst_106 = arith.constant dense<0.000000e+00> : vector<2x24x24xf32>
    %356 = tpu.matmul %351, %269, %cst_106 {dimension_numbers = #tpu.dot_dimension_numbers<[2], [2], [1], [1], [0, 0, 0, 1, 1, 1], [0], [0]>} : vector<2x24x32xf32>, vector<2x24x32xf32>, vector<2x24x24xf32> -> vector<2x24x24xf32>
    "tpu.trace_stop"() : () -> ()
    %cst_107 = arith.constant 0.353553385 : f32
    %357 = vector.broadcast %cst_107 : f32 to vector<2x24x24xf32>
    %358 = arith.mulf %356, %357 : vector<2x24x24xf32>
    %359 = vector.broadcast %11 : vector<1x1x24xf32> to vector<2x24x24xf32>
    %360 = arith.addf %358, %359 : vector<2x24x24xf32>
    %cst_108 = arith.constant dense<0xFF800000> : vector<2x24xf32>
    %361 = vector.multi_reduction <maximumf>, %360, %cst_108 [2] : vector<2x24x24xf32> to vector<2x24xf32>
    %362 = vector.shape_cast %361 : vector<2x24xf32> to vector<2x24x1xf32>
    %363 = vector.broadcast %362 : vector<2x24x1xf32> to vector<2x24x24xf32>
    %364 = arith.subf %360, %363 : vector<2x24x24xf32>
    %365 = math.exp %364 : vector<2x24x24xf32>
    %cst_109 = arith.constant dense<0.000000e+00> : vector<2x24xf32>
    %366 = vector.multi_reduction <add>, %365, %cst_109 [2] : vector<2x24x24xf32> to vector<2x24xf32>
    %367 = vector.shape_cast %366 : vector<2x24xf32> to vector<2x24x1xf32>
    %368 = tpu.reciprocal %367 {approx = true} : vector<2x24x1xf32> -> vector<2x24x1xf32>
    %369 = vector.broadcast %368 : vector<2x24x1xf32> to vector<2x24x24xf32>
    %370 = arith.mulf %365, %369 : vector<2x24x24xf32>
    "tpu.trace_start"() <{level = 10 : i32, message = "bqk,bkd->bqd"}> : () -> ()
    %cst_110 = arith.constant dense<0.000000e+00> : vector<2x24x32xf32>
    %371 = tpu.matmul %370, %355, %cst_110 {dimension_numbers = #tpu.dot_dimension_numbers<[2], [1], [1], [2], [0, 0, 0, 1, 1, 2], [0], [0]>} : vector<2x24x24xf32>, vector<2x24x32xf32>, vector<2x24x32xf32> -> vector<2x24x32xf32>
    "tpu.trace_stop"() : () -> ()
    %372 = arith.addf %347, %371 : vector<2x24x32xf32>
    %373 = vector.shape_cast %372 : vector<2x24x32xf32> to vector<48x32xf32>
    %c1_111 = arith.constant 1 : index
    %c0_112 = arith.constant 0 : index
    %c0_113 = arith.constant 0 : index
    %374 = vector.load %arg5[%c1_111, %c0_112, %c0_113] : memref<2x32x32xf32, #tpu.memory_space<vmem>>, vector<1x32x32xf32>
    %375 = vector.shape_cast %374 : vector<1x32x32xf32> to vector<32x32xf32>
    %cst_114 = arith.constant dense<0.000000e+00> : vector<48x32xf32>
    %376 = tpu.matmul %373, %375, %cst_114 {dimension_numbers = #tpu.dot_dimension_numbers<[1], [0], [0], [1], [0, 0, 1, 1], [], []>} : vector<48x32xf32>, vector<32x32xf32>, vector<48x32xf32> -> vector<48x32xf32>
    %377 = vector.broadcast %236 : vector<1x32xf32> to vector<48x32xf32>
    %378 = arith.addf %376, %377 : vector<48x32xf32>
    %379 = arith.addf %228, %378 : vector<48x32xf32>
    %cst_115 = arith.constant dense<0.000000e+00> : vector<48xf32>
    %380 = vector.multi_reduction <add>, %379, %cst_115 [1] : vector<48x32xf32> to vector<48xf32>
    %381 = vector.shape_cast %380 : vector<48xf32> to vector<48x1xf32>
    %cst_116 = arith.constant 3.200000e+01 : f32
    %382 = vector.broadcast %cst_116 : f32 to vector<48x1xf32>
    %383 = arith.divf %381, %382 : vector<48x1xf32>
    %384 = vector.broadcast %383 : vector<48x1xf32> to vector<48x32xf32>
    %385 = arith.subf %379, %384 : vector<48x32xf32>
    %386 = arith.mulf %385, %385 : vector<48x32xf32>
    %cst_117 = arith.constant dense<0.000000e+00> : vector<48xf32>
    %387 = vector.multi_reduction <add>, %386, %cst_117 [1] : vector<48x32xf32> to vector<48xf32>
    %388 = vector.shape_cast %387 : vector<48xf32> to vector<48x1xf32>
    %cst_118 = arith.constant 3.200000e+01 : f32
    %389 = vector.broadcast %cst_118 : f32 to vector<48x1xf32>
    %390 = arith.divf %388, %389 : vector<48x1xf32>
    %391 = vector.broadcast %383 : vector<48x1xf32> to vector<48x32xf32>
    %392 = arith.subf %379, %391 : vector<48x32xf32>
    %cst_119 = arith.constant 9.99999996E-13 : f32
    %393 = vector.broadcast %cst_119 : f32 to vector<48x1xf32>
    %394 = arith.addf %390, %393 : vector<48x1xf32>
    %395 = math.rsqrt %394 : vector<48x1xf32>
    %396 = vector.broadcast %395 : vector<48x1xf32> to vector<48x32xf32>
    %397 = arith.mulf %392, %396 : vector<48x32xf32>
    %398 = vector.broadcast %233 : vector<1x32xf32> to vector<48x32xf32>
    %399 = arith.mulf %397, %398 : vector<48x32xf32>
    %400 = vector.broadcast %234 : vector<1x32xf32> to vector<48x32xf32>
    %401 = arith.addf %399, %400 : vector<48x32xf32>
    %c1_120 = arith.constant 1 : index
    %c0_121 = arith.constant 0 : index
    %c0_122 = arith.constant 0 : index
    %402 = vector.load %arg6[%c1_120, %c0_121, %c0_122] : memref<2x32x64xf32, #tpu.memory_space<vmem>>, vector<1x32x64xf32>
    %403 = vector.shape_cast %402 : vector<1x32x64xf32> to vector<32x64xf32>
    %cst_123 = arith.constant dense<0.000000e+00> : vector<48x64xf32>
    %404 = tpu.matmul %401, %403, %cst_123 {dimension_numbers = #tpu.dot_dimension_numbers<[1], [0], [0], [1], [0, 0, 1, 1], [], []>} : vector<48x32xf32>, vector<32x64xf32>, vector<48x64xf32> -> vector<48x64xf32>
    %405 = vector.broadcast %237 : vector<1x64xf32> to vector<48x64xf32>
    %406 = arith.addf %404, %405 : vector<48x64xf32>
    %407 = arith.mulf %406, %406 : vector<48x64xf32>
    %408 = arith.mulf %406, %407 : vector<48x64xf32>
    %cst_124 = arith.constant 4.471500e-02 : f32
    %409 = vector.broadcast %cst_124 : f32 to vector<48x64xf32>
    %410 = arith.mulf %409, %408 : vector<48x64xf32>
    %411 = arith.addf %406, %410 : vector<48x64xf32>
    %cst_125 = arith.constant 0.797884583 : f32
    %412 = vector.broadcast %cst_125 : f32 to vector<48x64xf32>
    %413 = arith.mulf %412, %411 : vector<48x64xf32>
    %414 = math.tanh %413 : vector<48x64xf32>
    %cst_126 = arith.constant 1.000000e+00 : f32
    %415 = vector.broadcast %cst_126 : f32 to vector<48x64xf32>
    %416 = arith.addf %415, %414 : vector<48x64xf32>
    %cst_127 = arith.constant 5.000000e-01 : f32
    %417 = vector.broadcast %cst_127 : f32 to vector<48x64xf32>
    %418 = arith.mulf %417, %416 : vector<48x64xf32>
    %419 = arith.mulf %406, %418 : vector<48x64xf32>
    %c1_128 = arith.constant 1 : index
    %c0_129 = arith.constant 0 : index
    %c0_130 = arith.constant 0 : index
    %420 = vector.load %arg7[%c1_128, %c0_129, %c0_130] : memref<2x64x32xf32, #tpu.memory_space<vmem>>, vector<1x64x32xf32>
    %421 = vector.shape_cast %420 : vector<1x64x32xf32> to vector<64x32xf32>
    %cst_131 = arith.constant dense<0.000000e+00> : vector<48x32xf32>
    %422 = tpu.matmul %419, %421, %cst_131 {dimension_numbers = #tpu.dot_dimension_numbers<[1], [0], [0], [1], [0, 0, 1, 1], [], []>} : vector<48x64xf32>, vector<64x32xf32>, vector<48x32xf32> -> vector<48x32xf32>
    %423 = vector.broadcast %238 : vector<1x32xf32> to vector<48x32xf32>
    %424 = arith.addf %422, %423 : vector<48x32xf32>
    %425 = arith.addf %379, %424 : vector<48x32xf32>
    %c0_132 = arith.constant 0 : index
    %c0_133 = arith.constant 0 : index
    %426 = vector.load %arg8[%c0_132, %c0_133] : memref<8x512xf32, #tpu.memory_space<vmem>>, vector<8x512xf32>
    %427 = vector.extract_strided_slice %426 {offsets = [0, 0], sizes = [1, 32], strides = [1, 1]} : vector<8x512xf32> to vector<1x32xf32>
    %428 = vector.extract_strided_slice %426 {offsets = [1, 0], sizes = [1, 32], strides = [1, 1]} : vector<8x512xf32> to vector<1x32xf32>
    %429 = vector.extract_strided_slice %426 {offsets = [2, 0], sizes = [1, 512], strides = [1, 1]} : vector<8x512xf32> to vector<1x512xf32>
    %430 = vector.extract_strided_slice %426 {offsets = [3, 0], sizes = [1, 256], strides = [1, 1]} : vector<8x512xf32> to vector<1x256xf32>
    %431 = vector.extract_strided_slice %426 {offsets = [4, 0], sizes = [1, 2], strides = [1, 1]} : vector<8x512xf32> to vector<1x2xf32>
    %432 = vector.shape_cast %425 : vector<48x32xf32> to vector<2x24x32xf32>
    %433 = vector.extract_strided_slice %432 {offsets = [0, 0, 0], sizes = [2, 1, 32], strides = [1, 1, 1]} : vector<2x24x32xf32> to vector<2x1x32xf32>
    %434 = vector.shape_cast %433 : vector<2x1x32xf32> to vector<2x32xf32>
    %cst_134 = arith.constant dense<0.000000e+00> : vector<2xf32>
    %435 = vector.multi_reduction <add>, %434, %cst_134 [1] : vector<2x32xf32> to vector<2xf32>
    %436 = vector.shape_cast %435 : vector<2xf32> to vector<2x1xf32>
    %cst_135 = arith.constant 3.200000e+01 : f32
    %437 = vector.broadcast %cst_135 : f32 to vector<2x1xf32>
    %438 = arith.divf %436, %437 : vector<2x1xf32>
    %439 = vector.broadcast %438 : vector<2x1xf32> to vector<2x32xf32>
    %440 = arith.subf %434, %439 : vector<2x32xf32>
    %441 = arith.mulf %440, %440 : vector<2x32xf32>
    %cst_136 = arith.constant dense<0.000000e+00> : vector<2xf32>
    %442 = vector.multi_reduction <add>, %441, %cst_136 [1] : vector<2x32xf32> to vector<2xf32>
    %443 = vector.shape_cast %442 : vector<2xf32> to vector<2x1xf32>
    %cst_137 = arith.constant 3.200000e+01 : f32
    %444 = vector.broadcast %cst_137 : f32 to vector<2x1xf32>
    %445 = arith.divf %443, %444 : vector<2x1xf32>
    %446 = vector.broadcast %438 : vector<2x1xf32> to vector<2x32xf32>
    %447 = arith.subf %434, %446 : vector<2x32xf32>
    %cst_138 = arith.constant 9.99999996E-13 : f32
    %448 = vector.broadcast %cst_138 : f32 to vector<2x1xf32>
    %449 = arith.addf %445, %448 : vector<2x1xf32>
    %450 = math.rsqrt %449 : vector<2x1xf32>
    %451 = vector.broadcast %450 : vector<2x1xf32> to vector<2x32xf32>
    %452 = arith.mulf %447, %451 : vector<2x32xf32>
    %453 = vector.broadcast %427 : vector<1x32xf32> to vector<2x32xf32>
    %454 = arith.mulf %452, %453 : vector<2x32xf32>
    %455 = vector.broadcast %428 : vector<1x32xf32> to vector<2x32xf32>
    %456 = arith.addf %454, %455 : vector<2x32xf32>
    %c0_139 = arith.constant 0 : index
    %c0_140 = arith.constant 0 : index
    %457 = vector.load %arg9[%c0_139, %c0_140] : memref<32x512xf32, #tpu.memory_space<vmem>>, vector<32x512xf32>
    %cst_141 = arith.constant dense<0.000000e+00> : vector<2x512xf32>
    %458 = tpu.matmul %456, %457, %cst_141 {dimension_numbers = #tpu.dot_dimension_numbers<[1], [0], [0], [1], [0, 0, 1, 1], [], []>} : vector<2x32xf32>, vector<32x512xf32>, vector<2x512xf32> -> vector<2x512xf32>
    %459 = vector.broadcast %429 : vector<1x512xf32> to vector<2x512xf32>
    %460 = arith.addf %458, %459 : vector<2x512xf32>
    %cst_142 = arith.constant 0.000000e+00 : f32
    %461 = vector.broadcast %cst_142 : f32 to vector<2x512xf32>
    %462 = arith.maximumf %460, %461 : vector<2x512xf32>
    %c0_143 = arith.constant 0 : index
    %c0_144 = arith.constant 0 : index
    %463 = vector.load %arg10[%c0_143, %c0_144] : memref<768x256xf32, #tpu.memory_space<vmem>>, vector<512x256xf32>
    %c512 = arith.constant 512 : index
    %c0_145 = arith.constant 0 : index
    %464 = vector.load %arg10[%c512, %c0_145] : memref<768x256xf32, #tpu.memory_space<vmem>>, vector<256x2xf32>
    %cst_146 = arith.constant dense<0.000000e+00> : vector<2x256xf32>
    %465 = tpu.matmul %462, %463, %cst_146 {dimension_numbers = #tpu.dot_dimension_numbers<[1], [0], [0], [1], [0, 0, 1, 1], [], []>} : vector<2x512xf32>, vector<512x256xf32>, vector<2x256xf32> -> vector<2x256xf32>
    %466 = vector.broadcast %430 : vector<1x256xf32> to vector<2x256xf32>
    %467 = arith.addf %465, %466 : vector<2x256xf32>
    %cst_147 = arith.constant 0.000000e+00 : f32
    %468 = vector.broadcast %cst_147 : f32 to vector<2x256xf32>
    %469 = arith.maximumf %467, %468 : vector<2x256xf32>
    %cst_148 = arith.constant dense<0.000000e+00> : vector<2x2xf32>
    %470 = tpu.matmul %469, %464, %cst_148 {dimension_numbers = #tpu.dot_dimension_numbers<[1], [0], [0], [1], [0, 0, 1, 1], [], []>} : vector<2x256xf32>, vector<256x2xf32>, vector<2x2xf32> -> vector<2x2xf32>
    %471 = vector.broadcast %431 : vector<1x2xf32> to vector<2x2xf32>
    %472 = arith.addf %470, %471 : vector<2x2xf32>
    %c0_149 = arith.constant 0 : index
    %c0_150 = arith.constant 0 : index
    %473 = vector.load %arg11[%c0_149, %c0_150] : memref<2x2xf32, #tpu.memory_space<vmem>>, vector<2x2xf32>
    tpu.vector_store %arg11[%c0_149, %c0_150], %472 {strides = array<i32>} : memref<2x2xf32, #tpu.memory_space<vmem>>, vector<2x2xf32>,
    %474 = tpu.iota {dimensions = array<i32: 1>} : vector<2x2xi32>
    %c0_151 = arith.constant 0 : index
    %c0_152 = arith.constant 0 : index
    %475 = vector.load %arg1[%c0_151, %c0_152] : memref<2x1xi32, #tpu.memory_space<vmem>>, vector<2x1xi32>
    %476 = vector.broadcast %475 : vector<2x1xi32> to vector<2x2xi32>
    %477 = arith.cmpi eq, %474, %476 : vector<2x2xi32>
    %478 = arith.extui %477 : vector<2x2xi1> to vector<2x2xi32>
    %479 = arith.sitofp %478 : vector<2x2xi32> to vector<2x2xf32>
    %cst_153 = arith.constant dense<0xFF800000> : vector<2xf32>
    %480 = vector.multi_reduction <maximumf>, %472, %cst_153 [1] : vector<2x2xf32> to vector<2xf32>
    %481 = vector.shape_cast %480 : vector<2xf32> to vector<2x1xf32>
    %482 = vector.broadcast %481 : vector<2x1xf32> to vector<2x2xf32>
    %483 = arith.subf %472, %482 : vector<2x2xf32>
    %484 = math.exp %483 : vector<2x2xf32>
    %cst_154 = arith.constant dense<0.000000e+00> : vector<2xf32>
    %485 = vector.multi_reduction <add>, %484, %cst_154 [1] : vector<2x2xf32> to vector<2xf32>
    %486 = vector.shape_cast %485 : vector<2xf32> to vector<2x1xf32>
    %487 = math.log %486 : vector<2x1xf32>
    %488 = arith.addf %481, %487 : vector<2x1xf32>
    %489 = arith.mulf %472, %479 : vector<2x2xf32>
    %cst_155 = arith.constant dense<0.000000e+00> : vector<2xf32>
    %490 = vector.multi_reduction <add>, %489, %cst_155 [1] : vector<2x2xf32> to vector<2xf32>
    %491 = vector.shape_cast %490 : vector<2xf32> to vector<2x1xf32>
    %492 = arith.subf %488, %491 : vector<2x1xf32>
    %cst_156 = arith.constant 0.000000e+00 : f32
    %493 = vector.broadcast %cst_156 : f32 to vector<2x1xf32>
    %494 = arith.subf %493, %492 : vector<2x1xf32>
    %495 = math.exp %494 : vector<2x1xf32>
    %cst_157 = arith.constant 1.000000e+00 : f32
    %496 = vector.broadcast %cst_157 : f32 to vector<2x1xf32>
    %497 = arith.subf %496, %495 : vector<2x1xf32>
    %498 = arith.mulf %497, %497 : vector<2x1xf32>
    %499 = arith.mulf %498, %492 : vector<2x1xf32>
    %cst_158 = arith.constant dense<0.000000e+00> : vector<1xf32>
    %500 = vector.multi_reduction <add>, %499, %cst_158 [0] : vector<2x1xf32> to vector<1xf32>
    %501 = vector.shape_cast %500 : vector<1xf32> to vector<1x1xf32>
    %cst_159 = arith.constant 5.000000e-01 : f32
    %502 = vector.broadcast %cst_159 : f32 to vector<1x1xf32>
    %503 = arith.mulf %501, %502 : vector<1x1xf32>
    %c0_160 = arith.constant 0 : index
    %c0_161 = arith.constant 0 : index
    %504 = vector.load %arg12[%c0_160, %c0_161] : memref<1x1xf32, #tpu.memory_space<vmem>>, vector<1x1xf32>
    tpu.vector_store %arg12[%c0_160, %c0_161], %503 {strides = array<i32>} : memref<1x1xf32, #tpu.memory_space<vmem>>, vector<1x1xf32>,
    return
  }
}

</mosaic_0001>

<bundles_post_ra>
// kernel: image_sarcasm_forward.1
= control target key start
LH: loop header
LB: loop body
LE: loop exit
PB: predicated region body
PF: predicated region fallthrough
CT: control target
= control target key end

     0   :  { %18 = vsyncpa [#allocation3], 0  ;;  %s6975_s0 = inlined_call_operand.vmem [shape: f32[48,48], index: 0, kind: input, shape index: {}]   ;;  %s6976_s1 = inlined_call_operand.vmem [shape: s32[2,1], index: 1, kind: input, shape index: {}]   ;;  %s6977_s2 = inlined_call_operand.vmem [shape: f32[96,32], index: 2, kind: input, shape index: {}]   ;;  %s6978_s3 = inlined_call_operand.vmem [shape: f32[2,8,96], index: 3, kind: input, shape index: {}]   ;;  %s6979_s4 = inlined_call_operand.vmem [shape: f32[2,32,96], index: 4, kind: input, shape index: {}]   ;;  %s6980_s5 = inlined_call_operand.vmem [shape: f32[2,32,32], index: 5, kind: input, shape index: {}]   ;;  %s6981_s6 = inlined_call_operand.vmem [shape: f32[2,32,64], index: 6, kind: input, shape index: {}]   ;;  %s6982_s7 = inlined_call_operand.vmem [shape: f32[2,64,32], index: 7, kind: input, shape index: {}]   ;;  %s6983_s8 = inlined_call_operand.vmem [shape: f32[8,512], index: 8, kind: input, shape index: {}]   ;;  %s6984_s9 = inlined_call_operand.vmem [shape: f32[32,512], index: 9, kind: input, shape index: {}]   ;;  %s6985_s10 = inlined_call_operand.vmem [shape: f32[768,256], index: 10, kind: input, shape index: {}]   ;;  %s6986_s11 = inlined_call_operand.hbm [shape: f32[2,2], index: 11, kind: output, shape index: {0}]   ;;  %s6987_s12 = inlined_call_operand.hbm [shape: f32[1,1], index: 12, kind: output, shape index: {1}]  }
   0x1   :  { %v47_v0 = vld [vmem:[%s6977_s2 + $0x28] sm:$0xff]  ;;  %v46_v1 = vld [vmem:[%s6977_s2 + $0x20] sm:$0xff]  ;;  %v45_v2 = vld [vmem:[%s6977_s2 + $0x18] sm:$0xff] }
   0x2   :  { %89 = vmatpush.msra.mxu0 %v47_v0 }
   0x4   :  { %90 = vmatpush.msra.mxu0 %v46_v1 }
   0x5   :  { %19 = vsyncpa [#allocation5], 0  ;;  %v44_v3 = vld [vmem:[%s6977_s2 + $0x10] sm:$0xff]  ;;  %v43_v4 = vld [vmem:[%s6977_s2 + $0x8] sm:$0xff]  ;;  %vm60_vm0 = vcmask 392192   ;;  %vm131_vm1 = vcmask 261120  }
   0x6   :  { %91 = vmatpush.msra.mxu0 %v45_v2  ;;  %v42_v5 = vld [vmem:[%s6977_s2] sm:$0xff]  ;;  %v55_v7 = vld [vmem:[%s6975_s0 + $0x8] sm:$0xff]  ;;  %v56_v8 = vld [vmem:[%s6975_s0 + $0x10] sm:$0xff]  ;;  %v4517_v24 = vmov 32.0   ;;  %s4518_s29 = smov 96   ;;  %s4520_s30 = smov 64  }
   0x7   :  { %v54_v6 = vld [vmem:[%s6975_s0] sm:$0xff]  ;;  %v57_v9 = vld [vmem:[%s6975_s0 + $0x18] sm:$0xff]  ;;  %v48_v11 = vld [vmem:[%s6977_s2 + $0x30] sm:$0xff]  ;;  %4189 = vrcp.f32 %v4517_v24  ;;  %s3875_s23 = sshll.u32 %s6986_s11, 4  ;;  %s4524_s11 = smov [#allocation4]   ;;  %s3876_s23 = int_to_ptr.hbm [resolvable:$true] %s3875_s23 }
   0x8   :  { %92 = vmatpush.msra.mxu0 %v44_v3  ;;  %v58_v10 = vld [vmem:[%s6975_s0 + $0x20] sm:$0xff]  ;;  %v59_v14 = vld [vmem:[%s6975_s0 + $0x28] sm:$0xff]  ;;  %v49_v16 = vld [vmem:[%s6977_s2 + $0x38] sm:$0xff]  ;;  %s3884_s24 = sshll.u32 %s4524_s11, 4  ;;  %s3886_s25 = sshll.u32 %s6987_s12, 4  ;;  %s3885_s24 = int_to_ptr.vmem [resolvable:$true] %s3884_s24  ;;  %s3887_s25 = int_to_ptr.hbm [resolvable:$true] %s3886_s25 }
   0x9   :  { %v50_v20 = vld [vmem:[%s6977_s2 + $0x40] sm:$0xff]  ;;  %v51_v37 = vld [vmem:[%s6977_s2 + $0x48] sm:$0xff]  ;;  %v53_v42 = vld [vmem:[%s6977_s2 + $0x58] sm:$0xff] }
   0xa   :  { %93 = vmatpush.msra.mxu0 %v43_v4  ;;  %v52_v54 = vld [vmem:[%s6977_s2 + $0x50] sm:$0xff]  ;;  %v288_v58 = vld [vmem:[%s6979_s4 + $0x18] sm:$0xff]  ;;  %v286_v60 = vld [vmem:[%s6979_s4 + $0x8] sm:$0xff]  ;;  %s4523_s2 = smov [#allocation2]  }
   0xb   :  { %320 = vmatpush.msra.mxu1 %v288_v58  ;;  %4172 = vmatpush.msra.mxu3 %v288_v58  ;;  %v287_v59 = vld [vmem:[%s6979_s4 + $0x10] sm:$0xff]  ;;  %v285_v61 = vld [vmem:[%s6979_s4] sm:$0xff] }
   0xc   :  { %94 = vmatpush.msra.mxu0 %v42_v5 }
   0xd   :  { %3900 = vmatmul.msk.f32.vlgmr.msra.gmra.mxu0 %vm60_vm0, %v54_v6  ;;  %v4190_v25 = vpop.eup %4189  ;;  %321 = vmatpush.msra.mxu1 %v287_v59 }
   0xe   :  { %v151_v26 = vmul.f32 32.0, %v4190_v25  ;;  %vm155_vm2 = vweird.f32 %v4190_v25  ;;  %4173 = vmatpush.msra.mxu3 %v287_v59 }
   0xf   :  { %322 = vmatpush.msra.mxu1 %v286_v60 }
  0x10   :  { %v152_v27 = vsub.f32 1.0, %v151_v26  ;;  %4174 = vmatpush.msra.mxu3 %v286_v60 }
  0x11   :  { %323 = vmatpush.msra.mxu1 %v285_v61 }
  0x12   :  { %v153_v28 = vmul.f32 %v4190_v25, %v152_v27  ;;  %4175 = vmatpush.msra.mxu3 %v285_v61 }
  0x14   :  { %v154_v29 = vadd.f32 %v4190_v25, %v153_v28 }
  0x15   :  { %3901 = vmatmul.msk.f32.gmra.mxu0 %vm60_vm0, %v55_v7 }
  0x16   :  { %v4653_v31 = vsel %vm155_vm2, %v4190_v25, %v154_v29 }
  0x1d   :  { %3902 = vmatmul.msk.f32.gmra.mxu0 %vm60_vm0, %v56_v8 }
  0x25   :  { %3903 = vmatmul.msk.f32.gmra.mxu0 %vm60_vm0, %v57_v9 }
  0x2d   :  { %3904 = vmatmul.msk.f32.gmra.mxu0 %vm60_vm0, %v58_v10 }
  0x35   :  { %3905 = vmatmul.msk.f32.gmra.mxu0 %vm60_vm0, %v59_v14 }
  0x8a   :  { %v96_v12 = vpop.f32.mrf.mxu0 }
  0x8b   :  { %v4631_v13 = vadd.f32 %v96_v12, %v48_v11  ;;  %v130_v11 = vld [vmem:[%s6978_s3] sm:$0xff] }
  0x8d   :  { %v132_v15 = vsel %vm131_vm1, %v4631_v13, 0.0 }
  0x8e   :  { %133 = vadd.xlane.f32.xlu0 %v132_v15 }
  0x92   :  { %v99_v17 = vpop.f32.mrf.mxu0 }
  0x93   :  { %v4642_v18 = vadd.f32 %v99_v17, %v49_v16  ;;  %v4715_v17 = vperm.slane %v130_v11, 0 }
  0x95   :  { %v135_v19 = vsel %vm131_vm1, %v4642_v18, 0.0 }
  0x96   :  { %136 = vadd.xlane.f32.xlu0 %v135_v19 }
  0x9a   :  { %v102_v21 = vpop.f32.mrf.mxu0 }
  0x9b   :  { %v4649_v22 = vadd.f32 %v102_v21, %v50_v20 }
  0x9d   :  { %v138_v23 = vsel %vm131_vm1, %v4649_v22, 0.0 }
  0x9e   :  { %139 = vadd.xlane.f32.xlu1 %v138_v23  ;;  %v4718_v23 = vperm.slane %v130_v11, 1 }
  0xa2   :  { %v105_v30 = vpop.f32.mrf.mxu0 }
  0xa3   :  { %v4666_v41 = vadd.f32 %v105_v30, %v51_v37 }
  0xa5   :  { %v141_v47 = vsel %vm131_vm1, %v4666_v41, 0.0 }
  0xaa   :  { %v108_v35 = vpop.f32.mrf.mxu0 }
  0xab   :  { %v4693_v56 = vadd.f32 %v108_v35, %v52_v54 }
  0xad   :  { %v144_v57 = vsel %vm131_vm1, %v4693_v56, 0.0 }
  0xb2   :  { %v111_v44 = vpop.f32.mrf.mxu0 }
  0xb3   :  { %v4674_v45 = vadd.f32 %v111_v44, %v53_v42 }
  0xb5   :  { %v147_v48 = vsel %vm131_vm1, %v4674_v45, 0.0 }
  0xb6   :  { %148 = vadd.xlane.f32.xlu0 %v147_v48 }
 0x101   :  { %v134_v32 = vpop.xlane.xlu0 %133 }
 0x102   :  { %v157_v33 = vmul.f32 %v4653_v31, %v134_v32 }
 0x104   :  { %v4657_v34 = vsub.f32 %v4631_v13, %v157_v33 }
 0x106   :  { %v169_v36 = vmul.f32 %v4657_v34, %v4657_v34 }
 0x108   :  { %v175_v38 = vsel %vm131_vm1, %v169_v36, 0.0 }
 0x109   :  { %176 = vadd.xlane.f32.xlu1 %v175_v38  ;;  %v137_v39 = vpop.xlane.xlu0 %136 }
 0x10a   :  { %v158_v40 = vmul.f32 %v4653_v31, %v137_v39 }
 0x10c   :  { %v4672_v43 = vsub.f32 %v4642_v18, %v158_v40 }
 0x10e   :  { %v170_v46 = vmul.f32 %v4672_v43, %v4672_v43 }
 0x110   :  { %v178_v49 = vsel %vm131_vm1, %v170_v46, 0.0 }
 0x111   :  { %v140_v50 = vpop.xlane.xlu1 %139  ;;  %179 = vadd.xlane.f32.xlu2 %v178_v49  ;;  %142 = vadd.xlane.f32.xlu1 %v141_v47 }
 0x112   :  { %v159_v51 = vmul.f32 %v4653_v31, %v140_v50 }
 0x114   :  { %v4685_v52 = vsub.f32 %v4649_v22, %v159_v51 }
 0x116   :  { %v171_v53 = vmul.f32 %v4685_v52, %v4685_v52 }
 0x118   :  { %v181_v55 = vsel %vm131_vm1, %v171_v53, 0.0 }
 0x119   :  { %182 = vadd.xlane.f32.xlu2 %v181_v55 }
 0x121   :  { %145 = vadd.xlane.f32.xlu2 %v144_v57 }
 0x17c   :  { %v177_v62 = vpop.xlane.xlu1 %176 }
 0x17d   :  { %v193_v63 = vmul.f32 %v177_v62, %v4653_v31  ;;  %v149_v62 = vpop.xlane.xlu0 %148 }
 0x17f   :  { %v199_v0 = vadd.f32 1e-12, %v193_v63  ;;  %v162_v63 = vmul.f32 %v4653_v31, %v149_v62 }
 0x181   :  { %4191 = vrsqrt.f32 %v199_v0  ;;  %vm211_vm4 = vweird.f32 %v199_v0 }
 0x184   :  { %v180_v1 = vpop.xlane.xlu2 %179  ;;  %v143_v53 = vpop.xlane.xlu1 %142 }
 0x185   :  { %v194_v2 = vmul.f32 %v180_v1, %v4653_v31  ;;  %v160_v54 = vmul.f32 %v4653_v31, %v143_v53  ;;  %v4763_v1 = vsub.f32 %v4674_v45, %v162_v63 }
 0x187   :  { %v4192_v3 = vpop.eup %4191  ;;  %v200_v4 = vadd.f32 1e-12, %v194_v2  ;;  %v4750_v55 = vsub.f32 %v4666_v41, %v160_v54 }
 0x188   :  { %v206_v5 = vmul.f32 %v4192_v3, %v199_v0  ;;  %vm212_vm3 = vweird.f32 %v4192_v3 }
 0x189   :  { %4193 = vrsqrt.f32 %v200_v4  ;;  %vm213_vm5 = vmor %vm211_vm4, %vm212_vm3  ;;  %vm221_vm7 = vweird.f32 %v200_v4  ;;  %v172_v58 = vmul.f32 %v4750_v55, %v4750_v55 }
 0x18a   :  { %v207_v6 = vmul.f32 %v4192_v3, %v206_v5 }
 0x18b   :  { %v184_v60 = vsel %vm131_vm1, %v172_v58, 0.0 }
 0x18c   :  { %v208_v7 = vmul.f32 0.5, %v207_v6  ;;  %v183_v8 = vpop.xlane.xlu2 %182  ;;  %v114_v6 = vlaneseq }
 0x18d   :  { %v195_v9 = vmul.f32 %v183_v8, %v4653_v31 }
 0x18e   :  { %v209_v10 = vsub.f32 1.5, %v208_v7  ;;  %v4775_v8 = vand.u32 127, %v114_v6 }
 0x18f   :  { %v4194_v12 = vpop.eup %4193  ;;  %v201_v14 = vadd.f32 1e-12, %v195_v9 }
 0x190   :  { %v210_v15 = vmul.f32 %v4192_v3, %v209_v10  ;;  %v216_v16 = vmul.f32 %v4194_v12, %v200_v4  ;;  %vm222_vm6 = vweird.f32 %v4194_v12  ;;  %vm119_vm12 = vcmp.lt.s32.totalorder %v4775_v8, 8 }
 0x191   :  { %4195 = vrsqrt.f32 %v201_v14  ;;  %vm223_vm8 = vmor %vm221_vm7, %vm222_vm6  ;;  %vm231_vm10 = vweird.f32 %v201_v14  ;;  %vm121_vm13 = vcmp.ge.s32.totalorder %v4775_v8, 8  ;;  %vm122_vm14 = vcmp.lt.s32.totalorder %v4775_v8, 16 }
 0x192   :  { %v217_v19 = vmul.f32 %v4194_v12, %v216_v16  ;;  %v214_v20 = vsel %vm213_vm5, %v4192_v3, %v210_v15  ;;  %v174_v3 = vmul.f32 %v4763_v1, %v4763_v1  ;;  %vm4805_vm15 = vmand %vm121_vm13, %vm122_vm14  ;;  %vm124_vm13 = vcmp.ge.s32.totalorder %v4775_v8, 16 }
 0x193   :  { %v265_v21 = vmul.f32 %v214_v20, %v4657_v34  ;;  %vm125_vm14 = vcmp.lt.s32.totalorder %v4775_v8, 24 }
 0x194   :  { %v218_v24 = vmul.f32 0.5, %v217_v19  ;;  %v146_v57 = vpop.xlane.xlu2 %145  ;;  %v190_v4 = vsel %vm131_vm1, %v174_v3, 0.0 }
 0x195   :  { %v272_v25 = vmul.f32 %v4715_v17, %v265_v21  ;;  %v161_v59 = vmul.f32 %v4653_v31, %v146_v57 }
 0x196   :  { %v219_v26 = vsub.f32 1.5, %v218_v24 }
 0x197   :  { %v4196_v27 = vpop.eup %4195  ;;  %v279_v28 = vadd.f32 %v4718_v23, %v272_v25  ;;  %v4757_v61 = vsub.f32 %v4693_v56, %v161_v59 }
 0x198   :  { %v220_v29 = vmul.f32 %v4194_v12, %v219_v26  ;;  %v226_v30 = vmul.f32 %v4196_v27, %v201_v14  ;;  %vm232_vm9 = vweird.f32 %v4196_v27 }
 0x199   :  { %3906 = vmatmul.msk.f32.vlgmr.msra.gmra.mxu1 %vm131_vm1, %v279_v28  ;;  %vm233_vm11 = vmor %vm231_vm10, %vm232_vm9  ;;  %v173_v0 = vmul.f32 %v4757_v61, %v4757_v61  ;;  %vm116_vm10 = vcmp.lt.s32.totalorder %v4775_v8, 17 }
 0x19a   :  { %v227_v32 = vmul.f32 %v4196_v27, %v226_v30  ;;  %v224_v33 = vsel %vm223_vm8, %v4194_v12, %v220_v29 }
 0x19b   :  { %v266_v34 = vmul.f32 %v224_v33, %v4672_v43  ;;  %v4731_v43 = vperm.slane %v130_v11, 4  ;;  %v187_v2 = vsel %vm131_vm1, %v173_v0, 0.0 }
 0x19c   :  { %v228_v35 = vmul.f32 0.5, %v227_v32 }
 0x19d   :  { %v273_v36 = vmul.f32 %v4715_v17, %v266_v34 }
 0x19e   :  { %v229_v37 = vsub.f32 1.5, %v228_v35 }
 0x19f   :  { %v280_v38 = vadd.f32 %v4718_v23, %v273_v36 }
 0x1a0   :  { %v230_v39 = vmul.f32 %v4196_v27, %v229_v37 }
 0x1a1   :  { %3907 = vmatmul.msk.f32.gmra.mxu1 %vm131_vm1, %v280_v38 }
 0x1a2   :  { %v234_v40 = vsel %vm233_vm11, %v4196_v27, %v230_v39  ;;  %vm487_vm11 = vcmask 195584  }
 0x1a3   :  { %v267_v42 = vmul.f32 %v234_v40, %v4685_v52 }
 0x1a5   :  { %v274_v44 = vmul.f32 %v4715_v17, %v267_v42 }
 0x1a7   :  { %v281_v46 = vadd.f32 %v4718_v23, %v274_v44 }
 0x1a9   :  { %3908 = vmatmul.msk.f32.gmra.mxu1 %vm131_vm1, %v281_v46 }
 0x216   :  { %v325_v47 = vpop.f32.mrf.mxu1 }
 0x217   :  { %v4734_v48 = vadd.f32 %v325_v47, %v4731_v43 }
 0x219   :  { %381 = vrot.lane.b32.xlu2 %v4734_v48, %s4518_s29  ;;  %v345_v10 = vsel %vm119_vm12, %v4734_v48, 0.0  ;;  %v556_v21 = vsel %vm4805_vm15, %v4734_v48, 0.0 }
 0x21e   :  { %v328_v49 = vpop.f32.mrf.mxu1 }
 0x21f   :  { %v4739_v50 = vadd.f32 %v328_v49, %v4731_v43 }
 0x221   :  { %383 = vrot.lane.b32.xlu1 %v4739_v50, %s4518_s29  ;;  %v346_v11 = vsel %vm119_vm12, %v4739_v50, 0.0  ;;  %v557_v32 = vsel %vm4805_vm15, %v4739_v50, 0.0 }
 0x226   :  { %v331_v51 = vpop.f32.mrf.mxu1 }
 0x227   :  { %v4744_v52 = vadd.f32 %v331_v51, %v4731_v43 }
 0x229   :  { %385 = vrot.lane.b32.xlu0 %v4744_v52, %s4518_s29  ;;  %v347_v15 = vsel %vm119_vm12, %v4744_v52, 0.0  ;;  %v558_v46 = vsel %vm4805_vm15, %v4744_v52, 0.0 }
 0x242   :  { %185 = vadd.xlane.f32.xlu2 %v184_v60 }
 0x24b   :  { %188 = vadd.xlane.f32.xlu1 %v187_v2 }
 0x253   :  { %191 = vadd.xlane.f32.xlu0 %v190_v4 }
 0x273   :  { %v4779_v9 = vpop.permute.xlu2 %381 }
 0x293   :  { %v4773_v7 = vpop.permute.xlu1 %383 }
 0x29b   :  { %v4769_v5 = vpop.permute.xlu0 %385 }
 0x29c   :  { %3912 = vmatpush.xpose.msk.msra.mxu2 %vm131_vm1, %v4769_v5 }
 0x2a0   :  { %3913 = vmatpush.xpose.msk.msra.mxu2 %vm131_vm1, %v4773_v7 }
 0x2a4   :  { %3914 = vmatpush.xpose.msk.msra.mxu2 %vm131_vm1, %v4779_v9 }
 0x2a7   :  { %3915 = vmatmul.msk.f32.vlgmr.msra.gmra.mxu2 %vm131_vm1, %v345_v10 }
 0x2a8   :  { %3924 = vmatpush.xpose.msk.msrb.mxu2 %vm131_vm1, %v4769_v5 }
 0x2ac   :  { %3925 = vmatpush.xpose.msk.msrb.mxu2 %vm131_vm1, %v4773_v7 }
 0x2af   :  { %3916 = vmatmul.msk.f32.gmra.mxu2 %vm131_vm1, %v346_v11 }
 0x2b0   :  { %3926 = vmatpush.xpose.msk.msrb.mxu2 %vm131_vm1, %v4779_v9 }
 0x2b5   :  { %v186_v12 = vpop.xlane.xlu2 %185 }
 0x2b6   :  { %v196_v14 = vmul.f32 %v186_v12, %v4653_v31 }
 0x2b7   :  { %3917 = vmatmul.msk.f32.gmra.mxu2 %vm131_vm1, %v347_v15 }
 0x2b8   :  { %v202_v16 = vadd.f32 1e-12, %v196_v14 }
 0x2ba   :  { %4197 = vrsqrt.f32 %v202_v16  ;;  %vm241_vm2 = vweird.f32 %v202_v16 }
 0x2be   :  { %v189_v20 = vpop.xlane.xlu1 %188 }
 0x2bf   :  { %v197_v24 = vmul.f32 %v189_v20, %v4653_v31  ;;  %3927 = vmatmul.msk.f32.vlgmr.msrb.gmra.mxu2 %vm131_vm1, %v556_v21 }
 0x2c0   :  { %v4198_v25 = vpop.eup %4197 }
 0x2c1   :  { %v236_v26 = vmul.f32 %v4198_v25, %v202_v16  ;;  %v203_v27 = vadd.f32 1e-12, %v197_v24  ;;  %vm242_vm0 = vweird.f32 %v4198_v25  ;;  %v4519_v16 = vmov -1e+30  }
 0x2c2   :  { %vm243_vm3 = vmor %vm241_vm2, %vm242_vm0  ;;  %v4842_v20 = vsel %vm116_vm10, 0.0, %v4519_v16  ;;  %vm127_vm2 = vcmp.ge.s32.totalorder %v4775_v8, 24 }
 0x2c3   :  { %v237_v28 = vmul.f32 %v4198_v25, %v236_v26  ;;  %4199 = vrsqrt.f32 %v203_v27  ;;  %vm251_vm5 = vweird.f32 %v203_v27  ;;  %vm4942_vm0 = vmand %vm124_vm13, %vm125_vm14 }
 0x2c5   :  { %v238_v29 = vmul.f32 0.5, %v237_v28 }
 0x2c6   :  { %v192_v30 = vpop.xlane.xlu0 %191 }
 0x2c7   :  { %v239_v33 = vsub.f32 1.5, %v238_v29  ;;  %v198_v34 = vmul.f32 %v192_v30, %v4653_v31  ;;  %3928 = vmatmul.msk.f32.gmra.mxu2 %vm131_vm1, %v557_v32 }
 0x2c9   :  { %v4200_v35 = vpop.eup %4199  ;;  %v240_v36 = vmul.f32 %v4198_v25, %v239_v33  ;;  %v204_v37 = vadd.f32 1e-12, %v198_v34 }
 0x2ca   :  { %v246_v38 = vmul.f32 %v4200_v35, %v203_v27  ;;  %vm252_vm4 = vweird.f32 %v4200_v35 }
 0x2cb   :  { %4201 = vrsqrt.f32 %v204_v37  ;;  %v244_v39 = vsel %vm243_vm3, %v4198_v25, %v240_v36  ;;  %vm253_vm6 = vmor %vm251_vm5, %vm252_vm4  ;;  %vm261_vm8 = vweird.f32 %v204_v37  ;;  %vm128_vm3 = vcmp.lt.s32.totalorder %v4775_v8, 32 }
 0x2cc   :  { %v247_v40 = vmul.f32 %v4200_v35, %v246_v38  ;;  %v268_v42 = vmul.f32 %v244_v39, %v4750_v55  ;;  %vm5014_vm4 = vmand %vm127_vm2, %vm128_vm3 }
 0x2ce   :  { %v248_v44 = vmul.f32 0.5, %v247_v40  ;;  %v275_v47 = vmul.f32 %v4715_v17, %v268_v42 }
 0x2cf   :  { %3929 = vmatmul.msk.f32.gmra.mxu2 %vm131_vm1, %v558_v46 }
 0x2d0   :  { %v249_v49 = vsub.f32 1.5, %v248_v44  ;;  %v282_v51 = vadd.f32 %v4718_v23, %v275_v47 }
 0x2d1   :  { %v4202_v53 = vpop.eup %4201 }
 0x2d2   :  { %v250_v54 = vmul.f32 %v4200_v35, %v249_v49  ;;  %v256_v57 = vmul.f32 %v4202_v53, %v204_v37  ;;  %3909 = vmatmul.msk.f32.gmra.mxu1 %vm131_vm1, %v282_v51  ;;  %vm262_vm7 = vweird.f32 %v4202_v53 }
 0x2d3   :  { %vm263_vm9 = vmor %vm261_vm8, %vm262_vm7 }
 0x2d4   :  { %v257_v55 = vmul.f32 %v4202_v53, %v256_v57  ;;  %v254_v58 = vsel %vm253_vm6, %v4200_v35, %v250_v54 }
 0x2d5   :  { %v269_v59 = vmul.f32 %v254_v58, %v4757_v61 }
 0x2d6   :  { %v258_v60 = vmul.f32 0.5, %v257_v55 }
 0x2d7   :  { %v276_v62 = vmul.f32 %v4715_v17, %v269_v59 }
 0x2d8   :  { %v259_v63 = vsub.f32 1.5, %v258_v60 }
 0x2d9   :  { %v283_v0 = vadd.f32 %v4718_v23, %v276_v62 }
 0x2da   :  { %v260_v2 = vmul.f32 %v4202_v53, %v259_v63 }
 0x2db   :  { %3910 = vmatmul.msk.f32.gmra.mxu1 %vm131_vm1, %v283_v0 }
 0x2dc   :  { %v264_v3 = vsel %vm263_vm9, %v4202_v53, %v260_v2 }
 0x2dd   :  { %v270_v4 = vmul.f32 %v264_v3, %v4763_v1 }
 0x2df   :  { %v277_v6 = vmul.f32 %v4715_v17, %v270_v4 }
 0x2e1   :  { %v284_v10 = vadd.f32 %v4718_v23, %v277_v6 }
 0x2e3   :  { %3911 = vmatmul.msk.f32.vlgmr.msra.gmra.mxu3 %vm131_vm1, %v284_v10 }
 0x32a   :  { %v4835_v61 = vpop.f32.mrf.mxu2 }
 0x332   :  { %v4837_v11 = vpop.f32.mrf.mxu2 }
 0x33a   :  { %v4839_v12 = vpop.f32.mrf.mxu2 }
 0x342   :  { %v594_v14 = vpop.f32.mrf.mxu2 }
 0x343   :  { %v638_v15 = vmul.f32 0.35355338, %v594_v14 }
 0x345   :  { %v644_v1 = vadd.f32 %v638_v15, %v4842_v20 }
 0x347   :  { %v650_v17 = vsel %vm487_vm11, %v644_v1, -inf }
 0x348   :  { %651 = vmax.xlane.f32.xlu0 %v650_v17 }
 0x34a   :  { %v597_v26 = vpop.f32.mrf.mxu2 }
 0x34b   :  { %v639_v33 = vmul.f32 0.35355338, %v597_v26 }
 0x34d   :  { %v645_v35 = vadd.f32 %v639_v33, %v4842_v20 }
 0x34f   :  { %v334_v23 = vpop.f32.mrf.mxu1  ;;  %v653_v36 = vsel %vm487_vm11, %v645_v35, -inf }
 0x350   :  { %v4847_v21 = vadd.f32 %v334_v23, %v4731_v43 }
 0x352   :  { %428 = vrot.lane.b32.xlu1 %v4847_v21, %s4518_s29  ;;  %v600_v29 = vpop.f32.mrf.mxu2  ;;  %v348_v47 = vsel %vm119_vm12, %v4847_v21, 0.0  ;;  %v559_v63 = vsel %vm4805_vm15, %v4847_v21, 0.0 }
 0x353   :  { %v640_v30 = vmul.f32 0.35355338, %v600_v29 }
 0x355   :  { %v646_v32 = vadd.f32 %v640_v30, %v4842_v20 }
 0x357   :  { %v656_v34 = vsel %vm487_vm11, %v646_v32, -inf }
 0x358   :  { %v337_v24 = vpop.f32.mrf.mxu1 }
 0x359   :  { %v4852_v25 = vadd.f32 %v337_v24, %v4731_v43 }
 0x35b   :  { %430 = vrot.lane.b32.xlu2 %v4852_v25, %s4518_s29  ;;  %v349_v49 = vsel %vm119_vm12, %v4852_v25, 0.0  ;;  %v560_v4 = vsel %vm4805_vm15, %v4852_v25, 0.0 }
 0x366   :  { %v340_v27 = vpop.f32.mrf.mxu3 }
 0x367   :  { %v4857_v28 = vadd.f32 %v340_v27, %v4731_v43 }
 0x369   :  { %432 = vrot.lane.b32.xlu0 %v4857_v28, %s4518_s29  ;;  %v350_v57 = vsel %vm119_vm12, %v4857_v28, 0.0  ;;  %v561_v10 = vsel %vm4805_vm15, %v4857_v28, 0.0 }
 0x37c   :  { %657 = vmax.xlane.f32.xlu1 %v656_v34 }
 0x384   :  { %654 = vmax.xlane.f32.xlu2 %v653_v36 }
 0x395   :  { %359 = vrot.lane.b32.xlu1 %v4739_v50, %s4520_s30 }
 0x39c   :  { %361 = vrot.lane.b32.xlu2 %v4744_v52, %s4520_s30 }
 0x39d   :  { %357 = vrot.lane.b32.xlu1 %v4734_v48, %s4520_s30 }
 0x3b5   :  { %v4876_v44 = vpop.permute.xlu2 %430 }
 0x3bb   :  { %v652_v43 = vpop.xlane.xlu0 %651 }
 0x3bc   :  { %v668_v37 = vsub.f32 %v644_v1, %v652_v43 }
 0x3be   :  { %v674_v38 = vmul.f32 1.442695, %v668_v37 }
 0x3c0   :  { %4203 = vpow2.f32 %v674_v38 }
 0x3c4   :  { %v4880_v46 = vpop.permute.xlu1 %428 }
 0x3c6   :  { %v4204_v39 = vpop.eup %4203 }
 0x3c7   :  { %v686_v40 = vsel %vm487_vm11, %v4204_v39, 0.0 }
 0x3c8   :  { %687 = vadd.xlane.f32.xlu0 %v686_v40  ;;  %v476_v40 = vmul.f32 0.35355338, %v4837_v11  ;;  %v477_v11 = vmul.f32 0.35355338, %v4839_v12 }
 0x3db   :  { %v4872_v42 = vpop.permute.xlu0 %432 }
 0x3dc   :  { %3918 = vmatpush.xpose.msk.msrb.mxu3 %vm131_vm1, %v4872_v42 }
 0x3e0   :  { %3919 = vmatpush.xpose.msk.msrb.mxu3 %vm131_vm1, %v4876_v44 }
 0x3e4   :  { %3920 = vmatpush.xpose.msk.msrb.mxu3 %vm131_vm1, %v4880_v46 }
 0x3e7   :  { %3921 = vmatmul.msk.f32.vlgmr.msrb.gmra.mxu3 %vm131_vm1, %v348_v47 }
 0x3e8   :  { %3930 = vmatpush.xpose.msk.msra.mxu3 %vm131_vm1, %v4872_v42 }
 0x3ec   :  { %3931 = vmatpush.xpose.msk.msra.mxu3 %vm131_vm1, %v4876_v44 }
 0x3ef   :  { %v658_v51 = vpop.xlane.xlu1 %657  ;;  %3922 = vmatmul.msk.f32.gmra.mxu3 %vm131_vm1, %v349_v49 }
 0x3f0   :  { %3932 = vmatpush.xpose.msk.msra.mxu3 %vm131_vm1, %v4880_v46  ;;  %v670_v53 = vsub.f32 %v646_v32, %v658_v51 }
 0x3f2   :  { %v678_v54 = vmul.f32 1.442695, %v670_v53 }
 0x3f4   :  { %4205 = vpow2.f32 %v678_v54  ;;  %v4989_v54 = vadd.f32 %v476_v40, %v4842_v20 }
 0x3f7   :  { %v655_v55 = vpop.xlane.xlu2 %654  ;;  %3923 = vmatmul.msk.f32.gmra.mxu3 %vm131_vm1, %v350_v57 }
 0x3f8   :  { %v669_v58 = vsub.f32 %v645_v35, %v655_v55  ;;  %v491_v55 = vsel %vm487_vm11, %v4989_v54, -inf }
 0x3fa   :  { %v4206_v59 = vpop.eup %4205  ;;  %v676_v60 = vmul.f32 1.442695, %v669_v58 }
 0x3fb   :  { %v692_v62 = vsel %vm487_vm11, %v4206_v59, 0.0 }
 0x3fc   :  { %4207 = vpow2.f32 %v676_v60  ;;  %693 = vadd.xlane.f32.xlu1 %v692_v62  ;;  %v5004_v60 = vadd.f32 %v477_v11, %v4842_v20  ;;  %v860_v62 = vsel %vm4942_vm0, %v4744_v52, 0.0 }
 0x3fe   :  { %v494_v12 = vsel %vm487_vm11, %v5004_v60, -inf }
 0x3ff   :  { %v4906_v0 = vpop.permute.xlu2 %361  ;;  %3933 = vmatmul.msk.f32.vlgmr.msra.gmra.mxu3 %vm131_vm1, %v559_v63 }
 0x400   :  { %3936 = vmatpush.msk.msrb.mxu1 %vm4805_vm15, %v4906_v0  ;;  %3948 = vmatpush.msk.msra.mxu2 %vm119_vm12, %v4906_v0 }
 0x402   :  { %v4208_v2 = vpop.eup %4207 }
 0x403   :  { %v689_v3 = vsel %vm487_vm11, %v4208_v2, 0.0 }
 0x404   :  { %690 = vadd.xlane.f32.xlu2 %v689_v3  ;;  %v1097_v3 = vsel %vm5014_vm4, %v4739_v50, 0.0 }
 0x407   :  { %v4919_v6 = vpop.permute.xlu1 %359  ;;  %3934 = vmatmul.msk.f32.gmra.mxu3 %vm131_vm1, %v560_v4  ;;  %v1098_v4 = vsel %vm5014_vm4, %v4744_v52, 0.0 }
 0x408   :  { %3937 = vmatpush.msk.msrb.mxu1 %vm4805_vm15, %v4919_v6  ;;  %3949 = vmatpush.msk.msra.mxu2 %vm119_vm12, %v4919_v6 }
 0x40f   :  { %v4933_v14 = vpop.permute.xlu1 %357  ;;  %3935 = vmatmul.msk.f32.gmra.mxu3 %vm131_vm1, %v561_v10 }
 0x410   :  { %3938 = vmatpush.msk.msrb.mxu1 %vm4805_vm15, %v4933_v14  ;;  %3950 = vmatpush.msk.msra.mxu2 %vm119_vm12, %v4933_v14 }
 0x412   :  { %3960 = vmatpush.xpose.msk.msra.mxu1 %vm131_vm1, %v4769_v5  ;;  %3972 = vmatpush.msk.msrb.mxu2 %vm4942_vm0, %v4906_v0 }
 0x414   :  { %3973 = vmatpush.msk.msrb.mxu2 %vm4942_vm0, %v4919_v6 }
 0x416   :  { %3961 = vmatpush.xpose.msk.msra.mxu1 %vm131_vm1, %v4773_v7  ;;  %3974 = vmatpush.msk.msrb.mxu2 %vm4942_vm0, %v4933_v14 }
 0x41a   :  { %3962 = vmatpush.xpose.msk.msra.mxu1 %vm131_vm1, %v4779_v9 }
 0x43b   :  { %v688_v16 = vpop.xlane.xlu0 %687 }
 0x43c   :  { %4209 = vrcp.f32 %v688_v16 }
 0x442   :  { %v4210_v1 = vpop.eup %4209 }
 0x443   :  { %v710_v17 = vmul.f32 %v4210_v1, %v4204_v39 }
 0x445   :  { %3939 = vmatmul.msk.f32.vlgmr.msrb.gmra.mxu1 %vm487_vm11, %v710_v17 }
 0x446   :  { %3984 = vmatpush.xpose.msk.msrb.mxu1 %vm131_vm1, %v4769_v5 }
 0x44a   :  { %3985 = vmatpush.xpose.msk.msrb.mxu1 %vm131_vm1, %v4773_v7 }
 0x44e   :  { %3986 = vmatpush.xpose.msk.msrb.mxu1 %vm131_vm1, %v4779_v9  ;;  %v475_v9 = vmul.f32 0.35355338, %v4835_v61  ;;  %v858_v61 = vsel %vm4942_vm0, %v4734_v48, 0.0 }
 0x450   :  { %v481_v38 = vadd.f32 %v475_v9, %v4842_v20 }
 0x452   :  { %v488_v47 = vsel %vm487_vm11, %v481_v38, -inf }
 0x46a   :  { %v4968_v23 = vpop.f32.mrf.mxu3 }
 0x46f   :  { %v694_v29 = vpop.xlane.xlu1 %693 }
 0x472   :  { %v4970_v24 = vpop.f32.mrf.mxu3 }
 0x477   :  { %v691_v26 = vpop.xlane.xlu2 %690 }
 0x478   :  { %4211 = vrcp.f32 %v691_v26 }
 0x479   :  { %4213 = vrcp.f32 %v694_v29 }
 0x47a   :  { %v4972_v27 = vpop.f32.mrf.mxu3 }
 0x47e   :  { %v4212_v30 = vpop.eup %4211 }
 0x47f   :  { %v711_v32 = vmul.f32 %v4212_v30, %v4208_v2  ;;  %v4214_v7 = vpop.eup %4213  ;;  %v1096_v2 = vsel %vm5014_vm4, %v4734_v48, 0.0 }
 0x480   :  { %v712_v36 = vmul.f32 %v4214_v7, %v4206_v59  ;;  %v859_v59 = vsel %vm4942_vm0, %v4739_v50, 0.0 }
 0x481   :  { %3940 = vmatmul.msk.f32.gmra.mxu1 %vm487_vm11, %v711_v32 }
 0x482   :  { %v629_v5 = vpop.f32.mrf.mxu3 }
 0x483   :  { %v641_v33 = vmul.f32 0.35355338, %v629_v5 }
 0x485   :  { %v647_v34 = vadd.f32 %v641_v33, %v4842_v20 }
 0x487   :  { %v659_v35 = vsel %vm487_vm11, %v647_v34, -inf }
 0x488   :  { %660 = vmax.xlane.f32.xlu0 %v659_v35 }
 0x489   :  { %3941 = vmatmul.msk.f32.gmra.mxu1 %vm487_vm11, %v712_v36 }
 0x48a   :  { %v632_v43 = vpop.f32.mrf.mxu3 }
 0x48b   :  { %v642_v37 = vmul.f32 0.35355338, %v632_v43 }
 0x48d   :  { %v648_v39 = vadd.f32 %v642_v37, %v4842_v20 }
 0x48f   :  { %v662_v49 = vsel %vm487_vm11, %v648_v39, -inf }
 0x490   :  { %489 = vmax.xlane.f32.xlu0 %v488_v47  ;;  %663 = vmax.xlane.f32.xlu2 %v662_v49 }
 0x491   :  { %3963 = vmatmul.msk.f32.vlgmr.msra.gmra.mxu1 %vm131_vm1, %v858_v61 }
 0x492   :  { %v635_v51 = vpop.f32.mrf.mxu3 }
 0x493   :  { %v643_v53 = vmul.f32 0.35355338, %v635_v51 }
 0x495   :  { %v4992_v57 = vadd.f32 %v643_v53, %v4842_v20 }
 0x497   :  { %v665_v58 = vsel %vm487_vm11, %v4992_v57, -inf }
 0x498   :  { %492 = vmax.xlane.f32.xlu0 %v491_v55  ;;  %666 = vmax.xlane.f32.xlu2 %v665_v58 }
 0x499   :  { %3964 = vmatmul.msk.f32.gmra.mxu1 %vm131_vm1, %v859_v59 }
 0x4a0   :  { %495 = vmax.xlane.f32.xlu0 %v494_v12 }
 0x4a1   :  { %3965 = vmatmul.msk.f32.gmra.mxu1 %vm131_vm1, %v860_v62 }
 0x4a9   :  { %3987 = vmatmul.msk.f32.vlgmr.msrb.gmra.mxu1 %vm131_vm1, %v1096_v2 }
 0x4b1   :  { %3988 = vmatmul.msk.f32.gmra.mxu1 %vm131_vm1, %v1097_v3 }
 0x4b9   :  { %3989 = vmatmul.msk.f32.gmra.mxu1 %vm131_vm1, %v1098_v4 }
 0x4c2   :  { %v5030_v10 = vpop.f32.mrf.mxu1 }
 0x4fb   :  { %v661_v16 = vpop.xlane.xlu0 %660 }
 0x4fc   :  { %v671_v1 = vsub.f32 %v647_v34, %v661_v16 }
 0x4fe   :  { %v680_v17 = vmul.f32 1.442695, %v671_v1  ;;  %v5032_v48 = vpop.f32.mrf.mxu1 }
 0x500   :  { %4215 = vpow2.f32 %v680_v17 }
 0x503   :  { %v490_v26 = vpop.xlane.xlu0 %489  ;;  %v664_v7 = vpop.xlane.xlu2 %663 }
 0x504   :  { %v506_v29 = vsub.f32 %v481_v38, %v490_v26  ;;  %v672_v36 = vsub.f32 %v648_v39, %v664_v7 }
 0x506   :  { %v5034_v30 = vpop.eup %4215  ;;  %v512_v50 = vmul.f32 1.442695, %v506_v29  ;;  %v5036_v32 = vpop.f32.mrf.mxu1  ;;  %v682_v37 = vmul.f32 1.442695, %v672_v36 }
 0x507   :  { %v695_v52 = vsel %vm487_vm11, %v5034_v30, 0.0 }
 0x508   :  { %696 = vadd.xlane.f32.xlu1 %v695_v52  ;;  %4217 = vpow2.f32 %v512_v50  ;;  %v480_v50 = vmul.f32 0.35355338, %v4972_v27 }
 0x509   :  { %4219 = vpow2.f32 %v682_v37 }
 0x50a   :  { %v5074_v52 = vadd.f32 %v480_v50, %v4842_v20 }
 0x50b   :  { %v667_v58 = vpop.xlane.xlu2 %666  ;;  %v493_v12 = vpop.xlane.xlu0 %492 }
 0x50c   :  { %v673_v59 = vsub.f32 %v4992_v57, %v667_v58  ;;  %v507_v2 = vsub.f32 %v4989_v54, %v493_v12 }
 0x50e   :  { %v896_v5 = vpop.f32.mrf.mxu1  ;;  %v4218_v33 = vpop.eup %4217  ;;  %v684_v62 = vmul.f32 1.442695, %v673_v59  ;;  %v514_v1 = vmul.f32 1.442695, %v507_v2 }
 0x50f   :  { %v940_v34 = vmul.f32 0.35355338, %v896_v5  ;;  %v524_v9 = vsel %vm487_vm11, %v4218_v33, 0.0  ;;  %v5045_v53 = vpop.eup %4219  ;;  %v503_v5 = vsel %vm487_vm11, %v5074_v52, -inf }
 0x510   :  { %525 = vadd.xlane.f32.xlu2 %v524_v9  ;;  %v698_v55 = vsel %vm487_vm11, %v5045_v53, 0.0  ;;  %4221 = vpow2.f32 %v684_v62  ;;  %v479_v62 = vmul.f32 0.35355338, %v4970_v24 }
 0x511   :  { %v946_v35 = vadd.f32 %v940_v34, %v4842_v20  ;;  %4223 = vpow2.f32 %v514_v1 }
 0x513   :  { %v952_v43 = vsel %vm487_vm11, %v946_v35, -inf  ;;  %v496_v3 = vpop.xlane.xlu0 %495 }
 0x514   :  { %953 = vmax.xlane.f32.xlu1 %v952_v43  ;;  %v508_v16 = vsub.f32 %v5004_v60, %v496_v3 }
 0x516   :  { %v899_v38 = vpop.f32.mrf.mxu1  ;;  %v5059_v4 = vpop.eup %4221  ;;  %v516_v26 = vmul.f32 1.442695, %v508_v16 }
 0x517   :  { %v941_v40 = vmul.f32 0.35355338, %v899_v38  ;;  %v701_v17 = vsel %vm487_vm11, %v5059_v4, 0.0  ;;  %v5064_v29 = vpop.eup %4223 }
 0x518   :  { %4225 = vpow2.f32 %v516_v26  ;;  %v527_v54 = vsel %vm487_vm11, %v5064_v29, 0.0 }
 0x519   :  { %v947_v47 = vadd.f32 %v941_v40, %v4842_v20 }
 0x51b   :  { %v955_v49 = vsel %vm487_vm11, %v947_v47, -inf }
 0x51c   :  { %956 = vmax.xlane.f32.xlu2 %v955_v49 }
 0x51e   :  { %v902_v61 = vpop.f32.mrf.mxu1  ;;  %v5066_v57 = vpop.eup %4225 }
 0x51f   :  { %v942_v51 = vmul.f32 0.35355338, %v902_v61  ;;  %v530_v60 = vsel %vm487_vm11, %v5066_v57, 0.0 }
 0x521   :  { %v948_v11 = vadd.f32 %v942_v51, %v4842_v20 }
 0x523   :  { %v958_v39 = vsel %vm487_vm11, %v948_v11, -inf }
 0x524   :  { %959 = vmax.xlane.f32.xlu0 %v958_v39  ;;  %699 = vadd.xlane.f32.xlu2 %v698_v55 }
 0x526   :  { %v1134_v16 = vpop.f32.mrf.mxu1 }
 0x527   :  { %v1178_v26 = vmul.f32 0.35355338, %v1134_v16 }
 0x52d   :  { %365 = vrot.lane.b32.xlu1 %v4852_v25, %s4520_s30 }
 0x538   :  { %367 = vrot.lane.b32.xlu0 %v4857_v28, %s4520_s30 }
 0x53c   :  { %363 = vrot.lane.b32.xlu2 %v4847_v21, %s4520_s30 }
 0x557   :  { %702 = vadd.xlane.f32.xlu1 %v701_v17 }
 0x562   :  { %528 = vadd.xlane.f32.xlu0 %v527_v54 }
 0x565   :  { %531 = vadd.xlane.f32.xlu2 %v530_v60 }
 0x56d   :  { %504 = vmax.xlane.f32.xlu2 %v503_v5  ;;  %v5135_v5 = vadd.f32 %v1178_v26, %v4842_v20 }
 0x57b   :  { %v697_v7 = vpop.xlane.xlu1 %696 }
 0x583   :  { %v526_v34 = vpop.xlane.xlu2 %525 }
 0x584   :  { %4227 = vrcp.f32 %v526_v34 }
 0x587   :  { %v954_v9 = vpop.xlane.xlu1 %953 }
 0x588   :  { %v970_v36 = vsub.f32 %v946_v35, %v954_v9 }
 0x58a   :  { %v976_v43 = vmul.f32 1.442695, %v970_v36  ;;  %v4228_v37 = vpop.eup %4227 }
 0x58b   :  { %v548_v38 = vmul.f32 %v4228_v37, %v4218_v33 }
 0x58c   :  { %4229 = vpow2.f32 %v976_v43 }
 0x58d   :  { %3951 = vmatmul.msk.f32.vlgmr.msra.gmra.mxu2 %vm487_vm11, %v548_v38 }
 0x58e   :  { %4176 = vmatpush.xpose.msk.msra.mxu2 %vm131_vm1, %v4872_v42 }
 0x58f   :  { %v957_v27 = vpop.xlane.xlu2 %956 }
 0x590   :  { %v971_v40 = vsub.f32 %v947_v47, %v957_v27  ;;  %v478_v47 = vmul.f32 0.35355338, %v4968_v23  ;;  %v5105_v23 = vadd.f32 %v479_v62, %v4842_v20 }
 0x592   :  { %v5081_v49 = vpop.eup %4229  ;;  %v978_v61 = vmul.f32 1.442695, %v971_v40  ;;  %4177 = vmatpush.xpose.msk.msra.mxu2 %vm131_vm1, %v4876_v44  ;;  %v5095_v59 = vadd.f32 %v478_v47, %v4842_v20  ;;  %v500_v24 = vsel %vm487_vm11, %v5105_v23, -inf  ;;  %v863_v40 = vsel %vm4942_vm0, %v4857_v28, 0.0 }
 0x593   :  { %v988_v35 = vsel %vm487_vm11, %v5081_v49, 0.0 }
 0x594   :  { %4231 = vpow2.f32 %v978_v61  ;;  %989 = vadd.xlane.f32.xlu0 %v988_v35 }
 0x596   :  { %4178 = vmatpush.xpose.msk.msra.mxu2 %vm131_vm1, %v4880_v46 }
 0x597   :  { %v960_v33 = vpop.xlane.xlu0 %959  ;;  %v700_v3 = vpop.xlane.xlu2 %699 }
 0x598   :  { %v972_v51 = vsub.f32 %v948_v11, %v960_v33  ;;  %v497_v11 = vsel %vm487_vm11, %v5095_v59, -inf }
 0x59a   :  { %v5089_v39 = vpop.eup %4231  ;;  %v980_v55 = vmul.f32 1.442695, %v972_v51 }
 0x59b   :  { %v991_v58 = vsel %vm487_vm11, %v5089_v39, 0.0 }
 0x59c   :  { %4233 = vpow2.f32 %v980_v55  ;;  %992 = vadd.xlane.f32.xlu1 %v991_v58 }
 0x59d   :  { %4235 = vrcp.f32 %v697_v7  ;;  %v1190_v7 = vsel %vm487_vm11, %v5135_v5, -inf }
 0x59e   :  { %4237 = vrcp.f32 %v700_v3 }
 0x59f   :  { %v5117_v54 = vpop.permute.xlu1 %365  ;;  %v5125_v50 = vpop.permute.xlu2 %363 }
 0x5a2   :  { %v5097_v12 = vpop.eup %4233 }
 0x5a3   :  { %v994_v2 = vsel %vm487_vm11, %v5097_v12, 0.0  ;;  %v4236_v17 = vpop.eup %4235 }
 0x5a4   :  { %498 = vmax.xlane.f32.xlu1 %v497_v11  ;;  %995 = vadd.xlane.f32.xlu0 %v994_v2  ;;  %v713_v60 = vmul.f32 %v4236_v17, %v5034_v30  ;;  %v4238_v30 = vpop.eup %4237 }
 0x5a5   :  { %v714_v34 = vmul.f32 %v4238_v30, %v5045_v53 }
 0x5aa   :  { %v5107_v1 = vpop.permute.xlu0 %367 }
 0x5ab   :  { %3942 = vmatpush.msk.msrb.mxu0 %vm4805_vm15, %v5107_v1  ;;  %3954 = vmatpush.msk.msrb.mxu3 %vm119_vm12, %v5107_v1 }
 0x5ac   :  { %501 = vmax.xlane.f32.xlu0 %v500_v24 }
 0x5ad   :  { %3943 = vmatpush.msk.msrb.mxu0 %vm4805_vm15, %v5117_v54  ;;  %3955 = vmatpush.msk.msrb.mxu3 %vm119_vm12, %v5117_v54 }
 0x5af   :  { %3944 = vmatpush.msk.msrb.mxu0 %vm4805_vm15, %v5125_v50  ;;  %3956 = vmatpush.msk.msrb.mxu3 %vm119_vm12, %v5125_v50 }
 0x5b0   :  { %3945 = vmatmul.msk.f32.vlgmr.msrb.gmra.mxu0 %vm487_vm11, %v713_v60 }
 0x5b1   :  { %3978 = vmatpush.msk.msra.mxu3 %vm4942_vm0, %v5107_v1  ;;  %3966 = vmatpush.xpose.msk.msra.mxu0 %vm131_vm1, %v4872_v42 }
 0x5b3   :  { %3979 = vmatpush.msk.msra.mxu3 %vm4942_vm0, %v5117_v54 }
 0x5b4   :  { %1191 = vmax.xlane.f32.xlu0 %v1190_v7 }
 0x5b5   :  { %3980 = vmatpush.msk.msra.mxu3 %vm4942_vm0, %v5125_v50  ;;  %3967 = vmatpush.xpose.msk.msra.mxu0 %vm131_vm1, %v4876_v44 }
 0x5b8   :  { %3946 = vmatmul.msk.f32.gmra.mxu0 %vm487_vm11, %v714_v34 }
 0x5b9   :  { %3968 = vmatpush.xpose.msk.msra.mxu0 %vm131_vm1, %v4880_v46 }
 0x5bd   :  { %3990 = vmatpush.xpose.msk.msrb.mxu0 %vm131_vm1, %v4872_v42  ;;  %v861_v42 = vsel %vm4942_vm0, %v4847_v21, 0.0 }
 0x5c1   :  { %3991 = vmatpush.xpose.msk.msrb.mxu0 %vm131_vm1, %v4876_v44 }
 0x5c5   :  { %3992 = vmatpush.xpose.msk.msrb.mxu0 %vm131_vm1, %v4880_v46 }
 0x5ca   :  { %v703_v9 = vpop.xlane.xlu1 %702 }
 0x5cb   :  { %4239 = vrcp.f32 %v703_v9 }
 0x5d1   :  { %v4240_v36 = vpop.eup %4239 }
 0x5d2   :  { %v715_v43 = vmul.f32 %v4240_v36, %v5059_v4  ;;  %v862_v4 = vsel %vm4942_vm0, %v4852_v25, 0.0 }
 0x5d4   :  { %3947 = vmatmul.msk.f32.gmra.mxu0 %vm487_vm11, %v715_v43 }
 0x5d5   :  { %v529_v53 = vpop.xlane.xlu0 %528 }
 0x5d6   :  { %4241 = vrcp.f32 %v529_v53 }
 0x5d8   :  { %v532_v37 = vpop.xlane.xlu2 %531 }
 0x5d9   :  { %4243 = vrcp.f32 %v532_v37 }
 0x5dc   :  { %v4242_v38 = vpop.eup %4241  ;;  %3969 = vmatmul.msk.f32.vlgmr.msra.gmra.mxu0 %vm131_vm1, %v861_v42 }
 0x5dd   :  { %v549_v44 = vmul.f32 %v4242_v38, %v5064_v29  ;;  %v1099_v29 = vsel %vm5014_vm4, %v4847_v21, 0.0 }
 0x5df   :  { %3952 = vmatmul.msk.f32.gmra.mxu2 %vm487_vm11, %v549_v44  ;;  %v4244_v46 = vpop.eup %4243 }
 0x5e0   :  { %v550_v27 = vmul.f32 %v4244_v46, %v5066_v57 }
 0x5e4   :  { %3970 = vmatmul.msk.f32.gmra.mxu0 %vm131_vm1, %v862_v4 }
 0x5e7   :  { %3953 = vmatmul.msk.f32.gmra.mxu2 %vm487_vm11, %v550_v27 }
 0x5ec   :  { %3971 = vmatmul.msk.f32.gmra.mxu0 %vm131_vm1, %v863_v40 }
 0x5f4   :  { %3993 = vmatmul.msk.f32.vlgmr.msrb.gmra.mxu0 %vm131_vm1, %v1099_v29 }
 0x607   :  { %v990_v61 = vpop.xlane.xlu0 %989 }
 0x608   :  { %4245 = vrcp.f32 %v990_v61 }
 0x60e   :  { %v4246_v35 = vpop.eup %4245 }
 0x60f   :  { %v1012_v33 = vmul.f32 %v4246_v35, %v5081_v49  ;;  %v993_v57 = vpop.xlane.xlu1 %992 }
 0x610   :  { %4247 = vrcp.f32 %v993_v57 }
 0x611   :  { %3975 = vmatmul.msk.f32.vlgmr.msrb.gmra.mxu2 %vm487_vm11, %v1012_v33  ;;  %v5250_v33 = vpop.f32.mrf.mxu2 }
 0x612   :  { %3996 = vmatpush.msk.msrb.mxu2 %vm5014_vm4, %v4906_v0  ;;  %v1100_v0 = vsel %vm5014_vm4, %v4852_v25, 0.0 }
 0x614   :  { %3997 = vmatpush.msk.msrb.mxu2 %vm5014_vm4, %v4919_v6  ;;  %v1101_v6 = vsel %vm5014_vm4, %v4857_v28, 0.0 }
 0x616   :  { %v4248_v21 = vpop.eup %4247  ;;  %3998 = vmatpush.msk.msrb.mxu2 %vm5014_vm4, %v4933_v14 }
 0x617   :  { %v996_v51 = vpop.xlane.xlu0 %995  ;;  %v1013_v49 = vmul.f32 %v4248_v21, %v5089_v39  ;;  %v499_v16 = vpop.xlane.xlu1 %498 }
 0x618   :  { %4249 = vrcp.f32 %v996_v51  ;;  %v509_v30 = vsub.f32 %v5095_v59, %v499_v16 }
 0x619   :  { %3976 = vmatmul.msk.f32.gmra.mxu2 %vm487_vm11, %v1013_v49 }
 0x61a   :  { %v518_v36 = vmul.f32 1.442695, %v509_v30 }
 0x61c   :  { %4251 = vpow2.f32 %v518_v36 }
 0x61e   :  { %v4250_v55 = vpop.eup %4249 }
 0x61f   :  { %v1014_v47 = vmul.f32 %v4250_v55, %v5097_v12  ;;  %v1137_v12 = vpop.f32.mrf.mxu1  ;;  %v502_v53 = vpop.xlane.xlu0 %501 }
 0x620   :  { %v1179_v25 = vmul.f32 0.35355338, %v1137_v12  ;;  %v510_v59 = vsub.f32 %v5105_v23, %v502_v53 }
 0x621   :  { %3977 = vmatmul.msk.f32.gmra.mxu2 %vm487_vm11, %v1014_v47 }
 0x622   :  { %v5220_v26 = vadd.f32 %v1179_v25, %v4842_v20  ;;  %v520_v4 = vmul.f32 1.442695, %v510_v59  ;;  %v5241_v29 = vpop.eup %4251 }
 0x623   :  { %v533_v35 = vsel %vm487_vm11, %v5241_v29, 0.0 }
 0x624   :  { %v1193_v34 = vsel %vm487_vm11, %v5220_v26, -inf  ;;  %4253 = vpow2.f32 %v520_v4 }
 0x627   :  { %v1140_v24 = vpop.f32.mrf.mxu1  ;;  %v1192_v25 = vpop.xlane.xlu0 %1191 }
 0x628   :  { %v1180_v7 = vmul.f32 0.35355338, %v1140_v24  ;;  %v1208_v16 = vsub.f32 %v5135_v5, %v1192_v25 }
 0x629   :  { %3994 = vmatmul.msk.f32.vlgmr.msra.gmra.mxu2 %vm131_vm1, %v1100_v0 }
 0x62a   :  { %v5231_v42 = vadd.f32 %v1180_v7, %v4842_v20  ;;  %v5252_v57 = vpop.eup %4253  ;;  %v1214_v24 = vmul.f32 1.442695, %v1208_v16 }
 0x62b   :  { %v536_v21 = vsel %vm487_vm11, %v5252_v57, 0.0 }
 0x62c   :  { %v1196_v44 = vsel %vm487_vm11, %v5231_v42, -inf }
 0x62d   :  { %v5208_v14 = vpop.f32.mrf.mxu0 }
 0x631   :  { %3995 = vmatmul.msk.f32.gmra.mxu2 %vm131_vm1, %v1101_v6  ;;  %v505_v6 = vpop.xlane.xlu2 %504 }
 0x632   :  { %v511_v12 = vsub.f32 %v5074_v52, %v505_v6 }
 0x635   :  { %v5210_v39 = vpop.f32.mrf.mxu0 }
 0x651   :  { %v5212_v58 = vpop.f32.mrf.mxu0 }
 0x659   :  { %v931_v62 = vpop.f32.mrf.mxu0 }
 0x65a   :  { %v943_v11 = vmul.f32 0.35355338, %v931_v62  ;;  %v522_v62 = vmul.f32 1.442695, %v511_v12 }
 0x65c   :  { %v5215_v2 = vadd.f32 %v943_v11, %v4842_v20  ;;  %4255 = vpow2.f32 %v522_v62 }
 0x65d   :  { %4257 = vpow2.f32 %v1214_v24 }
 0x65e   :  { %v961_v3 = vsel %vm487_vm11, %v5215_v2, -inf }
 0x65f   :  { %962 = vmax.xlane.f32.xlu1 %v961_v3 }
 0x661   :  { %v934_v28 = vpop.f32.mrf.mxu0 }
 0x662   :  { %v944_v17 = vmul.f32 0.35355338, %v934_v28  ;;  %v5256_v51 = vpop.f32.mrf.mxu2 }
 0x664   :  { %v5223_v60 = vadd.f32 %v944_v17, %v4842_v20 }
 0x666   :  { %v964_v9 = vsel %vm487_vm11, %v5223_v60, -inf }
 0x667   :  { %1194 = vmax.xlane.f32.xlu1 %v1193_v34  ;;  %965 = vmax.xlane.f32.xlu2 %v964_v9  ;;  %v5273_v34 = vpop.eup %4255 }
 0x668   :  { %v539_v9 = vsel %vm487_vm11, %v5273_v34, 0.0  ;;  %v5282_v5 = vpop.eup %4257 }
 0x669   :  { %v937_v43 = vpop.f32.mrf.mxu0 }
 0x66a   :  { %v945_v37 = vmul.f32 0.35355338, %v937_v43  ;;  %v5258_v49 = vpop.f32.mrf.mxu2  ;;  %v1226_v43 = vsel %vm487_vm11, %v5282_v5, 0.0 }
 0x66c   :  { %v5234_v38 = vadd.f32 %v945_v37, %v4842_v20 }
 0x66e   :  { %v967_v46 = vsel %vm487_vm11, %v5234_v38, -inf }
 0x66f   :  { %1197 = vmax.xlane.f32.xlu2 %v1196_v44  ;;  %968 = vmax.xlane.f32.xlu0 %v967_v46 }
 0x671   :  { %v1169_v27 = vpop.f32.mrf.mxu0 }
 0x672   :  { %v1181_v40 = vmul.f32 0.35355338, %v1169_v27 }
 0x674   :  { %v5244_v61 = vadd.f32 %v1181_v40, %v4842_v20 }
 0x676   :  { %v1199_v23 = vsel %vm487_vm11, %v5244_v61, -inf }
 0x677   :  { %1200 = vmax.xlane.f32.xlu1 %v1199_v23  ;;  %534 = vadd.xlane.f32.xlu0 %v533_v35 }
 0x67f   :  { %537 = vadd.xlane.f32.xlu1 %v536_v21 }
 0x694   :  { %v5260_v55 = vpop.f32.mrf.mxu2 }
 0x69c   :  { %v5262_v47 = vpop.f32.mrf.mxu2 }
 0x6a4   :  { %v5264_v0 = vpop.f32.mrf.mxu2 }
 0x6ac   :  { %v1172_v11 = vpop.f32.mrf.mxu2 }
 0x6ad   :  { %v1182_v3 = vmul.f32 0.35355338, %v1172_v11 }
 0x6af   :  { %v5268_v28 = vadd.f32 %v1182_v3, %v4842_v20 }
 0x6b1   :  { %v1202_v17 = vsel %vm487_vm11, %v5268_v28, -inf }
 0x6b2   :  { %1203 = vmax.xlane.f32.xlu2 %v1202_v17 }
 0x6b4   :  { %v1175_v30 = vpop.f32.mrf.mxu2 }
 0x6b5   :  { %v1183_v7 = vmul.f32 0.35355338, %v1175_v30 }
 0x6b7   :  { %v5276_v52 = vadd.f32 %v1183_v7, %v4842_v20 }
 0x6b9   :  { %v1205_v36 = vsel %vm487_vm11, %v5276_v52, -inf }
 0x6ba   :  { %540 = vadd.xlane.f32.xlu2 %v539_v9  ;;  %1206 = vmax.xlane.f32.xlu0 %v1205_v36 }
 0x6c2   :  { %1227 = vadd.xlane.f32.xlu0 %v1226_v43 }
 0x6d2   :  { %v963_v53 = vpop.xlane.xlu1 %962 }
 0x6d3   :  { %v973_v37 = vsub.f32 %v5215_v2, %v963_v53 }
 0x6d5   :  { %v982_v59 = vmul.f32 1.442695, %v973_v37 }
 0x6d7   :  { %4259 = vpow2.f32 %v982_v59 }
 0x6da   :  { %v1195_v44 = vpop.xlane.xlu1 %1194  ;;  %v966_v46 = vpop.xlane.xlu2 %965 }
 0x6db   :  { %v1209_v4 = vsub.f32 %v5220_v26, %v1195_v44  ;;  %v974_v27 = vsub.f32 %v5223_v60, %v966_v46 }
 0x6dd   :  { %v5289_v40 = vpop.eup %4259  ;;  %v1216_v23 = vmul.f32 1.442695, %v1209_v4  ;;  %v984_v35 = vmul.f32 1.442695, %v974_v27 }
 0x6de   :  { %v997_v21 = vsel %vm487_vm11, %v5289_v40, 0.0 }
 0x6df   :  { %4261 = vpow2.f32 %v1216_v23  ;;  %998 = vadd.xlane.f32.xlu1 %v997_v21 }
 0x6e0   :  { %4263 = vpow2.f32 %v984_v35 }
 0x6e2   :  { %v1198_v6 = vpop.xlane.xlu2 %1197  ;;  %v969_v2 = vpop.xlane.xlu0 %968 }
 0x6e3   :  { %v1210_v12 = vsub.f32 %v5231_v42, %v1198_v6  ;;  %v975_v62 = vsub.f32 %v5234_v38, %v969_v2 }
 0x6e5   :  { %v5295_v11 = vpop.eup %4261  ;;  %v1218_v26 = vmul.f32 1.442695, %v1210_v12  ;;  %v986_v60 = vmul.f32 1.442695, %v975_v62 }
 0x6e6   :  { %v5297_v25 = vpop.eup %4263  ;;  %v1229_v3 = vsel %vm487_vm11, %v5295_v11, 0.0 }
 0x6e7   :  { %4265 = vpow2.f32 %v1218_v26  ;;  %v1000_v16 = vsel %vm487_vm11, %v5297_v25, 0.0  ;;  %1230 = vadd.xlane.f32.xlu1 %v1229_v3 }
 0x6e8   :  { %4267 = vpow2.f32 %v986_v60  ;;  %1001 = vadd.xlane.f32.xlu2 %v1000_v16 }
 0x6ea   :  { %v1201_v17 = vpop.xlane.xlu1 %1200  ;;  %v535_v42 = vpop.xlane.xlu0 %534 }
 0x6eb   :  { %v1211_v38 = vsub.f32 %v5244_v61, %v1201_v17  ;;  %4269 = vrcp.f32 %v535_v42 }
 0x6ed   :  { %v5304_v24 = vpop.eup %4265  ;;  %v1220_v30 = vmul.f32 1.442695, %v1211_v38 }
 0x6ee   :  { %v5306_v7 = vpop.eup %4267  ;;  %v1232_v9 = vsel %vm487_vm11, %v5304_v24, 0.0 }
 0x6ef   :  { %4271 = vpow2.f32 %v1220_v30  ;;  %v1003_v36 = vsel %vm487_vm11, %v5306_v7, 0.0 }
 0x6f0   :  { %1233 = vadd.xlane.f32.xlu2 %v1232_v9  ;;  %1004 = vadd.xlane.f32.xlu0 %v1003_v36 }
 0x6f1   :  { %v4270_v43 = vpop.eup %4269 }
 0x6f2   :  { %v551_v53 = vmul.f32 %v4270_v43, %v5241_v29  ;;  %v538_v37 = vpop.xlane.xlu1 %537 }
 0x6f3   :  { %4273 = vrcp.f32 %v538_v37 }
 0x6f4   :  { %3957 = vmatmul.msk.f32.vlgmr.msrb.gmra.mxu3 %vm487_vm11, %v551_v53 }
 0x6f5   :  { %v4272_v61 = vpop.eup %4271  ;;  %4002 = vmatpush.msk.msrb.mxu3 %vm5014_vm4, %v5107_v1 }
 0x6f6   :  { %v1235_v59 = vsel %vm487_vm11, %v4272_v61, 0.0 }
 0x6f7   :  { %4003 = vmatpush.msk.msrb.mxu3 %vm5014_vm4, %v5117_v54  ;;  %1236 = vadd.xlane.f32.xlu1 %v1235_v59  ;;  %v1335_v59 = vld [vmem:[%s6980_s5 + $0x18] sm:$0xff] }
 0x6f8   :  { %1367 = vmatpush.msra.mxu1 %v1335_v59 }
 0x6f9   :  { %v4274_v44 = vpop.eup %4273  ;;  %4004 = vmatpush.msk.msrb.mxu3 %vm5014_vm4, %v5125_v50 }
 0x6fa   :  { %v552_v29 = vmul.f32 %v4274_v44, %v5252_v57  ;;  %v1334_v44 = vld [vmem:[%s6980_s5 + $0x10] sm:$0xff] }
 0x6fb   :  { %1368 = vmatpush.msra.mxu1 %v1334_v44 }
 0x6fc   :  { %3958 = vmatmul.msk.f32.gmra.mxu3 %vm487_vm11, %v552_v29 }
 0x725   :  { %v1204_v46 = vpop.xlane.xlu2 %1203 }
 0x726   :  { %v1212_v4 = vsub.f32 %v5268_v28, %v1204_v46 }
 0x728   :  { %v1222_v1 = vmul.f32 1.442695, %v1212_v4 }
 0x72a   :  { %4275 = vpow2.f32 %v1222_v1 }
 0x72d   :  { %v541_v27 = vpop.xlane.xlu2 %540  ;;  %v1207_v23 = vpop.xlane.xlu0 %1206 }
 0x72e   :  { %4277 = vrcp.f32 %v541_v27  ;;  %v1213_v54 = vsub.f32 %v5276_v52, %v1207_v23  ;;  %v813_v23 = vadd.f32 %v5250_v33, %v5030_v10  ;;  %v819_v10 = vadd.f32 %v5258_v49, %v5036_v32 }
 0x730   :  { %v4276_v35 = vpop.eup %4275  ;;  %v1224_v21 = vmul.f32 1.442695, %v1213_v54  ;;  %v1088_v54 = vadd.f32 %v5260_v55, %v813_v23  ;;  %v1090_v33 = vadd.f32 %v5264_v0, %v819_v10 }
 0x731   :  { %v1238_v6 = vsel %vm487_vm11, %v4276_v35, 0.0 }
 0x732   :  { %4279 = vpow2.f32 %v1224_v21  ;;  %1239 = vadd.xlane.f32.xlu0 %v1238_v6 }
 0x734   :  { %v4278_v50 = vpop.eup %4277 }
 0x735   :  { %v1228_v57 = vpop.xlane.xlu0 %1227  ;;  %v553_v2 = vmul.f32 %v4278_v50, %v5273_v34 }
 0x736   :  { %4281 = vrcp.f32 %v1228_v57 }
 0x737   :  { %3959 = vmatmul.msk.f32.gmra.mxu3 %vm487_vm11, %v553_v2 }
 0x738   :  { %v4280_v28 = vpop.eup %4279 }
 0x739   :  { %v1241_v12 = vsel %vm487_vm11, %v4280_v28, 0.0 }
 0x73a   :  { %1242 = vadd.xlane.f32.xlu2 %v1241_v12  ;;  %v816_v12 = vadd.f32 %v5256_v51, %v5032_v48 }
 0x73c   :  { %v4282_v62 = vpop.eup %4281 }
 0x73d   :  { %v1250_v52 = vmul.f32 %v4282_v62, %v5282_v5 }
 0x73f   :  { %3999 = vmatmul.msk.f32.vlgmr.msrb.gmra.mxu2 %vm487_vm11, %v1250_v52 }
 0x752   :  { %v999_v26 = vpop.xlane.xlu1 %998 }
 0x753   :  { %4283 = vrcp.f32 %v999_v26 }
 0x759   :  { %v4284_v60 = vpop.eup %4283 }
 0x75a   :  { %v1015_v3 = vmul.f32 %v4284_v60, %v5289_v40  ;;  %v1231_v16 = vpop.xlane.xlu1 %1230 }
 0x75b   :  { %v1002_v17 = vpop.xlane.xlu2 %1001  ;;  %4285 = vrcp.f32 %v1231_v16 }
 0x75c   :  { %4287 = vrcp.f32 %v1002_v17  ;;  %3981 = vmatmul.msk.f32.vlgmr.msra.gmra.mxu3 %vm487_vm11, %v1015_v3 }
 0x761   :  { %v4286_v34 = vpop.eup %4285 }
 0x762   :  { %v4288_v42 = vpop.eup %4287  ;;  %v1251_v38 = vmul.f32 %v4286_v34, %v5295_v11 }
 0x763   :  { %v1234_v30 = vpop.xlane.xlu2 %1233  ;;  %v1005_v9 = vpop.xlane.xlu0 %1004  ;;  %v1016_v5 = vmul.f32 %v4288_v42, %v5297_v25 }
 0x764   :  { %4289 = vrcp.f32 %v1234_v30  ;;  %4000 = vmatmul.msk.f32.gmra.mxu2 %vm487_vm11, %v1251_v38 }
 0x765   :  { %4291 = vrcp.f32 %v1005_v9  ;;  %3982 = vmatmul.msk.f32.gmra.mxu3 %vm487_vm11, %v1016_v5 }
 0x76a   :  { %v4290_v40 = vpop.eup %4289  ;;  %v1237_v36 = vpop.xlane.xlu1 %1236 }
 0x76b   :  { %v4292_v43 = vpop.eup %4291  ;;  %4293 = vrcp.f32 %v1237_v36  ;;  %v1252_v53 = vmul.f32 %v4290_v40, %v5304_v24  ;;  %v1333_v24 = vld [vmem:[%s6980_s5 + $0x8] sm:$0xff] }
 0x76c   :  { %v1017_v37 = vmul.f32 %v4292_v43, %v5306_v7  ;;  %v1332_v7 = vld [vmem:[%s6980_s5] sm:$0xff]  ;;  %1369 = vmatpush.msra.mxu1 %v1333_v24 }
 0x76d   :  { %4001 = vmatmul.msk.f32.gmra.mxu2 %vm487_vm11, %v1252_v53 }
 0x76e   :  { %3983 = vmatmul.msk.f32.gmra.mxu3 %vm487_vm11, %v1017_v37  ;;  %1370 = vmatpush.msra.mxu1 %v1332_v7 }
 0x771   :  { %v4294_v11 = vpop.eup %4293 }
 0x772   :  { %v1253_v25 = vmul.f32 %v4294_v11, %v4272_v61 }
 0x776   :  { %4005 = vmatmul.msk.f32.vlgmr.msrb.gmra.mxu3 %vm487_vm11, %v1253_v25 }
 0x777   :  { %v847_v50 = vpop.f32.mrf.mxu3 }
 0x778   :  { %v848_v16 = vadd.f32 %v847_v50, %v5208_v14  ;;  %v5380_v14 = vld [vmem:[%s6978_s3] sm:$0xff] }
 0x779   :  { %v1336_v9 = vperm.slane %v5380_v14, 5 }
 0x77f   :  { %v850_v57 = vpop.f32.mrf.mxu3 }
 0x780   :  { %v851_v17 = vadd.f32 %v850_v57, %v5210_v39 }
 0x7a5   :  { %v1240_v61 = vpop.xlane.xlu0 %1239 }
 0x7a6   :  { %4295 = vrcp.f32 %v1240_v61 }
 0x7ac   :  { %v4296_v29 = vpop.eup %4295 }
 0x7ad   :  { %v1243_v46 = vpop.xlane.xlu2 %1242  ;;  %v1254_v4 = vmul.f32 %v4296_v29, %v4276_v35 }
 0x7ae   :  { %4297 = vrcp.f32 %v1243_v46 }
 0x7af   :  { %4006 = vmatmul.msk.f32.gmra.mxu3 %vm487_vm11, %v1254_v4 }
 0x7b4   :  { %v4298_v1 = vpop.eup %4297 }
 0x7b5   :  { %v1255_v27 = vmul.f32 %v4298_v1, %v4280_v28  ;;  %v1089_v28 = vadd.f32 %v5262_v47, %v816_v12 }
 0x7b7   :  { %4007 = vmatmul.msk.f32.gmra.mxu3 %vm487_vm11, %v1255_v27 }
 0x7ba   :  { %v853_v2 = vpop.f32.mrf.mxu3 }
 0x7bb   :  { %v854_v32 = vadd.f32 %v853_v2, %v5212_v58 }
 0x7c2   :  { %v1282_v21 = vpop.f32.mrf.mxu2 }
 0x7c3   :  { %v1326_v6 = vadd.f32 %v1282_v21, %v1088_v54 }
 0x7c5   :  { %4008 = vmatmul.msk.f32.vlgmr.msra.gmra.mxu1 %vm131_vm1, %v1326_v6 }
 0x7df   :  { %v1079_v35 = vpop.f32.mrf.mxu3 }
 0x7e0   :  { %v1091_v48 = vadd.f32 %v1079_v35, %v848_v16 }
 0x7e7   :  { %v1285_v62 = vpop.f32.mrf.mxu2 }
 0x7e8   :  { %v1082_v52 = vpop.f32.mrf.mxu3  ;;  %v1327_v26 = vadd.f32 %v1285_v62, %v1089_v28 }
 0x7e9   :  { %v1092_v34 = vadd.f32 %v1082_v52, %v851_v17  ;;  %v1544_v17 = vld [vmem:[%s6981_s6 + $0x10] sm:$0xff] }
 0x7ea   :  { %4009 = vmatmul.msk.f32.gmra.mxu1 %vm131_vm1, %v1327_v26 }
 0x7f0   :  { %v1288_v55 = vpop.f32.mrf.mxu2 }
 0x7f1   :  { %v1085_v60 = vpop.f32.mrf.mxu3  ;;  %v1328_v3 = vadd.f32 %v1288_v55, %v1090_v33 }
 0x7f2   :  { %v1093_v49 = vadd.f32 %v1085_v60, %v854_v32 }
 0x7f3   :  { %4010 = vmatmul.msk.f32.gmra.mxu1 %vm131_vm1, %v1328_v3 }
 0x7f9   :  { %v1317_v51 = vpop.f32.mrf.mxu3 }
 0x7fa   :  { %v1329_v47 = vadd.f32 %v1317_v51, %v1091_v48  ;;  %v1545_v51 = vld [vmem:[%s6981_s6 + $0x18] sm:$0xff] }
 0x7fb   :  { %1577 = vmatpush.msra.mxu0 %v1545_v51 }
 0x7fc   :  { %4011 = vmatmul.msk.f32.gmra.mxu1 %vm131_vm1, %v1329_v47 }
 0x7fd   :  { %1578 = vmatpush.msra.mxu0 %v1544_v17 }
 0x832   :  { %v1320_v42 = vpop.f32.mrf.mxu3 }
 0x833   :  { %v1330_v38 = vadd.f32 %v1320_v42, %v1092_v34  ;;  %v1543_v34 = vld [vmem:[%s6981_s6 + $0x8] sm:$0xff] }
 0x834   :  { %1579 = vmatpush.msra.mxu0 %v1543_v34 }
 0x835   :  { %4012 = vmatmul.msk.f32.gmra.mxu1 %vm131_vm1, %v1330_v38  ;;  %v1542_v38 = vld [vmem:[%s6981_s6] sm:$0xff] }
 0x836   :  { %1580 = vmatpush.msra.mxu0 %v1542_v38 }
 0x83a   :  { %v1323_v0 = vpop.f32.mrf.mxu3 }
 0x83b   :  { %v1331_v30 = vadd.f32 %v1323_v0, %v1093_v49 }
 0x83d   :  { %4013 = vmatmul.msk.f32.gmra.mxu1 %vm131_vm1, %v1331_v30 }
 0x842   :  { %v1372_v39 = vpop.f32.mrf.mxu1 }
 0x843   :  { %v1373_v5 = vadd.f32 %v1372_v39, %v1336_v9 }
 0x845   :  { %v5384_v40 = vadd.f32 %v1373_v5, %v4631_v13 }
 0x847   :  { %v1396_v58 = vsel %vm131_vm1, %v5384_v40, 0.0 }
 0x848   :  { %1397 = vadd.xlane.f32.xlu1 %v1396_v58 }
 0x867   :  { %v1375_v36 = vpop.f32.mrf.mxu1 }
 0x868   :  { %v1376_v43 = vadd.f32 %v1375_v36, %v1336_v9 }
 0x86a   :  { %v5389_v53 = vadd.f32 %v1376_v43, %v4642_v18 }
 0x86c   :  { %v1399_v37 = vsel %vm131_vm1, %v5389_v53, 0.0 }
 0x86d   :  { %1400 = vadd.xlane.f32.xlu0 %v1399_v37 }
 0x870   :  { %v1378_v11 = vpop.f32.mrf.mxu1 }
 0x871   :  { %v1379_v25 = vadd.f32 %v1378_v11, %v1336_v9 }
 0x873   :  { %v5394_v59 = vadd.f32 %v1379_v25, %v4649_v22 }
 0x875   :  { %v1402_v13 = vsel %vm131_vm1, %v5394_v59, 0.0 }
 0x876   :  { %1403 = vadd.xlane.f32.xlu2 %v1402_v13 }
 0x879   :  { %v1381_v44 = vpop.f32.mrf.mxu1 }
 0x87a   :  { %v1382_v24 = vadd.f32 %v1381_v44, %v1336_v9 }
 0x87c   :  { %v5399_v7 = vadd.f32 %v1382_v24, %v4666_v41  ;;  %v5465_v24 = vperm.slane %v5380_v14, 2 }
 0x87e   :  { %v1405_v18 = vsel %vm131_vm1, %v5399_v7, 0.0 }
 0x87f   :  { %1406 = vadd.xlane.f32.xlu1 %v1405_v18 }
 0x8b2   :  { %v1384_v61 = vpop.f32.mrf.mxu1 }
 0x8b3   :  { %v1385_v29 = vadd.f32 %v1384_v61, %v1336_v9 }
 0x8b5   :  { %v5404_v46 = vadd.f32 %v1385_v29, %v4693_v56  ;;  %v5468_v29 = vperm.slane %v5380_v14, 3 }
 0x8b7   :  { %v1408_v22 = vsel %vm131_vm1, %v5404_v46, 0.0 }
 0x8b8   :  { %1409 = vadd.xlane.f32.xlu0 %v1408_v22 }
 0x8ba   :  { %v1387_v4 = vpop.f32.mrf.mxu1 }
 0x8bb   :  { %v1388_v1 = vadd.f32 %v1387_v4, %v1336_v9  ;;  %v1398_v27 = vpop.xlane.xlu1 %1397 }
 0x8bc   :  { %v1414_v23 = vmul.f32 %v1398_v27, %v4653_v31 }
 0x8bd   :  { %v5410_v41 = vadd.f32 %v1388_v1, %v4674_v45 }
 0x8be   :  { %v1420_v54 = vsub.f32 %v5384_v40, %v1414_v23 }
 0x8bf   :  { %v1411_v21 = vsel %vm131_vm1, %v5410_v41, 0.0 }
 0x8c0   :  { %1412 = vadd.xlane.f32.xlu2 %v1411_v21  ;;  %v1426_v56 = vmul.f32 %v1420_v54, %v1420_v54 }
 0x8c2   :  { %v1432_v6 = vsel %vm131_vm1, %v1426_v56, 0.0 }
 0x8c3   :  { %1433 = vadd.xlane.f32.xlu1 %v1432_v6 }
 0x8e0   :  { %v1401_v50 = vpop.xlane.xlu0 %1400 }
 0x8e1   :  { %v1415_v57 = vmul.f32 %v1401_v50, %v4653_v31 }
 0x8e3   :  { %v5418_v2 = vsub.f32 %v5389_v53, %v1415_v57 }
 0x8e5   :  { %v1427_v45 = vmul.f32 %v5418_v2, %v5418_v2 }
 0x8e7   :  { %v1435_v35 = vsel %vm131_vm1, %v1427_v45, 0.0 }
 0x8e8   :  { %1436 = vadd.xlane.f32.xlu0 %v1435_v35 }
 0x8e9   :  { %v1404_v12 = vpop.xlane.xlu2 %1403 }
 0x8ea   :  { %v1416_v28 = vmul.f32 %v1404_v12, %v4653_v31 }
 0x8ec   :  { %v5425_v62 = vsub.f32 %v5394_v59, %v1416_v28 }
 0x8ee   :  { %v1428_v52 = vmul.f32 %v5425_v62, %v5425_v62 }
 0x8f0   :  { %v1438_v26 = vsel %vm131_vm1, %v1428_v52, 0.0 }
 0x8f1   :  { %1439 = vadd.xlane.f32.xlu2 %v1438_v26 }
 0x8f2   :  { %v1407_v10 = vpop.xlane.xlu1 %1406 }
 0x8f3   :  { %v1417_v33 = vmul.f32 %v1407_v10, %v4653_v31 }
 0x8f5   :  { %v5432_v55 = vsub.f32 %v5399_v7, %v1417_v33 }
 0x8f7   :  { %v1429_v60 = vmul.f32 %v5432_v55, %v5432_v55 }
 0x8f9   :  { %v1441_v3 = vsel %vm131_vm1, %v1429_v60, 0.0 }
 0x8fa   :  { %1442 = vadd.xlane.f32.xlu1 %v1441_v3 }
 0x92b   :  { %v1410_v16 = vpop.xlane.xlu0 %1409 }
 0x92c   :  { %v1418_v48 = vmul.f32 %v1410_v16, %v4653_v31 }
 0x92e   :  { %v5442_v47 = vsub.f32 %v5404_v46, %v1418_v48 }
 0x930   :  { %v1430_v42 = vmul.f32 %v5442_v47, %v5442_v47 }
 0x932   :  { %v1444_v32 = vsel %vm131_vm1, %v1430_v42, 0.0 }
 0x933   :  { %v1413_v49 = vpop.xlane.xlu2 %1412  ;;  %1445 = vadd.xlane.f32.xlu0 %v1444_v32 }
 0x934   :  { %v1419_v0 = vmul.f32 %v1413_v49, %v4653_v31 }
 0x936   :  { %v5458_v30 = vsub.f32 %v5410_v41, %v1419_v0  ;;  %v1434_v9 = vpop.xlane.xlu1 %1433 }
 0x937   :  { %v1450_v39 = vmul.f32 %v1434_v9, %v4653_v31 }
 0x938   :  { %v1431_v5 = vmul.f32 %v5458_v30, %v5458_v30 }
 0x939   :  { %v1456_v58 = vadd.f32 1e-12, %v1450_v39 }
 0x93a   :  { %v1447_v36 = vsel %vm131_vm1, %v1431_v5, 0.0 }
 0x93b   :  { %4299 = vrsqrt.f32 %v1456_v58  ;;  %1448 = vadd.xlane.f32.xlu2 %v1447_v36  ;;  %vm1468_vm6 = vweird.f32 %v1456_v58 }
 0x941   :  { %v4300_v43 = vpop.eup %4299 }
 0x942   :  { %v1463_v37 = vmul.f32 %v4300_v43, %v1456_v58  ;;  %vm1469_vm5 = vweird.f32 %v4300_v43 }
 0x943   :  { %vm1470_vm7 = vmor %vm1468_vm6, %vm1469_vm5 }
 0x944   :  { %v1464_v11 = vmul.f32 %v4300_v43, %v1463_v37 }
 0x946   :  { %v1465_v25 = vmul.f32 0.5, %v1464_v11 }
 0x948   :  { %v1466_v13 = vsub.f32 1.5, %v1465_v25 }
 0x94a   :  { %v1467_v44 = vmul.f32 %v4300_v43, %v1466_v13 }
 0x94c   :  { %v1471_v18 = vsel %vm1470_vm7, %v4300_v43, %v1467_v44 }
 0x94d   :  { %v1522_v61 = vmul.f32 %v1471_v18, %v1420_v54 }
 0x94f   :  { %v1529_v22 = vmul.f32 %v5465_v24, %v1522_v61 }
 0x951   :  { %v1536_v4 = vadd.f32 %v5468_v29, %v1529_v22 }
 0x953   :  { %4014 = vmatmul.msk.f32.vlgmr.msra.gmra.mxu0 %vm131_vm1, %v1536_v4 }
 0x95b   :  { %v1437_v1 = vpop.xlane.xlu0 %1436 }
 0x95c   :  { %v1451_v27 = vmul.f32 %v1437_v1, %v4653_v31 }
 0x95e   :  { %v1457_v23 = vadd.f32 1e-12, %v1451_v27 }
 0x960   :  { %4301 = vrsqrt.f32 %v1457_v23  ;;  %vm1478_vm9 = vweird.f32 %v1457_v23 }
 0x964   :  { %v1440_v21 = vpop.xlane.xlu2 %1439 }
 0x965   :  { %v1452_v56 = vmul.f32 %v1440_v21, %v4653_v31 }
 0x966   :  { %v4302_v6 = vpop.eup %4301 }
 0x967   :  { %v1473_v50 = vmul.f32 %v4302_v6, %v1457_v23  ;;  %v1458_v54 = vadd.f32 1e-12, %v1452_v56  ;;  %vm1479_vm8 = vweird.f32 %v4302_v6 }
 0x968   :  { %vm1480_vm10 = vmor %vm1478_vm9, %vm1479_vm8 }
 0x969   :  { %v1474_v57 = vmul.f32 %v4302_v6, %v1473_v50  ;;  %4303 = vrsqrt.f32 %v1458_v54  ;;  %vm1488_vm14 = vweird.f32 %v1458_v54 }
 0x96b   :  { %v1475_v45 = vmul.f32 0.5, %v1474_v57  ;;  %v1661_v57 = vld [vmem:[%s6982_s7 + $0x38] sm:$0xff] }
 0x96c   :  { %1690 = vmatpush.msra.mxu2 %v1661_v57 }
 0x96d   :  { %v1476_v35 = vsub.f32 1.5, %v1475_v45  ;;  %v1443_v12 = vpop.xlane.xlu1 %1442 }
 0x96e   :  { %v1453_v28 = vmul.f32 %v1443_v12, %v4653_v31  ;;  %v1660_v12 = vld [vmem:[%s6982_s7 + $0x30] sm:$0xff] }
 0x96f   :  { %v4304_v52 = vpop.eup %4303  ;;  %v1477_v26 = vmul.f32 %v4302_v6, %v1476_v35  ;;  %1691 = vmatpush.msra.mxu2 %v1660_v12 }
 0x970   :  { %v1483_v10 = vmul.f32 %v4304_v52, %v1458_v54  ;;  %v1459_v33 = vadd.f32 1e-12, %v1453_v28  ;;  %vm1489_vm13 = vweird.f32 %v4304_v52 }
 0x971   :  { %v1481_v60 = vsel %vm1480_vm10, %v4302_v6, %v1477_v26  ;;  %vm1490_vm2 = vmor %vm1488_vm14, %vm1489_vm13  ;;  %v1659_v26 = vld [vmem:[%s6982_s7 + $0x28] sm:$0xff] }
 0x972   :  { %v1484_v3 = vmul.f32 %v4304_v52, %v1483_v10  ;;  %4305 = vrsqrt.f32 %v1459_v33  ;;  %v1523_v16 = vmul.f32 %v1481_v60, %v5418_v2  ;;  %vm1498_vm5 = vweird.f32 %v1459_v33  ;;  %1692 = vmatpush.msra.mxu2 %v1659_v26 }
 0x974   :  { %v1485_v48 = vmul.f32 0.5, %v1484_v3  ;;  %v1530_v51 = vmul.f32 %v5465_v24, %v1523_v16  ;;  %v1657_v3 = vld [vmem:[%s6982_s7 + $0x18] sm:$0xff] }
 0x976   :  { %v1486_v17 = vsub.f32 1.5, %v1485_v48  ;;  %v1537_v34 = vadd.f32 %v5468_v29, %v1530_v51  ;;  %v1656_v48 = vld [vmem:[%s6982_s7 + $0x10] sm:$0xff] }
 0x978   :  { %v4306_v42 = vpop.eup %4305  ;;  %v1487_v38 = vmul.f32 %v4304_v52, %v1486_v17  ;;  %4015 = vmatmul.msk.f32.gmra.mxu0 %vm131_vm1, %v1537_v34  ;;  %v1655_v17 = vld [vmem:[%s6982_s7 + $0x8] sm:$0xff]  ;;  %v1654_v34 = vld [vmem:[%s6982_s7] sm:$0xff] }
 0x979   :  { %v1493_v32 = vmul.f32 %v4306_v42, %v1459_v33  ;;  %vm1499_vm3 = vweird.f32 %v4306_v42 }
 0x97a   :  { %v1491_v49 = vsel %vm1490_vm2, %v4304_v52, %v1487_v38  ;;  %vm1500_vm6 = vmor %vm1498_vm5, %vm1499_vm3  ;;  %vm1663_vm2 = vcmask 523264  }
 0x97b   :  { %v1494_v0 = vmul.f32 %v4306_v42, %v1493_v32  ;;  %v1524_v9 = vmul.f32 %v1491_v49, %v5425_v62 }
 0x97d   :  { %v1495_v39 = vmul.f32 0.5, %v1494_v0  ;;  %v1531_v2 = vmul.f32 %v5465_v24, %v1524_v9 }
 0x97f   :  { %v1496_v5 = vsub.f32 1.5, %v1495_v39  ;;  %v1538_v58 = vadd.f32 %v5468_v29, %v1531_v2 }
 0x981   :  { %v1497_v36 = vmul.f32 %v4306_v42, %v1496_v5  ;;  %4016 = vmatmul.msk.f32.gmra.mxu0 %vm131_vm1, %v1538_v58 }
 0x983   :  { %v1501_v43 = vsel %vm1500_vm6, %v4306_v42, %v1497_v36 }
 0x984   :  { %v1525_v37 = vmul.f32 %v1501_v43, %v5432_v55 }
 0x986   :  { %v1532_v11 = vmul.f32 %v5465_v24, %v1525_v37 }
 0x988   :  { %v1539_v25 = vadd.f32 %v5468_v29, %v1532_v11 }
 0x98a   :  { %4017 = vmatmul.msk.f32.gmra.mxu0 %vm131_vm1, %v1539_v25 }
 0x9a6   :  { %v1446_v62 = vpop.xlane.xlu0 %1445 }
 0x9a7   :  { %v1454_v13 = vmul.f32 %v1446_v62, %v4653_v31 }
 0x9a9   :  { %v1460_v44 = vadd.f32 1e-12, %v1454_v13 }
 0x9ab   :  { %4307 = vrsqrt.f32 %v1460_v44  ;;  %vm1508_vm8 = vweird.f32 %v1460_v44 }
 0x9ae   :  { %v1449_v18 = vpop.xlane.xlu2 %1448 }
 0x9af   :  { %v1455_v61 = vmul.f32 %v1449_v18, %v4653_v31 }
 0x9b1   :  { %v4308_v22 = vpop.eup %4307  ;;  %v1461_v4 = vadd.f32 1e-12, %v1455_v61 }
 0x9b2   :  { %v1503_v1 = vmul.f32 %v4308_v22, %v1460_v44  ;;  %vm1509_vm7 = vweird.f32 %v4308_v22 }
 0x9b3   :  { %4309 = vrsqrt.f32 %v1461_v4  ;;  %vm1510_vm9 = vmor %vm1508_vm8, %vm1509_vm7  ;;  %vm1518_vm13 = vweird.f32 %v1461_v4 }
 0x9b4   :  { %v1504_v27 = vmul.f32 %v4308_v22, %v1503_v1 }
 0x9b6   :  { %v1505_v55 = vmul.f32 0.5, %v1504_v27 }
 0x9b8   :  { %v1506_v23 = vsub.f32 1.5, %v1505_v55 }
 0x9b9   :  { %v4310_v21 = vpop.eup %4309 }
 0x9ba   :  { %v1507_v56 = vmul.f32 %v4308_v22, %v1506_v23  ;;  %v1513_v6 = vmul.f32 %v4310_v21, %v1461_v4  ;;  %vm1519_vm10 = vweird.f32 %v4310_v21 }
 0x9bb   :  { %vm1520_vm14 = vmor %vm1518_vm13, %vm1519_vm10 }
 0x9bc   :  { %v1511_v50 = vsel %vm1510_vm9, %v4308_v22, %v1507_v56  ;;  %v1514_v54 = vmul.f32 %v4310_v21, %v1513_v6 }
 0x9bd   :  { %v1526_v45 = vmul.f32 %v1511_v50, %v5442_v47  ;;  %v1658_v47 = vld [vmem:[%s6982_s7 + $0x20] sm:$0xff] }
 0x9be   :  { %v1515_v35 = vmul.f32 0.5, %v1514_v54  ;;  %1693 = vmatpush.msra.mxu2 %v1658_v47 }
 0x9bf   :  { %v1533_v28 = vmul.f32 %v5465_v24, %v1526_v45 }
 0x9c0   :  { %v1516_v52 = vsub.f32 1.5, %v1515_v35  ;;  %1694 = vmatpush.msra.mxu2 %v1657_v3 }
 0x9c1   :  { %v1540_v10 = vadd.f32 %v5468_v29, %v1533_v28 }
 0x9c2   :  { %v1517_v33 = vmul.f32 %v4310_v21, %v1516_v52  ;;  %1695 = vmatpush.msra.mxu2 %v1656_v48 }
 0x9c3   :  { %4018 = vmatmul.msk.f32.gmra.mxu0 %vm131_vm1, %v1540_v10 }
 0x9c4   :  { %v1521_v60 = vsel %vm1520_vm14, %v4310_v21, %v1517_v33  ;;  %1696 = vmatpush.msra.mxu2 %v1655_v17 }
 0x9c5   :  { %v1527_v16 = vmul.f32 %v1521_v60, %v5458_v30  ;;  %v1546_v30 = vperm.slane %v5380_v14, 6 }
 0x9c6   :  { %1697 = vmatpush.msra.mxu2 %v1654_v34 }
 0x9c7   :  { %v1534_v51 = vmul.f32 %v5465_v24, %v1527_v16 }
 0x9c9   :  { %v1541_v42 = vadd.f32 %v5468_v29, %v1534_v51 }
 0x9cb   :  { %4019 = vmatmul.msk.f32.gmra.mxu0 %vm131_vm1, %v1541_v42 }
 0x9d0   :  { %v1582_v38 = vpop.f32.mrf.mxu0 }
 0x9d1   :  { %v1583_v32 = vadd.f32 %v1582_v38, %v1546_v30 }
 0x9d3   :  { %v1600_v24 = vmul.f32 %v1583_v32, %v1583_v32 }
 0x9d5   :  { %v1606_v49 = vmul.f32 %v1600_v24, %v1583_v32 }
 0x9d7   :  { %v1612_v0 = vmul.f32 0.044715, %v1606_v49 }
 0x9d9   :  { %v1618_v9 = vadd.f32 %v1612_v0, %v1583_v32 }
 0x9db   :  { %v1624_v39 = vmul.f32 0.7978846, %v1618_v9 }
 0x9dd   :  { %4311 = vtanh.f32 %v1624_v39 }
 0x9e3   :  { %v4312_v2 = vpop.eup %4311 }
 0x9e4   :  { %v1636_v5 = vadd.f32 1.0, %v4312_v2 }
 0x9e6   :  { %v1642_v58 = vmul.f32 0.5, %v1636_v5 }
 0x9e8   :  { %v1648_v36 = vmul.f32 %v1642_v58, %v1583_v32 }
 0x9ea   :  { %4020 = vmatmul.msk.f32.vlgmr.msra.gmra.mxu2 %vm1663_vm2, %v1648_v36 }
 0x9f5   :  { %v1585_v29 = vpop.f32.mrf.mxu0 }
 0x9f6   :  { %v1586_v43 = vadd.f32 %v1585_v29, %v1546_v30 }
 0x9f8   :  { %v1601_v37 = vmul.f32 %v1586_v43, %v1586_v43 }
 0x9fa   :  { %v1607_v11 = vmul.f32 %v1601_v37, %v1586_v43 }
 0x9fc   :  { %v1613_v25 = vmul.f32 0.044715, %v1607_v11 }
 0x9fe   :  { %v1588_v62 = vpop.f32.mrf.mxu0  ;;  %v1619_v13 = vadd.f32 %v1613_v25, %v1586_v43 }
 0x9ff   :  { %v1589_v44 = vadd.f32 %v1588_v62, %v1546_v30 }
 0xa00   :  { %v1625_v18 = vmul.f32 0.7978846, %v1619_v13 }
 0xa01   :  { %v1602_v61 = vmul.f32 %v1589_v44, %v1589_v44 }
 0xa02   :  { %4313 = vtanh.f32 %v1625_v18 }
 0xa03   :  { %v1608_v22 = vmul.f32 %v1602_v61, %v1589_v44 }
 0xa05   :  { %v1614_v4 = vmul.f32 0.044715, %v1608_v22 }
 0xa07   :  { %v1591_v1 = vpop.f32.mrf.mxu0  ;;  %v1620_v27 = vadd.f32 %v1614_v4, %v1589_v44 }
 0xa08   :  { %v4314_v55 = vpop.eup %4313  ;;  %v1592_v23 = vadd.f32 %v1591_v1, %v1546_v30 }
 0xa09   :  { %v1637_v21 = vadd.f32 1.0, %v4314_v55  ;;  %v1626_v56 = vmul.f32 0.7978846, %v1620_v27 }
 0xa0a   :  { %v1603_v6 = vmul.f32 %v1592_v23, %v1592_v23 }
 0xa0b   :  { %v1643_v50 = vmul.f32 0.5, %v1637_v21  ;;  %4315 = vtanh.f32 %v1626_v56 }
 0xa0c   :  { %v1609_v54 = vmul.f32 %v1603_v6, %v1592_v23 }
 0xa0d   :  { %v1649_v57 = vmul.f32 %v1643_v50, %v1586_v43 }
 0xa0e   :  { %v1615_v45 = vmul.f32 0.044715, %v1609_v54 }
 0xa0f   :  { %4021 = vmatmul.msk.f32.gmra.mxu2 %vm1663_vm2, %v1649_v57 }
 0xa10   :  { %v1621_v35 = vadd.f32 %v1615_v45, %v1592_v23 }
 0xa11   :  { %v4316_v12 = vpop.eup %4315 }
 0xa12   :  { %v1638_v28 = vadd.f32 1.0, %v4316_v12  ;;  %v1627_v52 = vmul.f32 0.7978846, %v1621_v35 }
 0xa14   :  { %v1644_v26 = vmul.f32 0.5, %v1638_v28  ;;  %4317 = vtanh.f32 %v1627_v52 }
 0xa16   :  { %v1650_v10 = vmul.f32 %v1644_v26, %v1589_v44 }
 0xa18   :  { %4022 = vmatmul.msk.f32.gmra.mxu2 %vm1663_vm2, %v1650_v10 }
 0xa1a   :  { %v4318_v33 = vpop.eup %4317 }
 0xa1b   :  { %v1639_v47 = vadd.f32 1.0, %v4318_v33 }
 0xa1d   :  { %v1645_v60 = vmul.f32 0.5, %v1639_v47 }
 0xa1f   :  { %v1651_v3 = vmul.f32 %v1645_v60, %v1592_v23 }
 0xa21   :  { %4023 = vmatmul.msk.f32.gmra.mxu2 %vm1663_vm2, %v1651_v3 }
 0xa40   :  { %v1594_v16 = vpop.f32.mrf.mxu0 }
 0xa41   :  { %v1595_v48 = vadd.f32 %v1594_v16, %v1546_v30 }
 0xa43   :  { %v1604_v51 = vmul.f32 %v1595_v48, %v1595_v48 }
 0xa45   :  { %v1610_v17 = vmul.f32 %v1604_v51, %v1595_v48 }
 0xa47   :  { %v1616_v34 = vmul.f32 0.044715, %v1610_v17 }
 0xa48   :  { %v1597_v42 = vpop.f32.mrf.mxu0 }
 0xa49   :  { %v1622_v38 = vadd.f32 %v1616_v34, %v1595_v48  ;;  %v1598_v32 = vadd.f32 %v1597_v42, %v1546_v30  ;;  %v1662_v30 = vperm.slane %v5380_v14, 7 }
 0xa4b   :  { %v1605_v24 = vmul.f32 %v1598_v32, %v1598_v32  ;;  %v1628_v49 = vmul.f32 0.7978846, %v1622_v38 }
 0xa4d   :  { %v1611_v0 = vmul.f32 %v1605_v24, %v1598_v32  ;;  %4319 = vtanh.f32 %v1628_v49 }
 0xa4f   :  { %v1617_v9 = vmul.f32 0.044715, %v1611_v0 }
 0xa51   :  { %v1623_v39 = vadd.f32 %v1617_v9, %v1598_v32  ;;  %v4030_v9 = vld [vmem:[%s6979_s4 + $0x38] sm:$0xff] }
 0xa52   :  { %1907 = vmatpush.msra.mxu3 %v4030_v9 }
 0xa53   :  { %v4320_v2 = vpop.eup %4319  ;;  %v1629_v5 = vmul.f32 0.7978846, %v1623_v39 }
 0xa54   :  { %v1640_v58 = vadd.f32 1.0, %v4320_v2  ;;  %v4029_v2 = vld [vmem:[%s6979_s4 + $0x30] sm:$0xff] }
 0xa55   :  { %4321 = vtanh.f32 %v1629_v5  ;;  %v4028_v5 = vld [vmem:[%s6979_s4 + $0x28] sm:$0xff]  ;;  %1908 = vmatpush.msra.mxu3 %v4029_v2 }
 0xa56   :  { %v1646_v36 = vmul.f32 0.5, %v1640_v58 }
 0xa57   :  { %1909 = vmatpush.msra.mxu3 %v4028_v5 }
 0xa58   :  { %v1652_v29 = vmul.f32 %v1646_v36, %v1595_v48  ;;  %v4027_v36 = vld [vmem:[%s6979_s4 + $0x20] sm:$0xff] }
 0xa59   :  { %1910 = vmatpush.msra.mxu3 %v4027_v36 }
 0xa5a   :  { %4024 = vmatmul.msk.f32.gmra.mxu2 %vm1663_vm2, %v1652_v29 }
 0xa5b   :  { %v4322_v43 = vpop.eup %4321 }
 0xa5c   :  { %v1641_v37 = vadd.f32 1.0, %v4322_v43 }
 0xa5e   :  { %v1647_v11 = vmul.f32 0.5, %v1641_v37 }
 0xa60   :  { %v1653_v25 = vmul.f32 %v1647_v11, %v1598_v32 }
 0xa62   :  { %4025 = vmatmul.msk.f32.gmra.mxu2 %vm1663_vm2, %v1653_v25 }
 0xa6d   :  { %v1699_v62 = vpop.f32.mrf.mxu2 }
 0xa6e   :  { %v1700_v13 = vadd.f32 %v1699_v62, %v1662_v30 }
 0xa70   :  { %v5531_v44 = vadd.f32 %v1700_v13, %v5384_v40 }
 0xa72   :  { %v1725_v18 = vsel %vm131_vm1, %v5531_v44, 0.0 }
 0xa73   :  { %1726 = vadd.xlane.f32.xlu1 %v1725_v18 }
 0xa92   :  { %v1702_v61 = vpop.f32.mrf.mxu2 }
 0xa93   :  { %v1703_v22 = vadd.f32 %v1702_v61, %v1662_v30 }
 0xa95   :  { %v5536_v4 = vadd.f32 %v1703_v22, %v5389_v53 }
 0xa97   :  { %v1728_v1 = vsel %vm131_vm1, %v5536_v4, 0.0 }
 0xa98   :  { %1729 = vadd.xlane.f32.xlu0 %v1728_v1 }
 0xa9b   :  { %v1705_v27 = vpop.f32.mrf.mxu2 }
 0xa9c   :  { %v1706_v14 = vadd.f32 %v1705_v27, %v1662_v30 }
 0xa9e   :  { %v5541_v55 = vadd.f32 %v1706_v14, %v5394_v59  ;;  %v5614_v14 = vld [vmem:[%s6978_s3 + $0x8] sm:$0xff] }
 0xaa0   :  { %v1731_v40 = vsel %vm131_vm1, %v5541_v55, 0.0 }
 0xaa1   :  { %1732 = vadd.xlane.f32.xlu2 %v1731_v40 }
 0xaa4   :  { %v1708_v23 = vpop.f32.mrf.mxu2 }
 0xaa5   :  { %v1709_v21 = vadd.f32 %v1708_v23, %v1662_v30 }
 0xaa7   :  { %v5546_v56 = vadd.f32 %v1709_v21, %v5399_v7  ;;  %v5617_v21 = vperm.slane %v5614_v14, 0 }
 0xaa9   :  { %v1734_v53 = vsel %vm131_vm1, %v5546_v56, 0.0 }
 0xaaa   :  { %1735 = vadd.xlane.f32.xlu1 %v1734_v53 }
 0xadd   :  { %v1711_v6 = vpop.f32.mrf.mxu2 }
 0xade   :  { %v1712_v50 = vadd.f32 %v1711_v6, %v1662_v30 }
 0xae0   :  { %v5551_v54 = vadd.f32 %v1712_v50, %v5404_v46  ;;  %v5620_v50 = vperm.slane %v5614_v14, 1 }
 0xae2   :  { %v1737_v59 = vsel %vm131_vm1, %v5551_v54, 0.0 }
 0xae3   :  { %1738 = vadd.xlane.f32.xlu0 %v1737_v59 }
 0xae5   :  { %v1714_v57 = vpop.f32.mrf.mxu2 }
 0xae6   :  { %v1715_v45 = vadd.f32 %v1714_v57, %v1662_v30  ;;  %v1727_v35 = vpop.xlane.xlu1 %1726 }
 0xae7   :  { %v1743_v12 = vmul.f32 %v1727_v35, %v4653_v31 }
 0xae8   :  { %v5557_v7 = vadd.f32 %v1715_v45, %v5410_v41 }
 0xae9   :  { %v1749_v28 = vsub.f32 %v5531_v44, %v1743_v12 }
 0xaea   :  { %v1740_v52 = vsel %vm131_vm1, %v5557_v7, 0.0 }
 0xaeb   :  { %1741 = vadd.xlane.f32.xlu2 %v1740_v52  ;;  %v1755_v46 = vmul.f32 %v1749_v28, %v1749_v28 }
 0xaed   :  { %v1761_v26 = vsel %vm131_vm1, %v1755_v46, 0.0 }
 0xaee   :  { %1762 = vadd.xlane.f32.xlu1 %v1761_v26 }
 0xb0b   :  { %v1730_v10 = vpop.xlane.xlu0 %1729 }
 0xb0c   :  { %v1744_v33 = vmul.f32 %v1730_v10, %v4653_v31 }
 0xb0e   :  { %v5565_v47 = vsub.f32 %v5536_v4, %v1744_v33 }
 0xb10   :  { %v1756_v41 = vmul.f32 %v5565_v47, %v5565_v47 }
 0xb12   :  { %v1764_v60 = vsel %vm131_vm1, %v1756_v41, 0.0 }
 0xb13   :  { %1765 = vadd.xlane.f32.xlu0 %v1764_v60 }
 0xb14   :  { %v1733_v3 = vpop.xlane.xlu2 %1732 }
 0xb15   :  { %v1745_v16 = vmul.f32 %v1733_v3, %v4653_v31 }
 0xb17   :  { %v5572_v48 = vsub.f32 %v5541_v55, %v1745_v16 }
 0xb19   :  { %v1757_v51 = vmul.f32 %v5572_v48, %v5572_v48 }
 0xb1b   :  { %v1767_v17 = vsel %vm131_vm1, %v1757_v51, 0.0 }
 0xb1c   :  { %1768 = vadd.xlane.f32.xlu2 %v1767_v17 }
 0xb1d   :  { %v1736_v34 = vpop.xlane.xlu1 %1735 }
 0xb1e   :  { %v1746_v42 = vmul.f32 %v1736_v34, %v4653_v31 }
 0xb20   :  { %v5579_v38 = vsub.f32 %v5546_v56, %v1746_v42 }
 0xb22   :  { %v1758_v32 = vmul.f32 %v5579_v38, %v5579_v38 }
 0xb24   :  { %v1770_v24 = vsel %vm131_vm1, %v1758_v32, 0.0 }
 0xb25   :  { %1771 = vadd.xlane.f32.xlu1 %v1770_v24 }
 0xb56   :  { %v1739_v49 = vpop.xlane.xlu0 %1738 }
 0xb57   :  { %v1747_v0 = vmul.f32 %v1739_v49, %v4653_v31 }
 0xb59   :  { %v5589_v39 = vsub.f32 %v5551_v54, %v1747_v0 }
 0xb5b   :  { %v1759_v58 = vmul.f32 %v5589_v39, %v5589_v39 }
 0xb5d   :  { %v1773_v29 = vsel %vm131_vm1, %v1759_v58, 0.0 }
 0xb5e   :  { %v1742_v43 = vpop.xlane.xlu2 %1741  ;;  %1774 = vadd.xlane.f32.xlu0 %v1773_v29 }
 0xb5f   :  { %v1748_v37 = vmul.f32 %v1742_v43, %v4653_v31 }
 0xb61   :  { %v5605_v11 = vsub.f32 %v5557_v7, %v1748_v37  ;;  %v1763_v25 = vpop.xlane.xlu1 %1762 }
 0xb62   :  { %v1779_v30 = vmul.f32 %v1763_v25, %v4653_v31 }
 0xb63   :  { %v1760_v62 = vmul.f32 %v5605_v11, %v5605_v11 }
 0xb64   :  { %v1785_v13 = vadd.f32 1e-12, %v1779_v30 }
 0xb65   :  { %v1776_v18 = vsel %vm131_vm1, %v1760_v62, 0.0 }
 0xb66   :  { %4323 = vrsqrt.f32 %v1785_v13  ;;  %1777 = vadd.xlane.f32.xlu2 %v1776_v18  ;;  %vm1797_vm5 = vweird.f32 %v1785_v13 }
 0xb6c   :  { %v4324_v61 = vpop.eup %4323 }
 0xb6d   :  { %v1792_v22 = vmul.f32 %v4324_v61, %v1785_v13  ;;  %vm1798_vm3 = vweird.f32 %v4324_v61 }
 0xb6e   :  { %vm1799_vm6 = vmor %vm1797_vm5, %vm1798_vm3 }
 0xb6f   :  { %v1793_v1 = vmul.f32 %v4324_v61, %v1792_v22 }
 0xb71   :  { %v1794_v27 = vmul.f32 0.5, %v1793_v1 }
 0xb73   :  { %v1795_v40 = vsub.f32 1.5, %v1794_v27 }
 0xb75   :  { %v1796_v23 = vmul.f32 %v4324_v61, %v1795_v40 }
 0xb77   :  { %v1800_v53 = vsel %vm1799_vm6, %v4324_v61, %v1796_v23 }
 0xb78   :  { %v1851_v6 = vmul.f32 %v1800_v53, %v1749_v28 }
 0xb7a   :  { %v1858_v59 = vmul.f32 %v5617_v21, %v1851_v6 }
 0xb7c   :  { %v1865_v57 = vadd.f32 %v5620_v50, %v1858_v59 }
 0xb7e   :  { %4031 = vmatmul.msk.f32.vlgmr.msra.gmra.mxu3 %vm131_vm1, %v1865_v57 }
 0xb86   :  { %v1766_v45 = vpop.xlane.xlu0 %1765 }
 0xb87   :  { %v1780_v35 = vmul.f32 %v1766_v45, %v4653_v31 }
 0xb89   :  { %v1786_v12 = vadd.f32 1e-12, %v1780_v35 }
 0xb8b   :  { %4325 = vrsqrt.f32 %v1786_v12  ;;  %vm1807_vm8 = vweird.f32 %v1786_v12 }
 0xb8f   :  { %v1769_v52 = vpop.xlane.xlu2 %1768 }
 0xb90   :  { %v1781_v46 = vmul.f32 %v1769_v52, %v4653_v31 }
 0xb91   :  { %v4326_v26 = vpop.eup %4325 }
 0xb92   :  { %v1802_v10 = vmul.f32 %v4326_v26, %v1786_v12  ;;  %v1787_v28 = vadd.f32 1e-12, %v1781_v46  ;;  %vm1808_vm7 = vweird.f32 %v4326_v26 }
 0xb93   :  { %vm1809_vm9 = vmor %vm1807_vm8, %vm1808_vm7 }
 0xb94   :  { %v1803_v33 = vmul.f32 %v4326_v26, %v1802_v10  ;;  %4327 = vrsqrt.f32 %v1787_v28  ;;  %vm1817_vm13 = vweird.f32 %v1787_v28 }
 0xb96   :  { %v1804_v41 = vmul.f32 0.5, %v1803_v33 }
 0xb98   :  { %v1805_v60 = vsub.f32 1.5, %v1804_v41  ;;  %v1772_v3 = vpop.xlane.xlu1 %1771 }
 0xb99   :  { %v1782_v16 = vmul.f32 %v1772_v3, %v4653_v31 }
 0xb9a   :  { %v4328_v51 = vpop.eup %4327  ;;  %v1806_v17 = vmul.f32 %v4326_v26, %v1805_v60 }
 0xb9b   :  { %v1812_v34 = vmul.f32 %v4328_v51, %v1787_v28  ;;  %v1788_v42 = vadd.f32 1e-12, %v1782_v16  ;;  %vm1818_vm10 = vweird.f32 %v4328_v51 }
 0xb9c   :  { %v1810_v32 = vsel %vm1809_vm9, %v4326_v26, %v1806_v17  ;;  %vm1819_vm14 = vmor %vm1817_vm13, %vm1818_vm10 }
 0xb9d   :  { %v1813_v24 = vmul.f32 %v4328_v51, %v1812_v34  ;;  %4329 = vrsqrt.f32 %v1788_v42  ;;  %v1852_v49 = vmul.f32 %v1810_v32, %v5565_v47  ;;  %vm1827_vm5 = vweird.f32 %v1788_v42 }
 0xb9f   :  { %v1814_v0 = vmul.f32 0.5, %v1813_v24  ;;  %v1859_v9 = vmul.f32 %v5617_v21, %v1852_v49 }
 0xba1   :  { %v1815_v2 = vsub.f32 1.5, %v1814_v0  ;;  %v1866_v5 = vadd.f32 %v5620_v50, %v1859_v9 }
 0xba3   :  { %v4330_v58 = vpop.eup %4329  ;;  %v1816_v36 = vmul.f32 %v4328_v51, %v1815_v2  ;;  %4032 = vmatmul.msk.f32.gmra.mxu3 %vm131_vm1, %v1866_v5 }
 0xba4   :  { %v1822_v29 = vmul.f32 %v4330_v58, %v1788_v42  ;;  %vm1828_vm3 = vweird.f32 %v4330_v58 }
 0xba5   :  { %v1820_v43 = vsel %vm1819_vm14, %v4328_v51, %v1816_v36  ;;  %vm1829_vm6 = vmor %vm1827_vm5, %vm1828_vm3 }
 0xba6   :  { %v1823_v37 = vmul.f32 %v4330_v58, %v1822_v29  ;;  %v1853_v25 = vmul.f32 %v1820_v43, %v5572_v48 }
 0xba8   :  { %v1824_v30 = vmul.f32 0.5, %v1823_v37  ;;  %v1860_v47 = vmul.f32 %v5617_v21, %v1853_v25 }
 0xbaa   :  { %v1825_v62 = vsub.f32 1.5, %v1824_v30  ;;  %v1867_v13 = vadd.f32 %v5620_v50, %v1860_v47 }
 0xbac   :  { %v1826_v18 = vmul.f32 %v4330_v58, %v1825_v62  ;;  %4033 = vmatmul.msk.f32.gmra.mxu3 %vm131_vm1, %v1867_v13 }
 0xbae   :  { %v1830_v61 = vsel %vm1829_vm6, %v4330_v58, %v1826_v18 }
 0xbaf   :  { %v1854_v22 = vmul.f32 %v1830_v61, %v5579_v38 }
 0xbb1   :  { %v1861_v1 = vmul.f32 %v5617_v21, %v1854_v22 }
 0xbb3   :  { %v1868_v27 = vadd.f32 %v5620_v50, %v1861_v1 }
 0xbb5   :  { %4034 = vmatmul.msk.f32.gmra.mxu3 %vm131_vm1, %v1868_v27 }
 0xbd1   :  { %v1775_v48 = vpop.xlane.xlu0 %1774 }
 0xbd2   :  { %v1783_v40 = vmul.f32 %v1775_v48, %v4653_v31 }
 0xbd4   :  { %v1789_v23 = vadd.f32 1e-12, %v1783_v40 }
 0xbd6   :  { %4331 = vrsqrt.f32 %v1789_v23  ;;  %vm1837_vm8 = vweird.f32 %v1789_v23 }
 0xbd9   :  { %v1778_v53 = vpop.xlane.xlu2 %1777 }
 0xbda   :  { %v1784_v6 = vmul.f32 %v1778_v53, %v4653_v31 }
 0xbdc   :  { %v4332_v59 = vpop.eup %4331  ;;  %v1790_v57 = vadd.f32 1e-12, %v1784_v6 }
 0xbdd   :  { %v1832_v45 = vmul.f32 %v4332_v59, %v1789_v23  ;;  %vm1838_vm7 = vweird.f32 %v4332_v59 }
 0xbde   :  { %4333 = vrsqrt.f32 %v1790_v57  ;;  %vm1839_vm9 = vmor %vm1837_vm8, %vm1838_vm7  ;;  %vm1847_vm13 = vweird.f32 %v1790_v57 }
 0xbdf   :  { %v1833_v35 = vmul.f32 %v4332_v59, %v1832_v45 }
 0xbe1   :  { %v1834_v38 = vmul.f32 0.5, %v1833_v35 }
 0xbe3   :  { %v1835_v12 = vsub.f32 1.5, %v1834_v38 }
 0xbe4   :  { %v4334_v52 = vpop.eup %4333 }
 0xbe5   :  { %v1836_v46 = vmul.f32 %v4332_v59, %v1835_v12  ;;  %v1842_v26 = vmul.f32 %v4334_v52, %v1790_v57  ;;  %vm1848_vm10 = vweird.f32 %v4334_v52 }
 0xbe6   :  { %vm1849_vm14 = vmor %vm1847_vm13, %vm1848_vm10 }
 0xbe7   :  { %v1840_v10 = vsel %vm1839_vm9, %v4332_v59, %v1836_v46  ;;  %v1843_v28 = vmul.f32 %v4334_v52, %v1842_v26 }
 0xbe8   :  { %v1855_v33 = vmul.f32 %v1840_v10, %v5589_v39  ;;  %v1876_v39 = vperm.slane %v5614_v14, 4 }
 0xbe9   :  { %v1844_v41 = vmul.f32 0.5, %v1843_v28 }
 0xbea   :  { %v1862_v60 = vmul.f32 %v5617_v21, %v1855_v33 }
 0xbeb   :  { %v1845_v3 = vsub.f32 1.5, %v1844_v41 }
 0xbec   :  { %v1869_v16 = vadd.f32 %v5620_v50, %v1862_v60 }
 0xbed   :  { %v1846_v51 = vmul.f32 %v4334_v52, %v1845_v3 }
 0xbee   :  { %4035 = vmatmul.msk.f32.gmra.mxu3 %vm131_vm1, %v1869_v16 }
 0xbef   :  { %v1850_v17 = vsel %vm1849_vm14, %v4334_v52, %v1846_v51  ;;  %vm3305_vm14 = vcmask 254976  }
 0xbf0   :  { %v1856_v34 = vmul.f32 %v1850_v17, %v5605_v11 }
 0xbf2   :  { %v1863_v42 = vmul.f32 %v5617_v21, %v1856_v34 }
 0xbf4   :  { %v1870_v32 = vadd.f32 %v5620_v50, %v1863_v42 }
 0xbf6   :  { %4036 = vmatmul.msk.f32.gmra.mxu3 %vm131_vm1, %v1870_v32 }
 0xc01   :  { %v1912_v24 = vpop.f32.mrf.mxu3 }
 0xc02   :  { %v5651_v49 = vadd.f32 %v1912_v24, %v1876_v39 }
 0xc04   :  { %1966 = vrot.lane.b32.xlu2 %v5651_v49, %s4518_s29  ;;  %v1930_v25 = vsel %vm119_vm12, %v5651_v49, 0.0  ;;  %v2138_v30 = vsel %vm4805_vm15, %v5651_v49, 0.0  ;;  %v2438_v19 = vsel %vm4942_vm0, %v5651_v49, 0.0 }
 0xc26   :  { %v1915_v0 = vpop.f32.mrf.mxu3 }
 0xc27   :  { %v5655_v9 = vadd.f32 %v1915_v0, %v1876_v39 }
 0xc29   :  { %1968 = vrot.lane.b32.xlu0 %v5655_v9, %s4518_s29  ;;  %v1931_v47 = vsel %vm119_vm12, %v5655_v9, 0.0  ;;  %v2139_v62 = vsel %vm4805_vm15, %v5655_v9, 0.0 }
 0xc2f   :  { %v1918_v11 = vpop.f32.mrf.mxu3 }
 0xc30   :  { %v5659_v21 = vadd.f32 %v1918_v11, %v1876_v39 }
 0xc32   :  { %1970 = vrot.lane.b32.xlu1 %v5659_v21, %s4518_s29  ;;  %v1932_v13 = vsel %vm119_vm12, %v5659_v21, 0.0  ;;  %v2140_v18 = vsel %vm4805_vm15, %v5659_v21, 0.0 }
 0xc38   :  { %v1921_v50 = vpop.f32.mrf.mxu3 }
 0xc39   :  { %v5663_v14 = vadd.f32 %v1921_v50, %v1876_v39 }
 0xc3b   :  { %2013 = vrot.lane.b32.xlu2 %v5663_v14, %s4518_s29  ;;  %v1933_v27 = vsel %vm119_vm12, %v5663_v14, 0.0  ;;  %v2141_v48 = vsel %vm4805_vm15, %v5663_v14, 0.0 }
 0xc5e   :  { %v5687_v37 = vpop.permute.xlu2 %1966 }
 0xc71   :  { %v1924_v2 = vpop.f32.mrf.mxu3 }
 0xc72   :  { %v5667_v5 = vadd.f32 %v1924_v2, %v1876_v39 }
 0xc74   :  { %2015 = vrot.lane.b32.xlu1 %v5667_v5, %s4518_s29  ;;  %v1934_v40 = vsel %vm119_vm12, %v5667_v5, 0.0  ;;  %v2142_v23 = vsel %vm4805_vm15, %v5667_v5, 0.0 }
 0xc79   :  { %v1927_v58 = vpop.f32.mrf.mxu3 }
 0xc7a   :  { %v5671_v36 = vadd.f32 %v1927_v58, %v1876_v39 }
 0xc7c   :  { %2017 = vrot.lane.b32.xlu0 %v5671_v36, %s4518_s29  ;;  %v1935_v53 = vsel %vm119_vm12, %v5671_v36, 0.0  ;;  %v2143_v6 = vsel %vm4805_vm15, %v5671_v36, 0.0 }
 0xc95   :  { %v5729_v1 = vpop.permute.xlu2 %2013 }
 0xc9b   :  { %v5681_v43 = vpop.permute.xlu0 %1968 }
 0xca4   :  { %v5675_v29 = vpop.permute.xlu1 %1970 }
 0xca5   :  { %4037 = vmatpush.xpose.msk.msrb.mxu1 %vm131_vm1, %v5675_v29  ;;  %4049 = vmatpush.xpose.msk.msrb.mxu2 %vm131_vm1, %v5675_v29 }
 0xca9   :  { %4038 = vmatpush.xpose.msk.msrb.mxu1 %vm131_vm1, %v5681_v43  ;;  %4050 = vmatpush.xpose.msk.msrb.mxu2 %vm131_vm1, %v5681_v43 }
 0xcad   :  { %4039 = vmatpush.xpose.msk.msrb.mxu1 %vm131_vm1, %v5687_v37  ;;  %4051 = vmatpush.xpose.msk.msrb.mxu2 %vm131_vm1, %v5687_v37 }
 0xcb0   :  { %4040 = vmatmul.msk.f32.vlgmr.msrb.gmra.mxu1 %vm131_vm1, %v1930_v25  ;;  %4052 = vmatmul.msk.f32.vlgmr.msrb.gmra.mxu2 %vm131_vm1, %v2138_v30 }
 0xcb8   :  { %4041 = vmatmul.msk.f32.gmra.mxu1 %vm131_vm1, %v1931_v47  ;;  %4053 = vmatmul.msk.f32.gmra.mxu2 %vm131_vm1, %v2139_v62 }
 0xcc0   :  { %4042 = vmatmul.msk.f32.gmra.mxu1 %vm131_vm1, %v1932_v13  ;;  %4054 = vmatmul.msk.f32.gmra.mxu2 %vm131_vm1, %v2140_v18 }
 0xce6   :  { %v5723_v22 = vpop.permute.xlu1 %2015 }
 0xcee   :  { %v5717_v61 = vpop.permute.xlu0 %2017 }
 0xcef   :  { %4043 = vmatpush.xpose.msk.msrb.mxu0 %vm131_vm1, %v5717_v61  ;;  %4055 = vmatpush.xpose.msk.msrb.mxu3 %vm131_vm1, %v5717_v61 }
 0xcf3   :  { %4044 = vmatpush.xpose.msk.msrb.mxu0 %vm131_vm1, %v5723_v22  ;;  %4056 = vmatpush.xpose.msk.msrb.mxu3 %vm131_vm1, %v5723_v22 }
 0xcf7   :  { %4045 = vmatpush.xpose.msk.msrb.mxu0 %vm131_vm1, %v5729_v1  ;;  %4057 = vmatpush.xpose.msk.msrb.mxu3 %vm131_vm1, %v5729_v1 }
 0xcfa   :  { %4046 = vmatmul.msk.f32.vlgmr.msrb.gmra.mxu0 %vm131_vm1, %v1933_v27  ;;  %4058 = vmatmul.msk.f32.vlgmr.msrb.gmra.mxu3 %vm131_vm1, %v2141_v48 }
 0xd02   :  { %4047 = vmatmul.msk.f32.gmra.mxu0 %vm131_vm1, %v1934_v40  ;;  %4059 = vmatmul.msk.f32.gmra.mxu3 %vm131_vm1, %v2142_v23 }
 0xd0a   :  { %4048 = vmatmul.msk.f32.gmra.mxu0 %vm131_vm1, %v1935_v53  ;;  %4060 = vmatmul.msk.f32.gmra.mxu3 %vm131_vm1, %v2143_v6 }
 0xd2d   :  { %v2004_v6 = vpop.f32.mrf.mxu1 }
 0xd33   :  { %v2176_v59 = vpop.f32.mrf.mxu2 }
 0xd34   :  { %v2220_v57 = vmul.f32 0.35355338, %v2176_v59 }
 0xd35   :  { %v2007_v59 = vpop.f32.mrf.mxu1 }
 0xd36   :  { %v2226_v45 = vadd.f32 %v2220_v57, %v4842_v20 }
 0xd38   :  { %v2232_v35 = vsel %vm487_vm11, %v2226_v45, -inf }
 0xd39   :  { %2233 = vmax.xlane.f32.xlu0 %v2232_v35 }
 0xd3b   :  { %v2179_v38 = vpop.f32.mrf.mxu2 }
 0xd3c   :  { %v2221_v12 = vmul.f32 0.35355338, %v2179_v38 }
 0xd3d   :  { %v2010_v57 = vpop.f32.mrf.mxu1 }
 0xd3e   :  { %v2227_v52 = vadd.f32 %v2221_v12, %v4842_v20 }
 0xd40   :  { %v2235_v46 = vsel %vm487_vm11, %v2227_v52, -inf }
 0xd41   :  { %2236 = vmax.xlane.f32.xlu1 %v2235_v46 }
 0xd43   :  { %v2182_v26 = vpop.f32.mrf.mxu2 }
 0xd44   :  { %v2222_v10 = vmul.f32 0.35355338, %v2182_v26 }
 0xd46   :  { %v2228_v28 = vadd.f32 %v2222_v10, %v4842_v20 }
 0xd48   :  { %v2238_v33 = vsel %vm487_vm11, %v2228_v28, -inf }
 0xd49   :  { %2239 = vmax.xlane.f32.xlu2 %v2238_v33 }
 0xd61   :  { %1944 = vrot.lane.b32.xlu2 %v5655_v9, %s4520_s30 }
 0xd77   :  { %v2051_v26 = vpop.f32.mrf.mxu0 }
 0xd7d   :  { %v2211_v41 = vpop.f32.mrf.mxu3 }
 0xd7e   :  { %v2223_v58 = vmul.f32 0.35355338, %v2211_v41 }
 0xd80   :  { %v2229_v62 = vadd.f32 %v2223_v58, %v4842_v20 }
 0xd82   :  { %v2241_v27 = vsel %vm487_vm11, %v2229_v62, -inf }
 0xd85   :  { %v2214_v60 = vpop.f32.mrf.mxu3 }
 0xd86   :  { %v2224_v3 = vmul.f32 0.35355338, %v2214_v60 }
 0xd88   :  { %v2230_v16 = vadd.f32 %v2224_v3, %v4842_v20  ;;  %v2054_v3 = vpop.f32.mrf.mxu0 }
 0xd8a   :  { %v2244_v51 = vsel %vm487_vm11, %v2230_v16, -inf }
 0xd8b   :  { %2245 = vmax.xlane.f32.xlu1 %v2244_v51  ;;  %v2064_v51 = vmul.f32 0.35355338, %v2054_v3 }
 0xd8d   :  { %v2217_v17 = vpop.f32.mrf.mxu3 }
 0xd8e   :  { %v2225_v34 = vmul.f32 0.35355338, %v2217_v17 }
 0xd90   :  { %v5770_v42 = vadd.f32 %v2225_v34, %v4842_v20  ;;  %v5829_v34 = vadd.f32 %v2064_v51, %v4842_v20 }
 0xd92   :  { %v2247_v32 = vsel %vm487_vm11, %v5770_v42, -inf }
 0xd93   :  { %2248 = vmax.xlane.f32.xlu2 %v2247_v32  ;;  %v2057_v32 = vpop.f32.mrf.mxu0 }
 0xda4   :  { %1946 = vrot.lane.b32.xlu1 %v5659_v21, %s4520_s30 }
 0xdac   :  { %v2234_v39 = vpop.xlane.xlu0 %2233 }
 0xdad   :  { %v2250_v24 = vsub.f32 %v2226_v45, %v2234_v39  ;;  %v2062_v45 = vmul.f32 0.35355338, %v2010_v57  ;;  %v2065_v39 = vmul.f32 0.35355338, %v2057_v32 }
 0xdaf   :  { %v2256_v0 = vmul.f32 1.442695, %v2250_v24  ;;  %v5799_v12 = vadd.f32 %v2062_v45, %v4842_v20  ;;  %v2084_v24 = vsel %vm487_vm11, %v5829_v34, -inf  ;;  %v2060_v45 = vmul.f32 0.35355338, %v2004_v6 }
 0xdb1   :  { %4335 = vpow2.f32 %v2256_v0  ;;  %v2078_v46 = vsel %vm487_vm11, %v5799_v12, -inf  ;;  %v5834_v0 = vadd.f32 %v2065_v39, %v4842_v20  ;;  %v2676_v39 = vsel %vm5014_vm4, %v5659_v21, 0.0 }
 0xdb4   :  { %v2237_v11 = vpop.xlane.xlu1 %2236 }
 0xdb5   :  { %v2251_v2 = vsub.f32 %v2227_v52, %v2237_v11 }
 0xdb7   :  { %v5776_v50 = vpop.eup %4335  ;;  %v2258_v30 = vmul.f32 1.442695, %v2251_v2  ;;  %v2087_v2 = vsel %vm487_vm11, %v5834_v0, -inf }
 0xdb8   :  { %v2268_v25 = vsel %vm487_vm11, %v5776_v50, 0.0 }
 0xdb9   :  { %2269 = vadd.xlane.f32.xlu0 %v2268_v25  ;;  %4337 = vpow2.f32 %v2258_v30 }
 0xdbc   :  { %v2240_v47 = vpop.xlane.xlu2 %2239 }
 0xdbd   :  { %v2252_v13 = vsub.f32 %v2228_v28, %v2240_v47  ;;  %v2063_v28 = vmul.f32 0.35355338, %v2051_v26 }
 0xdbf   :  { %v2260_v18 = vmul.f32 1.442695, %v2252_v13  ;;  %v5782_v48 = vpop.eup %4337 }
 0xdc0   :  { %v2271_v53 = vsel %vm487_vm11, %v5782_v48, 0.0 }
 0xdc1   :  { %4339 = vpow2.f32 %v2260_v18  ;;  %2242 = vmax.xlane.f32.xlu0 %v2241_v27 }
 0xdc4   :  { %v5812_v60 = vpop.permute.xlu2 %1944 }
 0xdc7   :  { %v5784_v40 = vpop.eup %4339 }
 0xdc8   :  { %v2274_v23 = vsel %vm487_vm11, %v5784_v40, 0.0 }
 0xdc9   :  { %2275 = vadd.xlane.f32.xlu2 %v2274_v23  ;;  %2272 = vadd.xlane.f32.xlu0 %v2271_v53 }
 0xddd   :  { %1942 = vrot.lane.b32.xlu0 %v5651_v49, %s4520_s30 }
 0xde1   :  { %1948 = vrot.lane.b32.xlu2 %v5663_v14, %s4520_s30 }
 0xde5   :  { %1952 = vrot.lane.b32.xlu0 %v5671_v36, %s4520_s30 }
 0xded   :  { %1950 = vrot.lane.b32.xlu0 %v5667_v5, %s4520_s30 }
 0xdfe   :  { %v2246_v35 = vpop.xlane.xlu1 %2245 }
 0xdff   :  { %v2254_v38 = vsub.f32 %v2230_v16, %v2246_v35  ;;  %v5824_v16 = vadd.f32 %v2063_v28, %v4842_v20  ;;  %v5848_v35 = vadd.f32 %v2060_v45, %v4842_v20 }
 0xe01   :  { %v2264_v52 = vmul.f32 1.442695, %v2254_v38  ;;  %v2081_v17 = vsel %vm487_vm11, %v5824_v16, -inf  ;;  %v2072_v6 = vsel %vm487_vm11, %v5848_v35, -inf }
 0xe03   :  { %4341 = vpow2.f32 %v2264_v52 }
 0xe06   :  { %v2249_v58 = vpop.xlane.xlu2 %2248 }
 0xe07   :  { %v2255_v47 = vsub.f32 %v5770_v42, %v2249_v58 }
 0xe09   :  { %v5803_v10 = vpop.eup %4341  ;;  %v2266_v18 = vmul.f32 1.442695, %v2255_v47 }
 0xe0a   :  { %2079 = vmax.xlane.f32.xlu2 %v2078_v46  ;;  %v2280_v41 = vsel %vm487_vm11, %v5803_v10, 0.0  ;;  %v2061_v46 = vmul.f32 0.35355338, %v2007_v59 }
 0xe0c   :  { %v5871_v26 = vadd.f32 %v2061_v46, %v4842_v20  ;;  %v2442_v46 = vsel %vm4942_vm0, %v5667_v5, 0.0 }
 0xe0e   :  { %v2075_v3 = vsel %vm487_vm11, %v5871_v26, -inf }
 0xe16   :  { %v5805_v33 = vpop.permute.xlu1 %1946 }
 0xe17   :  { %2281 = vadd.xlane.f32.xlu0 %v2280_v41  ;;  %4061 = vmatpush.msk.msra.mxu1 %vm4805_vm15, %v5805_v33 }
 0xe18   :  { %4073 = vmatpush.msk.msra.mxu2 %vm119_vm12, %v5805_v33 }
 0xe19   :  { %4062 = vmatpush.msk.msra.mxu1 %vm4805_vm15, %v5812_v60 }
 0xe1a   :  { %4074 = vmatpush.msk.msra.mxu2 %vm119_vm12, %v5812_v60 }
 0xe1f   :  { %2082 = vmax.xlane.f32.xlu0 %v2081_v17 }
 0xe27   :  { %2085 = vmax.xlane.f32.xlu0 %v2084_v24 }
 0xe2c   :  { %v2270_v11 = vpop.xlane.xlu0 %2269 }
 0xe2f   :  { %2088 = vmax.xlane.f32.xlu0 %v2087_v2 }
 0xe34   :  { %v2243_v25 = vpop.xlane.xlu0 %2242 }
 0xe35   :  { %v2253_v30 = vsub.f32 %v2229_v62, %v2243_v25 }
 0xe37   :  { %v2262_v13 = vmul.f32 1.442695, %v2253_v30 }
 0xe39   :  { %4343 = vpow2.f32 %v2262_v13 }
 0xe3a   :  { %4345 = vpow2.f32 %v2266_v18 }
 0xe3b   :  { %4347 = vrcp.f32 %v2270_v11 }
 0xe3c   :  { %v2273_v57 = vpop.xlane.xlu0 %2272 }
 0xe3d   :  { %4349 = vrcp.f32 %v2273_v57 }
 0xe3f   :  { %v5839_v27 = vpop.eup %4343 }
 0xe40   :  { %v2277_v23 = vsel %vm487_vm11, %v5839_v27, 0.0  ;;  %v5843_v53 = vpop.eup %4345 }
 0xe41   :  { %2278 = vadd.xlane.f32.xlu1 %v2277_v23  ;;  %v2283_v62 = vsel %vm487_vm11, %v5843_v53, 0.0  ;;  %v4348_v42 = vpop.eup %4347 }
 0xe42   :  { %v2292_v38 = vmul.f32 %v4348_v42, %v5776_v50  ;;  %v2276_v50 = vpop.xlane.xlu2 %2275  ;;  %v2441_v42 = vsel %vm4942_vm0, %v5663_v14, 0.0 }
 0xe43   :  { %v4350_v59 = vpop.eup %4349  ;;  %4351 = vrcp.f32 %v2276_v50 }
 0xe44   :  { %v2293_v41 = vmul.f32 %v4350_v59, %v5782_v48  ;;  %v2443_v59 = vsel %vm4942_vm0, %v5671_v36, 0.0 }
 0xe49   :  { %2284 = vadd.xlane.f32.xlu1 %v2283_v62  ;;  %v4352_v48 = vpop.eup %4351 }
 0xe4a   :  { %v2294_v17 = vmul.f32 %v4352_v48, %v5784_v40  ;;  %v5905_v32 = vpop.permute.xlu2 %1948  ;;  %v2675_v40 = vsel %vm5014_vm4, %v5655_v9, 0.0 }
 0xe4f   :  { %v5851_v52 = vpop.permute.xlu0 %1942 }
 0xe50   :  { %4063 = vmatpush.msk.msra.mxu1 %vm4805_vm15, %v5851_v52  ;;  %4075 = vmatpush.msk.msra.mxu2 %vm119_vm12, %v5851_v52 }
 0xe51   :  { %2073 = vmax.xlane.f32.xlu1 %v2072_v6  ;;  %4064 = vmatmul.msk.f32.vlgmr.msra.gmra.mxu1 %vm487_vm11, %v2292_v38 }
 0xe52   :  { %4085 = vmatpush.xpose.msk.msrb.mxu1 %vm131_vm1, %v5675_v29  ;;  %4097 = vmatpush.msk.msrb.mxu2 %vm4942_vm0, %v5805_v33 }
 0xe54   :  { %4098 = vmatpush.msk.msrb.mxu2 %vm4942_vm0, %v5812_v60 }
 0xe56   :  { %4086 = vmatpush.xpose.msk.msrb.mxu1 %vm131_vm1, %v5681_v43  ;;  %4099 = vmatpush.msk.msrb.mxu2 %vm4942_vm0, %v5851_v52 }
 0xe57   :  { %v5878_v28 = vpop.permute.xlu0 %1952 }
 0xe58   :  { %4067 = vmatpush.msk.msra.mxu0 %vm4805_vm15, %v5878_v28  ;;  %4079 = vmatpush.msk.msra.mxu3 %vm119_vm12, %v5878_v28 }
 0xe59   :  { %2076 = vmax.xlane.f32.xlu1 %v2075_v3  ;;  %4065 = vmatmul.msk.f32.gmra.mxu1 %vm487_vm11, %v2293_v41 }
 0xe5a   :  { %4087 = vmatpush.xpose.msk.msrb.mxu1 %vm131_vm1, %v5687_v37 }
 0xe5e   :  { %4109 = vmatpush.xpose.msk.msra.mxu1 %vm131_vm1, %v5675_v29  ;;  %v2439_v29 = vsel %vm4942_vm0, %v5655_v9, 0.0 }
 0xe5f   :  { %v5896_v51 = vpop.permute.xlu0 %1950 }
 0xe60   :  { %4068 = vmatpush.msk.msra.mxu0 %vm4805_vm15, %v5896_v51  ;;  %4080 = vmatpush.msk.msra.mxu3 %vm119_vm12, %v5896_v51 }
 0xe61   :  { %4066 = vmatmul.msk.f32.gmra.mxu1 %vm487_vm11, %v2294_v17  ;;  %v2677_v17 = vsel %vm5014_vm4, %v5663_v14, 0.0 }
 0xe62   :  { %4110 = vmatpush.xpose.msk.msra.mxu1 %vm131_vm1, %v5681_v43  ;;  %4069 = vmatpush.msk.msra.mxu0 %vm4805_vm15, %v5905_v32  ;;  %v2440_v43 = vsel %vm4942_vm0, %v5659_v21, 0.0 }
 0xe63   :  { %4081 = vmatpush.msk.msra.mxu3 %vm119_vm12, %v5905_v32 }
 0xe64   :  { %4091 = vmatpush.xpose.msk.msrb.mxu0 %vm131_vm1, %v5717_v61 }
 0xe65   :  { %4103 = vmatpush.msk.msrb.mxu3 %vm4942_vm0, %v5878_v28 }
 0xe66   :  { %4111 = vmatpush.xpose.msk.msra.mxu1 %vm131_vm1, %v5687_v37  ;;  %v2674_v37 = vsel %vm5014_vm4, %v5651_v49, 0.0 }
 0xe67   :  { %4104 = vmatpush.msk.msrb.mxu3 %vm4942_vm0, %v5896_v51 }
 0xe68   :  { %4092 = vmatpush.xpose.msk.msrb.mxu0 %vm131_vm1, %v5723_v22 }
 0xe69   :  { %4105 = vmatpush.msk.msrb.mxu3 %vm4942_vm0, %v5905_v32  ;;  %4088 = vmatmul.msk.f32.vlgmr.msrb.gmra.mxu1 %vm131_vm1, %v2438_v19 }
 0xe6c   :  { %4093 = vmatpush.xpose.msk.msrb.mxu0 %vm131_vm1, %v5729_v1 }
 0xe71   :  { %4089 = vmatmul.msk.f32.gmra.mxu1 %vm131_vm1, %v2439_v29 }
 0xe79   :  { %4090 = vmatmul.msk.f32.gmra.mxu1 %vm131_vm1, %v2440_v43 }
 0xe7d   :  { %v2080_v18 = vpop.xlane.xlu2 %2079 }
 0xe7e   :  { %v2092_v57 = vsub.f32 %v5799_v12, %v2080_v18 }
 0xe81   :  { %4112 = vmatmul.msk.f32.vlgmr.msra.gmra.mxu1 %vm131_vm1, %v2674_v37  ;;  %v2678_v37 = vsel %vm5014_vm4, %v5667_v5, 0.0 }
 0xe89   :  { %4113 = vmatmul.msk.f32.gmra.mxu1 %vm131_vm1, %v2675_v40 }
 0xe8a   :  { %v2282_v11 = vpop.xlane.xlu0 %2281 }
 0xe91   :  { %4114 = vmatmul.msk.f32.gmra.mxu1 %vm131_vm1, %v2676_v39 }
 0xeb4   :  { %v2279_v24 = vpop.xlane.xlu1 %2278 }
 0xeb5   :  { %4353 = vrcp.f32 %v2279_v24 }
 0xeb6   :  { %4355 = vrcp.f32 %v2282_v11  ;;  %v2679_v11 = vsel %vm5014_vm4, %v5671_v36, 0.0 }
 0xebb   :  { %v4354_v2 = vpop.eup %4353 }
 0xebc   :  { %v2295_v49 = vmul.f32 %v4354_v2, %v5839_v27  ;;  %v2285_v58 = vpop.xlane.xlu1 %2284  ;;  %v4356_v9 = vpop.eup %4355 }
 0xebd   :  { %4357 = vrcp.f32 %v2285_v58  ;;  %v2296_v25 = vmul.f32 %v4356_v9, %v5803_v10  ;;  %v2083_v9 = vpop.xlane.xlu0 %2082 }
 0xebe   :  { %4070 = vmatmul.msk.f32.vlgmr.msra.gmra.mxu0 %vm487_vm11, %v2295_v49 }
 0xebf   :  { %4115 = vmatpush.xpose.msk.msra.mxu0 %vm131_vm1, %v5717_v61 }
 0xec3   :  { %4116 = vmatpush.xpose.msk.msra.mxu0 %vm131_vm1, %v5723_v22  ;;  %v4358_v13 = vpop.eup %4357 }
 0xec4   :  { %v2074_v21 = vpop.xlane.xlu1 %2073  ;;  %v2297_v27 = vmul.f32 %v4358_v13, %v5843_v53 }
 0xec5   :  { %v2090_v30 = vsub.f32 %v5848_v35, %v2074_v21  ;;  %v2086_v21 = vpop.xlane.xlu0 %2085 }
 0xec6   :  { %4071 = vmatmul.msk.f32.gmra.mxu0 %vm487_vm11, %v2296_v25 }
 0xec7   :  { %v2096_v47 = vmul.f32 1.442695, %v2090_v30  ;;  %4117 = vmatpush.xpose.msk.msra.mxu0 %vm131_vm1, %v5729_v1  ;;  %v2100_v1 = vmul.f32 1.442695, %v2092_v57 }
 0xec9   :  { %4359 = vpow2.f32 %v2096_v47 }
 0xecc   :  { %v2077_v61 = vpop.xlane.xlu1 %2076 }
 0xecd   :  { %v2091_v23 = vsub.f32 %v5871_v26, %v2077_v61  ;;  %v2089_v30 = vpop.xlane.xlu0 %2088 }
 0xece   :  { %v5968_v22 = vpop.f32.mrf.mxu1  ;;  %4072 = vmatmul.msk.f32.gmra.mxu0 %vm487_vm11, %v2297_v27 }
 0xecf   :  { %v4360_v10 = vpop.eup %4359  ;;  %v2098_v45 = vmul.f32 1.442695, %v2091_v23 }
 0xed0   :  { %v2108_v62 = vsel %vm487_vm11, %v4360_v10, 0.0 }
 0xed1   :  { %4361 = vpow2.f32 %v2098_v45  ;;  %2109 = vadd.xlane.f32.xlu0 %v2108_v62 }
 0xed2   :  { %4363 = vpow2.f32 %v2100_v1 }
 0xed6   :  { %v5976_v53 = vpop.f32.mrf.mxu1  ;;  %4094 = vmatmul.msk.f32.vlgmr.msrb.gmra.mxu0 %vm131_vm1, %v2441_v42 }
 0xed7   :  { %v4362_v35 = vpop.eup %4361 }
 0xed8   :  { %v2111_v38 = vsel %vm487_vm11, %v4362_v35, 0.0  ;;  %v5980_v12 = vpop.eup %4363 }
 0xed9   :  { %2112 = vadd.xlane.f32.xlu2 %v2111_v38  ;;  %v2114_v50 = vsel %vm487_vm11, %v5980_v12, 0.0 }
 0xede   :  { %v5985_v6 = vpop.f32.mrf.mxu1  ;;  %4095 = vmatmul.msk.f32.gmra.mxu0 %vm131_vm1, %v2442_v46 }
 0xee1   :  { %2115 = vadd.xlane.f32.xlu2 %v2114_v50 }
 0xee6   :  { %v2476_v26 = vpop.f32.mrf.mxu1  ;;  %4096 = vmatmul.msk.f32.gmra.mxu0 %vm131_vm1, %v2443_v59 }
 0xee7   :  { %v2520_v41 = vmul.f32 0.35355338, %v2476_v26 }
 0xee9   :  { %v5995_v3 = vadd.f32 %v2520_v41, %v4842_v20  ;;  %v2093_v41 = vsub.f32 %v5824_v16, %v2083_v9 }
 0xeeb   :  { %v2532_v48 = vsel %vm487_vm11, %v5995_v3, -inf }
 0xeec   :  { %2533 = vmax.xlane.f32.xlu1 %v2532_v48 }
 0xeee   :  { %v2479_v19 = vpop.f32.mrf.mxu1  ;;  %4118 = vmatmul.msk.f32.vlgmr.msra.gmra.mxu0 %vm131_vm1, %v2677_v17 }
 0xeef   :  { %v2521_v15 = vmul.f32 0.35355338, %v2479_v19 }
 0xef1   :  { %v6004_v29 = vadd.f32 %v2521_v15, %v4842_v20 }
 0xef3   :  { %v2535_v43 = vsel %vm487_vm11, %v6004_v29, -inf }
 0xef4   :  { %2536 = vmax.xlane.f32.xlu1 %v2535_v43  ;;  %v2095_v43 = vsub.f32 %v5834_v0, %v2089_v30 }
 0xef6   :  { %v2482_v40 = vpop.f32.mrf.mxu1  ;;  %4119 = vmatmul.msk.f32.gmra.mxu0 %vm131_vm1, %v2678_v37 }
 0xef7   :  { %v2522_v39 = vmul.f32 0.35355338, %v2482_v40  ;;  %v2102_v40 = vmul.f32 1.442695, %v2093_v41 }
 0xef9   :  { %v6013_v14 = vadd.f32 %v2522_v39, %v4842_v20 }
 0xefb   :  { %v2538_v24 = vsel %vm487_vm11, %v6013_v14, -inf }
 0xefc   :  { %2539 = vmax.xlane.f32.xlu1 %v2538_v24 }
 0xefe   :  { %v2712_v2 = vpop.f32.mrf.mxu1  ;;  %4120 = vmatmul.msk.f32.gmra.mxu0 %vm131_vm1, %v2679_v11  ;;  %v2106_v11 = vmul.f32 1.442695, %v2095_v43 }
 0xeff   :  { %v2756_v49 = vmul.f32 0.35355338, %v2712_v2 }
 0xf01   :  { %v6022_v5 = vadd.f32 %v2756_v49, %v4842_v20 }
 0xf03   :  { %v2768_v58 = vsel %vm487_vm11, %v6022_v5, -inf }
 0xf04   :  { %2769 = vmax.xlane.f32.xlu1 %v2768_v58 }
 0xf06   :  { %v2715_v57 = vpop.f32.mrf.mxu1 }
 0xf3b   :  { %v6026_v25 = vpop.f32.mrf.mxu0 }
 0xf43   :  { %v6028_v47 = vpop.f32.mrf.mxu0 }
 0xf44   :  { %v2110_v13 = vpop.xlane.xlu0 %2109 }
 0xf45   :  { %4365 = vrcp.f32 %v2110_v13 }
 0xf4b   :  { %v4366_v36 = vpop.eup %4365  ;;  %v6030_v18 = vpop.f32.mrf.mxu0 }
 0xf4c   :  { %v2132_v61 = vmul.f32 %v4366_v36, %v4360_v10  ;;  %v2113_v27 = vpop.xlane.xlu2 %2112 }
 0xf4d   :  { %4367 = vrcp.f32 %v2113_v27 }
 0xf4e   :  { %4076 = vmatmul.msk.f32.vlgmr.msra.gmra.mxu2 %vm487_vm11, %v2132_v61 }
 0xf4f   :  { %4121 = vmatpush.msk.msra.mxu2 %vm5014_vm4, %v5805_v33  ;;  %v2757_v33 = vmul.f32 0.35355338, %v2715_v57 }
 0xf51   :  { %4122 = vmatpush.msk.msra.mxu2 %vm5014_vm4, %v5812_v60  ;;  %v6050_v59 = vadd.f32 %v2757_v33, %v4842_v20 }
 0xf53   :  { %v4368_v23 = vpop.eup %4367  ;;  %4123 = vmatpush.msk.msra.mxu2 %vm5014_vm4, %v5851_v52  ;;  %v2511_v45 = vpop.f32.mrf.mxu0  ;;  %v2771_v15 = vsel %vm487_vm11, %v6050_v59, -inf }
 0xf54   :  { %v2523_v10 = vmul.f32 0.35355338, %v2511_v45  ;;  %v2116_v62 = vpop.xlane.xlu2 %2115  ;;  %v2133_v1 = vmul.f32 %v4368_v23, %v4362_v35  ;;  %v2718_v35 = vpop.f32.mrf.mxu1 }
 0xf55   :  { %4369 = vrcp.f32 %v2116_v62  ;;  %v2758_v17 = vmul.f32 0.35355338, %v2718_v35 }
 0xf56   :  { %4077 = vmatmul.msk.f32.gmra.mxu2 %vm487_vm11, %v2133_v1  ;;  %v6044_v42 = vadd.f32 %v2523_v10, %v4842_v20 }
 0xf57   :  { %v6064_v24 = vadd.f32 %v2758_v17, %v4842_v20 }
 0xf58   :  { %v2541_v60 = vsel %vm487_vm11, %v6044_v42, -inf }
 0xf59   :  { %2542 = vmax.xlane.f32.xlu0 %v2541_v60  ;;  %v2774_v0 = vsel %vm487_vm11, %v6064_v24, -inf }
 0xf5b   :  { %v4370_v38 = vpop.eup %4369  ;;  %v2514_v46 = vpop.f32.mrf.mxu0 }
 0xf5c   :  { %v2524_v50 = vmul.f32 0.35355338, %v2514_v46  ;;  %v2134_v52 = vmul.f32 %v4370_v38, %v5980_v12 }
 0xf5e   :  { %4078 = vmatmul.msk.f32.gmra.mxu2 %vm487_vm11, %v2134_v52  ;;  %v6054_v26 = vadd.f32 %v2524_v50, %v4842_v20 }
 0xf5f   :  { %v2534_v48 = vpop.xlane.xlu1 %2533 }
 0xf60   :  { %v2550_v19 = vsub.f32 %v5995_v3, %v2534_v48  ;;  %v2544_v12 = vsel %vm487_vm11, %v6054_v26, -inf  ;;  %v2094_v3 = vsub.f32 %v5829_v34, %v2086_v21 }
 0xf61   :  { %2772 = vmax.xlane.f32.xlu0 %v2771_v15  ;;  %2545 = vmax.xlane.f32.xlu1 %v2544_v12 }
 0xf62   :  { %v2556_v37 = vmul.f32 1.442695, %v2550_v19  ;;  %v2104_v13 = vmul.f32 1.442695, %v2094_v3 }
 0xf63   :  { %v2517_v39 = vpop.f32.mrf.mxu0 }
 0xf64   :  { %4371 = vpow2.f32 %v2556_v37  ;;  %v2525_v16 = vmul.f32 0.35355338, %v2517_v39 }
 0xf65   :  { %4373 = vpow2.f32 %v2102_v40 }
 0xf66   :  { %v6068_v2 = vadd.f32 %v2525_v16, %v4842_v20  ;;  %4375 = vpow2.f32 %v2106_v11 }
 0xf67   :  { %v2537_v49 = vpop.xlane.xlu1 %2536  ;;  %4377 = vpow2.f32 %v2104_v13 }
 0xf68   :  { %v2551_v58 = vsub.f32 %v6004_v29, %v2537_v49  ;;  %v2547_v9 = vsel %vm487_vm11, %v6068_v2, -inf }
 0xf69   :  { %2775 = vmax.xlane.f32.xlu0 %v2774_v0  ;;  %2548 = vmax.xlane.f32.xlu1 %v2547_v9 }
 0xf6a   :  { %v6075_v30 = vpop.eup %4371  ;;  %v2558_v34 = vmul.f32 1.442695, %v2551_v58 }
 0xf6b   :  { %v2747_v21 = vpop.f32.mrf.mxu0  ;;  %v2568_v36 = vsel %vm487_vm11, %v6075_v30, 0.0  ;;  %v6079_v29 = vpop.eup %4373 }
 0xf6c   :  { %v2759_v61 = vmul.f32 0.35355338, %v2747_v21  ;;  %2569 = vadd.xlane.f32.xlu2 %v2568_v36  ;;  %4379 = vpow2.f32 %v2558_v34  ;;  %v6084_v57 = vpop.eup %4375  ;;  %v2117_v62 = vsel %vm487_vm11, %v6079_v29, 0.0 }
 0xf6d   :  { %v2123_v33 = vsel %vm487_vm11, %v6084_v57, 0.0  ;;  %v6093_v60 = vpop.eup %4377 }
 0xf6e   :  { %v6082_v27 = vadd.f32 %v2759_v61, %v4842_v20  ;;  %v2120_v52 = vsel %vm487_vm11, %v6093_v60, 0.0 }
 0xf6f   :  { %v2540_v23 = vpop.xlane.xlu1 %2539 }
 0xf70   :  { %v2552_v45 = vsub.f32 %v6013_v14, %v2540_v23  ;;  %v2777_v10 = vsel %vm487_vm11, %v6082_v27, -inf }
 0xf71   :  { %2778 = vmax.xlane.f32.xlu1 %v2777_v10  ;;  %2118 = vadd.xlane.f32.xlu0 %v2117_v62 }
 0xf72   :  { %v2560_v1 = vmul.f32 1.442695, %v2552_v45  ;;  %v6095_v38 = vpop.eup %4379 }
 0xf73   :  { %v2571_v50 = vsel %vm487_vm11, %v6095_v38, 0.0 }
 0xf74   :  { %2124 = vadd.xlane.f32.xlu2 %v2123_v33  ;;  %4381 = vpow2.f32 %v2560_v1 }
 0xf77   :  { %v2770_v46 = vpop.xlane.xlu1 %2769 }
 0xf78   :  { %v2786_v14 = vsub.f32 %v6022_v5, %v2770_v46 }
 0xf79   :  { %2572 = vadd.xlane.f32.xlu0 %v2571_v50  ;;  %2121 = vadd.xlane.f32.xlu1 %v2120_v52 }
 0xf7a   :  { %v2792_v35 = vmul.f32 1.442695, %v2786_v14  ;;  %v6102_v41 = vpop.eup %4381 }
 0xf7b   :  { %v2574_v48 = vsel %vm487_vm11, %v6102_v41, 0.0 }
 0xf7c   :  { %4383 = vpow2.f32 %v2792_v35 }
 0xf81   :  { %2575 = vadd.xlane.f32.xlu1 %v2574_v48 }
 0xf82   :  { %v6106_v17 = vpop.eup %4383 }
 0xf83   :  { %v2804_v5 = vsel %vm487_vm11, %v6106_v17, 0.0 }
 0xf84   :  { %2805 = vadd.xlane.f32.xlu2 %v2804_v5 }
 0xfcc   :  { %v2543_v19 = vpop.xlane.xlu0 %2542 }
 0xfcd   :  { %v2553_v15 = vsub.f32 %v6044_v42, %v2543_v19 }
 0xfcf   :  { %v2562_v12 = vmul.f32 1.442695, %v2553_v15 }
 0xfd1   :  { %4385 = vpow2.f32 %v2562_v12 }
 0xfd4   :  { %v2546_v43 = vpop.xlane.xlu1 %2545  ;;  %v2773_v37 = vpop.xlane.xlu0 %2772 }
 0xfd5   :  { %v2554_v40 = vsub.f32 %v6054_v26, %v2546_v43  ;;  %v2787_v39 = vsub.f32 %v6050_v59, %v2773_v37 }
 0xfd7   :  { %v6113_v16 = vpop.eup %4385  ;;  %v2564_v3 = vmul.f32 1.442695, %v2554_v40  ;;  %v2794_v11 = vmul.f32 1.442695, %v2787_v39 }
 0xfd8   :  { %v2577_v49 = vsel %vm487_vm11, %v6113_v16, 0.0 }
 0xfd9   :  { %4387 = vpow2.f32 %v2564_v3  ;;  %2578 = vadd.xlane.f32.xlu0 %v2577_v49 }
 0xfda   :  { %4389 = vpow2.f32 %v2794_v11 }
 0xfdc   :  { %v2549_v58 = vpop.xlane.xlu1 %2548  ;;  %v2776_v42 = vpop.xlane.xlu0 %2775 }
 0xfdd   :  { %v2555_v0 = vsub.f32 %v6068_v2, %v2549_v58  ;;  %v2788_v9 = vsub.f32 %v6064_v24, %v2776_v42 }
 0xfdf   :  { %v6119_v13 = vpop.eup %4387  ;;  %v2566_v26 = vmul.f32 1.442695, %v2555_v0  ;;  %v2796_v59 = vmul.f32 1.442695, %v2788_v9  ;;  %v2570_v34 = vpop.xlane.xlu2 %2569 }
 0xfe0   :  { %v6121_v21 = vpop.eup %4389  ;;  %4391 = vrcp.f32 %v2570_v34  ;;  %v2580_v36 = vsel %vm487_vm11, %v6119_v13, 0.0  ;;  %v4135_v34 = vld [vmem:[%s6980_s5 + $0x30] sm:$0xff] }
 0xfe1   :  { %4393 = vpow2.f32 %v2566_v26  ;;  %2581 = vadd.xlane.f32.xlu1 %v2580_v36  ;;  %v2807_v61 = vsel %vm487_vm11, %v6121_v21, 0.0 }
 0xfe2   :  { %4395 = vpow2.f32 %v2796_v59  ;;  %2808 = vadd.xlane.f32.xlu0 %v2807_v61  ;;  %v4136_v59 = vld [vmem:[%s6980_s5 + $0x38] sm:$0xff] }
 0xfe3   :  { %2946 = vmatpush.msrb.mxu1 %v4136_v59 }
 0xfe4   :  { %v2779_v2 = vpop.xlane.xlu1 %2778  ;;  %v2119_v24 = vpop.xlane.xlu0 %2118 }
 0xfe5   :  { %v2789_v23 = vsub.f32 %v6082_v27, %v2779_v2  ;;  %4397 = vrcp.f32 %v2119_v24  ;;  %2947 = vmatpush.msrb.mxu1 %v4135_v34  ;;  %v4134_v2 = vld [vmem:[%s6980_s5 + $0x28] sm:$0xff] }
 0xfe6   :  { %v4392_v45 = vpop.eup %4391 }
 0xfe7   :  { %v6128_v10 = vpop.eup %4393  ;;  %v2592_v62 = vmul.f32 %v4392_v45, %v6075_v30  ;;  %v2798_v1 = vmul.f32 1.442695, %v2789_v23  ;;  %v2125_v48 = vpop.xlane.xlu2 %2124  ;;  %2948 = vmatpush.msrb.mxu1 %v4134_v2  ;;  %v4133_v45 = vld [vmem:[%s6980_s5 + $0x20] sm:$0xff]  ;;  %s3873_s5 = sshll.u32 %s4523_s2, 4  ;;  %s3874_s5 = int_to_ptr.vmem [resolvable:$true] %s3873_s5 }
 0xfe8   :  { %v6131_v33 = vpop.eup %4395  ;;  %v2583_v46 = vsel %vm487_vm11, %v6128_v10, 0.0 }
 0xfe9   :  { %4399 = vpow2.f32 %v2798_v1  ;;  %2584 = vadd.xlane.f32.xlu2 %v2583_v46  ;;  %4100 = vmatmul.msk.f32.vlgmr.msrb.gmra.mxu2 %vm487_vm11, %v2592_v62  ;;  %v2810_v14 = vsel %vm487_vm11, %v6131_v33, 0.0 }
 0xfea   :  { %2811 = vadd.xlane.f32.xlu1 %v2810_v14  ;;  %2949 = vmatpush.msrb.mxu1 %v4133_v45 }
 0xfeb   :  { %v4398_v27 = vpop.eup %4397 }
 0xfec   :  { %v2135_v50 = vmul.f32 %v4398_v27, %v6079_v29  ;;  %v2122_v52 = vpop.xlane.xlu1 %2121  ;;  %v2573_v35 = vpop.xlane.xlu0 %2572 }
 0xfed   :  { %4401 = vrcp.f32 %v2122_v52 }
 0xfee   :  { %4403 = vrcp.f32 %v2573_v35  ;;  %4082 = vmatmul.msk.f32.vlgmr.msra.gmra.mxu3 %vm487_vm11, %v2135_v50 }
 0xfef   :  { %v6140_v30 = vpop.eup %4399  ;;  %4127 = vmatpush.msk.msra.mxu3 %vm5014_vm4, %v5878_v28  ;;  %4405 = vrcp.f32 %v2125_v48 }
 0xff0   :  { %v2813_v5 = vsel %vm487_vm11, %v6140_v30, 0.0 }
 0xff1   :  { %4128 = vmatpush.msk.msra.mxu3 %vm5014_vm4, %v5896_v51  ;;  %2814 = vadd.xlane.f32.xlu0 %v2813_v5 }
 0xff3   :  { %v4402_v29 = vpop.eup %4401  ;;  %4129 = vmatpush.msk.msra.mxu3 %vm5014_vm4, %v5905_v32 }
 0xff4   :  { %v4404_v19 = vpop.eup %4403  ;;  %v2576_v15 = vpop.xlane.xlu1 %2575  ;;  %v2136_v12 = vmul.f32 %v4402_v29, %v6093_v60 }
 0xff5   :  { %4407 = vrcp.f32 %v2576_v15  ;;  %v2593_v28 = vmul.f32 %v4404_v19, %v6095_v38  ;;  %v4406_v43 = vpop.eup %4405 }
 0xff6   :  { %4083 = vmatmul.msk.f32.gmra.mxu3 %vm487_vm11, %v2136_v12  ;;  %v2137_v40 = vmul.f32 %v4406_v43, %v6084_v57  ;;  %v2394_v57 = vpop.f32.mrf.mxu2 }
 0xff7   :  { %4101 = vmatmul.msk.f32.gmra.mxu2 %vm487_vm11, %v2593_v28  ;;  %v2806_v51 = vpop.xlane.xlu2 %2805  ;;  %v2395_v27 = vadd.f32 %v2394_v57, %v5968_v22 }
 0xff8   :  { %4409 = vrcp.f32 %v2806_v51 }
 0xffb   :  { %v4408_v37 = vpop.eup %4407 }
 0xffc   :  { %v2594_v63 = vmul.f32 %v4408_v37, %v6102_v41 }
 0xffe   :  { %4084 = vmatmul.msk.f32.gmra.mxu3 %vm487_vm11, %v2137_v40  ;;  %v4410_v32 = vpop.eup %4409 }
 0xfff   :  { %4102 = vmatmul.msk.f32.gmra.mxu2 %vm487_vm11, %v2594_v63  ;;  %v2828_v60 = vmul.f32 %v4410_v32, %v6106_v17 }
0x1007   :  { %4124 = vmatmul.msk.f32.vlgmr.msra.gmra.mxu2 %vm487_vm11, %v2828_v60 }
0x104c   :  { %v2579_v38 = vpop.xlane.xlu0 %2578 }
0x104d   :  { %4411 = vrcp.f32 %v2579_v38  ;;  %v6205_v38 = vld [vmem:[%s6978_s3 + $0x8] sm:$0xff] }
0x1053   :  { %v4412_v39 = vpop.eup %4411 }
0x1054   :  { %v2595_v3 = vmul.f32 %v4412_v39, %v6113_v16  ;;  %v2582_v11 = vpop.xlane.xlu1 %2581  ;;  %v2397_v16 = vpop.f32.mrf.mxu2 }
0x1055   :  { %4413 = vrcp.f32 %v2582_v11  ;;  %v2809_v49 = vpop.xlane.xlu0 %2808  ;;  %v2398_v1 = vadd.f32 %v2397_v16, %v5976_v53 }
0x1056   :  { %4415 = vrcp.f32 %v2809_v49  ;;  %4106 = vmatmul.msk.f32.vlgmr.msrb.gmra.mxu3 %vm487_vm11, %v2595_v3 }
0x105b   :  { %v4414_v41 = vpop.eup %4413 }
0x105c   :  { %v4416_v58 = vpop.eup %4415  ;;  %v2585_v42 = vpop.xlane.xlu2 %2584  ;;  %v2596_v0 = vmul.f32 %v4414_v41, %v6119_v13 }
0x105d   :  { %4417 = vrcp.f32 %v2585_v42  ;;  %v2812_v17 = vpop.xlane.xlu1 %2811  ;;  %v2829_v9 = vmul.f32 %v4416_v58, %v6121_v21  ;;  %v2400_v24 = vpop.f32.mrf.mxu2 }
0x105e   :  { %4419 = vrcp.f32 %v2812_v17  ;;  %4107 = vmatmul.msk.f32.gmra.mxu3 %vm487_vm11, %v2596_v0  ;;  %v2401_v22 = vadd.f32 %v2400_v24, %v5985_v6  ;;  %v6208_v6 = vperm.slane %v6205_v38, 5 }
0x105f   :  { %4125 = vmatmul.msk.f32.gmra.mxu2 %vm487_vm11, %v2829_v9 }
0x1063   :  { %v4418_v26 = vpop.eup %4417 }
0x1064   :  { %v4420_v13 = vpop.eup %4419  ;;  %v2815_v36 = vpop.xlane.xlu0 %2814  ;;  %v2597_v61 = vmul.f32 %v4418_v26, %v6128_v10 }
0x1065   :  { %4421 = vrcp.f32 %v2815_v36  ;;  %v2830_v21 = vmul.f32 %v4420_v13, %v6131_v33 }
0x1066   :  { %4108 = vmatmul.msk.f32.gmra.mxu3 %vm487_vm11, %v2597_v61 }
0x1067   :  { %4126 = vmatmul.msk.f32.gmra.mxu2 %vm487_vm11, %v2830_v21 }
0x106b   :  { %v4422_v23 = vpop.eup %4421 }
0x106c   :  { %v2831_v10 = vmul.f32 %v4422_v23, %v6140_v30  ;;  %v2624_v62 = vpop.f32.mrf.mxu2 }
0x106d   :  { %v2668_v50 = vadd.f32 %v2624_v62, %v2395_v27 }
0x106e   :  { %4130 = vmatmul.msk.f32.vlgmr.msra.gmra.mxu3 %vm487_vm11, %v2831_v10 }
0x1071   :  { %v2429_v48 = vpop.f32.mrf.mxu3 }
0x1072   :  { %v2430_v63 = vadd.f32 %v2429_v48, %v6026_v25 }
0x1079   :  { %v2432_v5 = vpop.f32.mrf.mxu3 }
0x107a   :  { %v2627_v33 = vpop.f32.mrf.mxu2  ;;  %v2433_v19 = vadd.f32 %v2432_v5, %v6028_v47 }
0x107b   :  { %v2669_v46 = vadd.f32 %v2627_v33, %v2398_v1 }
0x1081   :  { %v6190_v29 = vpop.f32.mrf.mxu3 }
0x1082   :  { %v2630_v14 = vpop.f32.mrf.mxu2 }
0x1083   :  { %v2670_v43 = vadd.f32 %v2630_v14, %v2401_v22  ;;  %v4144_v22 = vld [vmem:[%s6981_s6 + $0x28] sm:$0xff] }
0x108a   :  { %v2860_v52 = vpop.f32.mrf.mxu2 }
0x108b   :  { %v2904_v35 = vadd.f32 %v2860_v52, %v2668_v50 }
0x108d   :  { %4137 = vmatmul.msk.f32.vlgmr.msrb.gmra.mxu1 %vm131_vm1, %v2904_v35 }
0x10d9   :  { %v2659_v30 = vpop.f32.mrf.mxu3 }
0x10da   :  { %v2671_v32 = vadd.f32 %v2659_v30, %v2430_v63 }
0x10e1   :  { %v2662_v15 = vpop.f32.mrf.mxu3 }
0x10e2   :  { %v6193_v12 = vadd.f32 %v2662_v15, %v2433_v19  ;;  %v2863_v53 = vpop.f32.mrf.mxu2 }
0x10e3   :  { %v2905_v28 = vadd.f32 %v2863_v53, %v2669_v46 }
0x10e5   :  { %4138 = vmatmul.msk.f32.gmra.mxu1 %vm131_vm1, %v2905_v28  ;;  %v4146_v28 = vld [vmem:[%s6981_s6 + $0x38] sm:$0xff] }
0x10e6   :  { %3157 = vmatpush.msrb.mxu0 %v4146_v28 }
0x10e9   :  { %v6197_v51 = vpop.f32.mrf.mxu3 }
0x10ea   :  { %v2866_v37 = vpop.f32.mrf.mxu2 }
0x10eb   :  { %v2906_v40 = vadd.f32 %v2866_v37, %v2670_v43  ;;  %v4143_v43 = vld [vmem:[%s6981_s6 + $0x20] sm:$0xff] }
0x10ed   :  { %4139 = vmatmul.msk.f32.gmra.mxu1 %vm131_vm1, %v2906_v40 }
0x10f1   :  { %v2895_v47 = vpop.f32.mrf.mxu3 }
0x10f2   :  { %v2907_v60 = vadd.f32 %v2895_v47, %v2671_v32 }
0x10f5   :  { %4140 = vmatmul.msk.f32.gmra.mxu1 %vm131_vm1, %v2907_v60 }
0x110a   :  { %v2951_v39 = vpop.f32.mrf.mxu1 }
0x110b   :  { %v2952_v3 = vadd.f32 %v2951_v39, %v6208_v6 }
0x110d   :  { %v6212_v11 = vadd.f32 %v2952_v3, %v5531_v44 }
0x110f   :  { %v2975_v25 = vsel %vm131_vm1, %v6212_v11, 0.0 }
0x1110   :  { %2976 = vadd.xlane.f32.xlu2 %v2975_v25 }
0x1162   :  { %v2954_v49 = vpop.f32.mrf.mxu1 }
0x1163   :  { %v2955_v57 = vadd.f32 %v2954_v49, %v6208_v6 }
0x1165   :  { %v2970_v41 = vadd.f32 %v2955_v57, %v5536_v4 }
0x1167   :  { %v2978_v58 = vsel %vm131_vm1, %v2970_v41, 0.0 }
0x1168   :  { %2979 = vadd.xlane.f32.xlu1 %v2978_v58 }
0x116a   :  { %v2957_v42 = vpop.f32.mrf.mxu1 }
0x116b   :  { %v2958_v0 = vadd.f32 %v2957_v42, %v6208_v6 }
0x116d   :  { %v2971_v17 = vadd.f32 %v2958_v0, %v5541_v55  ;;  %v2750_v55 = vpop.f32.mrf.mxu0  ;;  %v6276_v0 = vperm.slane %v6205_v38, 2 }
0x116e   :  { %v2760_v61 = vmul.f32 0.35355338, %v2750_v55 }
0x116f   :  { %v2981_v44 = vsel %vm131_vm1, %v2971_v17, 0.0 }
0x1170   :  { %2982 = vadd.xlane.f32.xlu0 %v2981_v44  ;;  %v6279_v44 = vperm.slane %v6205_v38, 3 }
0x1172   :  { %v2960_v9 = vpop.f32.mrf.mxu1 }
0x1173   :  { %v2961_v16 = vadd.f32 %v2960_v9, %v6208_v6 }
0x1175   :  { %v6224_v26 = vadd.f32 %v2961_v16, %v5546_v56  ;;  %v2766_v56 = vadd.f32 %v2760_v61, %v4842_v20  ;;  %v2753_v14 = vpop.f32.mrf.mxu0 }
0x1176   :  { %v2761_v50 = vmul.f32 0.35355338, %v2753_v14 }
0x1177   :  { %v2984_v4 = vsel %vm131_vm1, %v6224_v26, 0.0  ;;  %v2780_v2 = vsel %vm487_vm11, %v2766_v56, -inf }
0x1178   :  { %2985 = vadd.xlane.f32.xlu2 %v2984_v4  ;;  %v2767_v5 = vadd.f32 %v2761_v50, %v4842_v20  ;;  %v4145_v20 = vld [vmem:[%s6981_s6 + $0x30] sm:$0xff] }
0x1179   :  { %3158 = vmatpush.msrb.mxu0 %v4145_v20 }
0x117a   :  { %v2783_v53 = vsel %vm487_vm11, %v2767_v5, -inf }
0x117b   :  { %3159 = vmatpush.msrb.mxu0 %v4144_v22 }
0x117d   :  { %3160 = vmatpush.msrb.mxu0 %v4143_v43 }
0x1183   :  { %v2977_v59 = vpop.xlane.xlu2 %2976 }
0x1184   :  { %v2993_v34 = vmul.f32 %v2977_v59, %v4653_v31 }
0x1186   :  { %v6230_v13 = vsub.f32 %v6212_v11, %v2993_v34 }
0x1188   :  { %v3005_v36 = vmul.f32 %v6230_v13, %v6230_v13 }
0x118a   :  { %v3011_v21 = vsel %vm131_vm1, %v3005_v36, 0.0 }
0x118b   :  { %3012 = vadd.xlane.f32.xlu1 %v3011_v21 }
0x1193   :  { %2781 = vmax.xlane.f32.xlu1 %v2780_v2 }
0x11db   :  { %v2980_v24 = vpop.xlane.xlu1 %2979 }
0x11dc   :  { %v2994_v23 = vmul.f32 %v2980_v24, %v4653_v31 }
0x11de   :  { %v6238_v45 = vsub.f32 %v2970_v41, %v2994_v23 }
0x11e0   :  { %v3006_v10 = vmul.f32 %v6238_v45, %v6238_v45 }
0x11e2   :  { %v3014_v62 = vsel %vm131_vm1, %v3006_v10, 0.0 }
0x11e3   :  { %3015 = vadd.xlane.f32.xlu0 %v3014_v62  ;;  %v2983_v1 = vpop.xlane.xlu0 %2982 }
0x11e4   :  { %v2995_v33 = vmul.f32 %v2983_v1, %v4653_v31 }
0x11e6   :  { %v6244_v46 = vsub.f32 %v2971_v17, %v2995_v33 }
0x11e8   :  { %v3007_v27 = vmul.f32 %v6244_v46, %v6244_v46 }
0x11ea   :  { %v3017_v52 = vsel %vm131_vm1, %v3007_v27, 0.0 }
0x11eb   :  { %v2986_v35 = vpop.xlane.xlu2 %2985  ;;  %3018 = vadd.xlane.f32.xlu2 %v3017_v52 }
0x11ec   :  { %v2996_v48 = vmul.f32 %v2986_v35, %v4653_v31 }
0x11ee   :  { %v6252_v30 = vsub.f32 %v6224_v26, %v2996_v48 }
0x11f0   :  { %v3008_v19 = vmul.f32 %v6252_v30, %v6252_v30 }
0x11f2   :  { %v3020_v15 = vsel %vm131_vm1, %v3008_v19, 0.0 }
0x11f3   :  { %3021 = vadd.xlane.f32.xlu0 %v3020_v15  ;;  %2784 = vmax.xlane.f32.xlu2 %v2783_v53 }
0x11fe   :  { %v3013_v37 = vpop.xlane.xlu1 %3012 }
0x11ff   :  { %v3029_v40 = vmul.f32 %v3013_v37, %v4653_v31 }
0x1201   :  { %v3035_v63 = vadd.f32 1e-12, %v3029_v40 }
0x1203   :  { %4423 = vrsqrt.f32 %v3035_v63  ;;  %vm3047_vm15 = vweird.f32 %v3035_v63 }
0x1206   :  { %v2782_v32 = vpop.xlane.xlu1 %2781 }
0x1207   :  { %v2790_v47 = vsub.f32 %v2766_v56, %v2782_v32 }
0x1209   :  { %v4424_v60 = vpop.eup %4423  ;;  %v2800_v39 = vmul.f32 1.442695, %v2790_v47 }
0x120a   :  { %v3042_v3 = vmul.f32 %v4424_v60, %v3035_v63  ;;  %vm3048_vm12 = vweird.f32 %v4424_v60 }
0x120b   :  { %4425 = vpow2.f32 %v2800_v39  ;;  %vm3049_vm0 = vmor %vm3047_vm15, %vm3048_vm12 }
0x120c   :  { %v3043_v25 = vmul.f32 %v4424_v60, %v3042_v3 }
0x120e   :  { %v3044_v49 = vmul.f32 0.5, %v3043_v25 }
0x1210   :  { %v3045_v57 = vsub.f32 1.5, %v3044_v49 }
0x1211   :  { %v6271_v41 = vpop.eup %4425 }
0x1212   :  { %v3046_v58 = vmul.f32 %v4424_v60, %v3045_v57  ;;  %v2816_v42 = vsel %vm487_vm11, %v6271_v41, 0.0 }
0x1213   :  { %2817 = vadd.xlane.f32.xlu1 %v2816_v42 }
0x1214   :  { %v3050_v17 = vsel %vm3049_vm0, %v4424_v60, %v3046_v58 }
0x1215   :  { %v3101_v9 = vmul.f32 %v3050_v17, %v6230_v13  ;;  %v4160_v17 = vld [vmem:[%s6982_s7 + $0x78] sm:$0xff] }
0x1216   :  { %3270 = vmatpush.msrb.mxu2 %v4160_v17 }
0x1217   :  { %v3108_v16 = vmul.f32 %v6276_v0, %v3101_v9  ;;  %v4159_v9 = vld [vmem:[%s6982_s7 + $0x70] sm:$0xff] }
0x1218   :  { %3271 = vmatpush.msrb.mxu2 %v4159_v9 }
0x1219   :  { %v3115_v4 = vadd.f32 %v6279_v44, %v3108_v16 }
0x121b   :  { %4147 = vmatmul.msk.f32.vlgmr.msrb.gmra.mxu0 %vm131_vm1, %v3115_v4  ;;  %v4157_v4 = vld [vmem:[%s6982_s7 + $0x60] sm:$0xff] }
0x1256   :  { %v3016_v59 = vpop.xlane.xlu0 %3015 }
0x1257   :  { %v3030_v34 = vmul.f32 %v3016_v59, %v4653_v31  ;;  %v4156_v59 = vld [vmem:[%s6982_s7 + $0x58] sm:$0xff] }
0x1259   :  { %v3036_v55 = vadd.f32 1e-12, %v3030_v34 }
0x125b   :  { %4427 = vrsqrt.f32 %v3036_v55  ;;  %vm3057_vm3 = vweird.f32 %v3036_v55 }
0x125e   :  { %v3019_v36 = vpop.xlane.xlu2 %3018 }
0x125f   :  { %v3031_v61 = vmul.f32 %v3019_v36, %v4653_v31 }
0x1261   :  { %v4428_v21 = vpop.eup %4427  ;;  %v3037_v56 = vadd.f32 1e-12, %v3031_v61  ;;  %v4154_v61 = vld [vmem:[%s6982_s7 + $0x48] sm:$0xff] }
0x1262   :  { %v3052_v2 = vmul.f32 %v4428_v21, %v3036_v55  ;;  %vm3058_vm4 = vweird.f32 %v4428_v21  ;;  %v4155_v55 = vld [vmem:[%s6982_s7 + $0x50] sm:$0xff] }
0x1263   :  { %4429 = vrsqrt.f32 %v3037_v56  ;;  %vm3059_vm5 = vmor %vm3057_vm3, %vm3058_vm4  ;;  %vm3067_vm7 = vweird.f32 %v3037_v56 }
0x1264   :  { %v3053_v24 = vmul.f32 %v4428_v21, %v3052_v2 }
0x1266   :  { %v3054_v13 = vmul.f32 0.5, %v3053_v24  ;;  %v2785_v23 = vpop.xlane.xlu2 %2784  ;;  %v3022_v10 = vpop.xlane.xlu0 %3021 }
0x1267   :  { %v2791_v62 = vsub.f32 %v2767_v5, %v2785_v23  ;;  %v3032_v1 = vmul.f32 %v3022_v10, %v4653_v31 }
0x1268   :  { %v3055_v33 = vsub.f32 1.5, %v3054_v13 }
0x1269   :  { %v4430_v14 = vpop.eup %4429  ;;  %v2802_v27 = vmul.f32 1.442695, %v2791_v62  ;;  %v3038_v50 = vadd.f32 1e-12, %v3032_v1 }
0x126a   :  { %v3056_v52 = vmul.f32 %v4428_v21, %v3055_v33  ;;  %v3062_v35 = vmul.f32 %v4430_v14, %v3037_v56  ;;  %vm3068_vm6 = vweird.f32 %v4430_v14  ;;  %v6331_v56 = vperm.slane %v6205_v38, 6 }
0x126b   :  { %4431 = vpow2.f32 %v2802_v27  ;;  %vm3069_vm8 = vmor %vm3067_vm7, %vm3068_vm6  ;;  %vm3077_vm10 = vweird.f32 %v3038_v50 }
0x126c   :  { %v3060_v48 = vsel %vm3059_vm5, %v4428_v21, %v3056_v52  ;;  %v3063_v19 = vmul.f32 %v4430_v14, %v3062_v35  ;;  %4433 = vrsqrt.f32 %v3038_v50  ;;  %v4153_v21 = vld [vmem:[%s6982_s7 + $0x40] sm:$0xff] }
0x126d   :  { %v3102_v15 = vmul.f32 %v3060_v48, %v6238_v45 }
0x126e   :  { %v3064_v53 = vmul.f32 0.5, %v3063_v19 }
0x126f   :  { %v3109_v5 = vmul.f32 %v6276_v0, %v3102_v15 }
0x1270   :  { %v3065_v28 = vsub.f32 1.5, %v3064_v53 }
0x1271   :  { %v6290_v20 = vpop.eup %4431  ;;  %v3116_v22 = vadd.f32 %v6279_v44, %v3109_v5 }
0x1272   :  { %v4434_v43 = vpop.eup %4433  ;;  %v3066_v37 = vmul.f32 %v4430_v14, %v3065_v28  ;;  %v2819_v40 = vsel %vm487_vm11, %v6290_v20, 0.0 }
0x1273   :  { %v3072_v63 = vmul.f32 %v4434_v43, %v3038_v50  ;;  %2820 = vadd.xlane.f32.xlu0 %v2819_v40  ;;  %4148 = vmatmul.msk.f32.gmra.mxu0 %vm131_vm1, %v3116_v22  ;;  %vm3078_vm9 = vweird.f32 %v4434_v43 }
0x1274   :  { %v3070_v45 = vsel %vm3069_vm8, %v4430_v14, %v3066_v37  ;;  %vm3079_vm13 = vmor %vm3077_vm10, %vm3078_vm9  ;;  %vm3857_vm9 = vcmask 1041408   ;;  %vm3866_vm10 = vcmask 0  }
0x1275   :  { %v3103_v32 = vmul.f32 %v3070_v45, %v6244_v46  ;;  %v3073_v47 = vmul.f32 %v4434_v43, %v3072_v63 }
0x1277   :  { %v3074_v60 = vmul.f32 0.5, %v3073_v47  ;;  %v3110_v39 = vmul.f32 %v6276_v0, %v3103_v32 }
0x1279   :  { %v3075_v3 = vsub.f32 1.5, %v3074_v60  ;;  %v3117_v25 = vadd.f32 %v6279_v44, %v3110_v39 }
0x127b   :  { %v3076_v49 = vmul.f32 %v4434_v43, %v3075_v3  ;;  %4149 = vmatmul.msk.f32.gmra.mxu0 %vm131_vm1, %v3117_v25 }
0x127d   :  { %v3080_v57 = vsel %vm3079_vm13, %v4434_v43, %v3076_v49 }
0x127e   :  { %v3104_v58 = vmul.f32 %v3080_v57, %v6252_v30  ;;  %v4158_v30 = vld [vmem:[%s6982_s7 + $0x68] sm:$0xff] }
0x127f   :  { %3272 = vmatpush.msrb.mxu2 %v4158_v30 }
0x1280   :  { %v3111_v42 = vmul.f32 %v6276_v0, %v3104_v58 }
0x1281   :  { %3273 = vmatpush.msrb.mxu2 %v4157_v4 }
0x1282   :  { %v3118_v46 = vadd.f32 %v6279_v44, %v3111_v42 }
0x1283   :  { %3274 = vmatpush.msrb.mxu2 %v4156_v59 }
0x1284   :  { %4150 = vmatmul.msk.f32.gmra.mxu0 %vm131_vm1, %v3118_v46 }
0x1285   :  { %3275 = vmatpush.msrb.mxu2 %v4155_v55 }
0x1286   :  { %v2818_v16 = vpop.xlane.xlu1 %2817 }
0x1287   :  { %4435 = vrcp.f32 %v2818_v16  ;;  %3276 = vmatpush.msrb.mxu2 %v4154_v61 }
0x1289   :  { %3277 = vmatpush.msrb.mxu2 %v4153_v21 }
0x128d   :  { %v4436_v34 = vpop.eup %4435 }
0x128e   :  { %v2832_v36 = vmul.f32 %v4436_v34, %v6271_v41 }
0x1290   :  { %4131 = vmatmul.msk.f32.gmra.mxu3 %vm487_vm11, %v2832_v36 }
0x1298   :  { %v3162_v2 = vpop.f32.mrf.mxu0 }
0x1299   :  { %v3163_v24 = vadd.f32 %v3162_v2, %v6331_v56  ;;  %v2436_v2 = vadd.f32 %v6190_v29, %v6030_v18 }
0x129b   :  { %v3180_v41 = vmul.f32 %v3163_v24, %v3163_v24 }
0x129d   :  { %v3186_v13 = vmul.f32 %v3180_v41, %v3163_v24 }
0x129f   :  { %v3192_v23 = vmul.f32 0.044715, %v3186_v13 }
0x12a1   :  { %v3198_v10 = vadd.f32 %v3192_v23, %v3163_v24 }
0x12a3   :  { %v3204_v62 = vmul.f32 0.7978846, %v3198_v10 }
0x12a5   :  { %4437 = vtanh.f32 %v3204_v62 }
0x12ab   :  { %v4438_v1 = vpop.eup %4437 }
0x12ac   :  { %v3216_v33 = vadd.f32 1.0, %v4438_v1 }
0x12ae   :  { %v3222_v14 = vmul.f32 0.5, %v3216_v33 }
0x12b0   :  { %v3228_v27 = vmul.f32 %v3222_v14, %v3163_v24  ;;  %v2673_v24 = vadd.f32 %v6197_v51, %v2436_v2  ;;  %v3363_v2 = vld [vmem:[%s6984_s9 + $0x68] sm:$0xff] }
0x12b2   :  { %4161 = vmatmul.msk.f32.vlgmr.msrb.gmra.mxu2 %vm1663_vm2, %v3228_v27  ;;  %v3243_v27 = vperm.slane %v6205_v38, 7 }
0x12e6   :  { %v2821_v50 = vpop.xlane.xlu0 %2820 }
0x12e7   :  { %4439 = vrcp.f32 %v2821_v50 }
0x12ed   :  { %v4440_v52 = vpop.eup %4439 }
0x12ee   :  { %v2833_v35 = vmul.f32 %v4440_v52, %v6290_v20 }
0x12f0   :  { %4132 = vmatmul.msk.f32.gmra.mxu3 %vm487_vm11, %v2833_v35  ;;  %v3165_v48 = vpop.f32.mrf.mxu0  ;;  %vm3302_vm11 = vcmask 1041409  }
0x12f1   :  { %v3166_v19 = vadd.f32 %v3165_v48, %v6331_v56 }
0x12f3   :  { %v3181_v15 = vmul.f32 %v3166_v19, %v3166_v19 }
0x12f5   :  { %v3187_v53 = vmul.f32 %v3181_v15, %v3166_v19 }
0x12f7   :  { %v3193_v5 = vmul.f32 0.044715, %v3187_v53 }
0x12f8   :  { %v3168_v28 = vpop.f32.mrf.mxu0 }
0x12f9   :  { %v3199_v22 = vadd.f32 %v3193_v5, %v3166_v19  ;;  %v3169_v43 = vadd.f32 %v3168_v28, %v6331_v56 }
0x12fb   :  { %v3205_v37 = vmul.f32 0.7978846, %v3199_v22  ;;  %v3182_v40 = vmul.f32 %v3169_v43, %v3169_v43 }
0x12fd   :  { %4441 = vtanh.f32 %v3205_v37  ;;  %v3188_v63 = vmul.f32 %v3182_v40, %v3169_v43 }
0x12ff   :  { %v3194_v45 = vmul.f32 0.044715, %v3188_v63 }
0x1301   :  { %v3200_v32 = vadd.f32 %v3194_v45, %v3169_v43  ;;  %v3171_v47 = vpop.f32.mrf.mxu0 }
0x1302   :  { %v3172_v20 = vadd.f32 %v3171_v47, %v6331_v56 }
0x1303   :  { %v4442_v60 = vpop.eup %4441  ;;  %v3206_v39 = vmul.f32 0.7978846, %v3200_v32 }
0x1304   :  { %v3183_v3 = vmul.f32 %v3172_v20, %v3172_v20  ;;  %v3217_v25 = vadd.f32 1.0, %v4442_v60 }
0x1305   :  { %4443 = vtanh.f32 %v3206_v39 }
0x1306   :  { %v3189_v49 = vmul.f32 %v3183_v3, %v3172_v20  ;;  %v3223_v57 = vmul.f32 0.5, %v3217_v25 }
0x1308   :  { %v3195_v58 = vmul.f32 0.044715, %v3189_v49  ;;  %v3229_v42 = vmul.f32 %v3223_v57, %v3166_v19 }
0x130a   :  { %v3201_v46 = vadd.f32 %v3195_v58, %v3172_v20  ;;  %4162 = vmatmul.msk.f32.gmra.mxu2 %vm1663_vm2, %v3229_v42 }
0x130b   :  { %v4444_v17 = vpop.eup %4443 }
0x130c   :  { %v3207_v9 = vmul.f32 0.7978846, %v3201_v46  ;;  %v3218_v16 = vadd.f32 1.0, %v4444_v17 }
0x130e   :  { %4445 = vtanh.f32 %v3207_v9  ;;  %v3224_v30 = vmul.f32 0.5, %v3218_v16  ;;  %v3362_v9 = vld [vmem:[%s6984_s9 + $0x60] sm:$0xff] }
0x130f   :  { %3388 = vmatpush.msrb.mxu3 %v3362_v9  ;;  %v3480_v9 = vld [vmem:[%s6985_s10 + $0xa0] sm:$0xff] }
0x1310   :  { %v3230_v4 = vmul.f32 %v3224_v30, %v3169_v43  ;;  %v3358_v30 = vld [vmem:[%s6984_s9 + $0x40] sm:$0xff] }
0x1311   :  { %3389 = vmatpush.msrb.mxu3 %v3358_v30  ;;  %v3478_v30 = vld [vmem:[%s6985_s10 + $0x90] sm:$0xff] }
0x1312   :  { %4163 = vmatmul.msk.f32.gmra.mxu2 %vm1663_vm2, %v3230_v4  ;;  %v3354_v4 = vld [vmem:[%s6984_s9 + $0x20] sm:$0xff] }
0x1313   :  { %v2898_v59 = vpop.f32.mrf.mxu3  ;;  %3390 = vmatpush.msrb.mxu3 %v3354_v4  ;;  %v3476_v4 = vld [vmem:[%s6985_s10 + $0x80] sm:$0xff] }
0x1314   :  { %v4446_v34 = vpop.eup %4445  ;;  %v2908_v55 = vadd.f32 %v2898_v59, %v6193_v12 }
0x1315   :  { %v3219_v36 = vadd.f32 1.0, %v4446_v34  ;;  %v3350_v34 = vld [vmem:[%s6984_s9] sm:$0xff] }
0x1316   :  { %4141 = vmatmul.msk.f32.gmra.mxu1 %vm131_vm1, %v2908_v55  ;;  %3391 = vmatpush.msrb.mxu3 %v3350_v34  ;;  %v3474_v34 = vld [vmem:[%s6985_s10 + $0x70] sm:$0xff] }
0x1317   :  { %v3225_v61 = vmul.f32 0.5, %v3219_v36 }
0x1318   :  { %3408 = vmatpush.msra.mxu3 %v3363_v2 }
0x1319   :  { %v3231_v21 = vmul.f32 %v3225_v61, %v3172_v20 }
0x131b   :  { %4164 = vmatmul.msk.f32.gmra.mxu2 %vm1663_vm2, %v3231_v21 }
0x1335   :  { %v3279_v23 = vpop.f32.mrf.mxu2 }
0x1336   :  { %v3280_v29 = vadd.f32 %v3279_v23, %v3243_v27 }
0x1338   :  { %v3293_v52 = vadd.f32 %v3280_v29, %v6212_v11 }
0x1373   :  { %v2901_v41 = vpop.f32.mrf.mxu3 }
0x1374   :  { %v2909_v13 = vadd.f32 %v2901_v41, %v2673_v24  ;;  %v3359_v24 = vld [vmem:[%s6984_s9 + $0x48] sm:$0xff] }
0x1375   :  { %3409 = vmatpush.msra.mxu3 %v3359_v24 }
0x1376   :  { %4142 = vmatmul.msk.f32.gmra.mxu1 %vm131_vm1, %v2909_v13 }
0x138d   :  { %v3282_v10 = vpop.f32.mrf.mxu2 }
0x138e   :  { %v3355_v10 = vld [vmem:[%s6984_s9 + $0x28] sm:$0xff] }
0x138f   :  { %3410 = vmatpush.msra.mxu3 %v3355_v10  ;;  %v3470_v10 = vld [vmem:[%s6985_s10 + $0x50] sm:$0xff] }
0x1393   :  { %v2963_v62 = vpop.f32.mrf.mxu1 }
0x1394   :  { %v2964_v12 = vadd.f32 %v2963_v62, %v6208_v6 }
0x1395   :  { %v3284_v1 = vpop.f32.mrf.mxu2 }
0x1396   :  { %v2973_v33 = vadd.f32 %v2964_v12, %v5551_v54  ;;  %v3351_v12 = vld [vmem:[%s6984_s9 + $0x8] sm:$0xff] }
0x1397   :  { %3411 = vmatpush.msra.mxu3 %v3351_v12 }
0x1398   :  { %v2987_v14 = vsel %vm131_vm1, %v2973_v33, 0.0 }
0x1399   :  { %2988 = vadd.xlane.f32.xlu1 %v2987_v14 }
0x139e   :  { %v3286_v18 = vpop.f32.mrf.mxu2 }
0x139f   :  { %v3287_v51 = vadd.f32 %v3286_v18, %v3243_v27 }
0x13a1   :  { %v3294_v50 = vadd.f32 %v3287_v51, %v6224_v26  ;;  %v6411_v51 = vld [vmem:[%s6983_s8] sm:$0xff] }
0x13a3   :  { %v3301_v35 = vrot.slane %v3294_v50, 7 }
0x13a5   :  { %v3303_v48 = vsel %vm3302_vm11, %v3301_v35, %v3293_v52  ;;  %v3344_v35 = vperm.slane %v6411_v51, 0 }
0x13a6   :  { %v3306_v19 = vsel %vm3305_vm14, %v3303_v48, 0.0 }
0x13a7   :  { %3307 = vadd.xlane.f32.xlu2 %v3306_v19 }
0x13f3   :  { %v2966_v54 = vpop.f32.mrf.mxu1 }
0x13f4   :  { %v2967_v15 = vadd.f32 %v2966_v54, %v6208_v6 }
0x13f6   :  { %v2974_v38 = vadd.f32 %v2967_v15, %v5557_v7 }
0x13f8   :  { %v2990_v53 = vsel %vm131_vm1, %v2974_v38, 0.0 }
0x13f9   :  { %2991 = vadd.xlane.f32.xlu0 %v2990_v53  ;;  %v3347_v53 = vperm.slane %v6411_v51, 1 }
0x140c   :  { %v2989_v5 = vpop.xlane.xlu1 %2988 }
0x140d   :  { %v2997_v26 = vmul.f32 %v2989_v5, %v4653_v31 }
0x140f   :  { %v3003_v28 = vsub.f32 %v2973_v33, %v2997_v26 }
0x1411   :  { %v3009_v11 = vmul.f32 %v3003_v28, %v3003_v28 }
0x1413   :  { %v3023_v22 = vsel %vm131_vm1, %v3009_v11, 0.0  ;;  %v3364_v11 = vld [vmem:[%s6984_s9 + $0x70] sm:$0xff] }
0x1414   :  { %3024 = vadd.xlane.f32.xlu2 %v3023_v22 }
0x141a   :  { %v3308_v43 = vpop.xlane.xlu2 %3307 }
0x141b   :  { %v3309_v37 = vmul.f32 %v3308_v43, %v4653_v31  ;;  %v3360_v43 = vld [vmem:[%s6984_s9 + $0x50] sm:$0xff] }
0x141d   :  { %v3311_v40 = vrot.slane %v3309_v37, 1  ;;  %v6363_v63 = vsub.f32 %v3293_v52, %v3309_v37  ;;  %v3356_v37 = vld [vmem:[%s6984_s9 + $0x30] sm:$0xff] }
0x141f   :  { %v6365_v6 = vsub.f32 %v3294_v50, %v3311_v40  ;;  %v3316_v45 = vmul.f32 %v6363_v63, %v6363_v63  ;;  %v3352_v40 = vld [vmem:[%s6984_s9 + $0x10] sm:$0xff] }
0x1421   :  { %v3317_v7 = vmul.f32 %v6365_v6, %v6365_v6 }
0x1423   :  { %v3320_v32 = vrot.slane %v3317_v7, 7  ;;  %v3357_v7 = vld [vmem:[%s6984_s9 + $0x38] sm:$0xff] }
0x1425   :  { %v3321_v47 = vsel %vm3302_vm11, %v3320_v32, %v3316_v45  ;;  %v3353_v45 = vld [vmem:[%s6984_s9 + $0x18] sm:$0xff]  ;;  %v3490_v32 = vld [vmem:[%s6985_s10 + $0xf0] sm:$0xff] }
0x1426   :  { %v3323_v20 = vsel %vm3305_vm14, %v3321_v47, 0.0  ;;  %v3488_v47 = vld [vmem:[%s6985_s10 + $0xe0] sm:$0xff]  ;;  %3622 = vmatpush.msra.mxu1 %v3490_v32  ;;  %v3521_v32 = vld [vmem:[%s6985_s10 + $0x1e8] sm:$0xff] }
0x1427   :  { %3324 = vadd.xlane.f32.xlu1 %v3323_v20  ;;  %v3522_v20 = vld [vmem:[%s6985_s10 + $0x1f0] sm:$0xff] }
0x1428   :  { %3642 = vmatpush.msra.mxu0 %v3522_v20  ;;  %3623 = vmatpush.msra.mxu1 %v3488_v47  ;;  %v3568_v47 = vld [vmem:[%s6985_s10 + $0x360] sm:$0xff]  ;;  %v3479_v20 = vld [vmem:[%s6985_s10 + $0x98] sm:$0xff] }
0x146c   :  { %v2992_v60 = vpop.xlane.xlu0 %2991 }
0x146d   :  { %v2998_v39 = vmul.f32 %v2992_v60, %v4653_v31  ;;  %v3486_v60 = vld [vmem:[%s6985_s10 + $0xd0] sm:$0xff] }
0x146e   :  { %3624 = vmatpush.msra.mxu1 %v3486_v60  ;;  %v3519_v60 = vld [vmem:[%s6985_s10 + $0x1d8] sm:$0xff] }
0x146f   :  { %v6374_v3 = vsub.f32 %v2974_v38, %v2998_v39  ;;  %v3520_v39 = vld [vmem:[%s6985_s10 + $0x1e0] sm:$0xff] }
0x1470   :  { %3643 = vmatpush.msra.mxu0 %v3520_v39  ;;  %v3566_v39 = vld [vmem:[%s6985_s10 + $0x350] sm:$0xff] }
0x1471   :  { %v3010_v25 = vmul.f32 %v6374_v3, %v6374_v3 }
0x1473   :  { %v3026_v49 = vsel %vm131_vm1, %v3010_v25, 0.0 }
0x1474   :  { %3027 = vadd.xlane.f32.xlu0 %v3026_v49  ;;  %v3518_v49 = vld [vmem:[%s6985_s10 + $0x1d0] sm:$0xff] }
0x1475   :  { %3644 = vmatpush.msra.mxu0 %v3518_v49  ;;  %v3517_v49 = vld [vmem:[%s6985_s10 + $0x1c8] sm:$0xff] }
0x1487   :  { %v3025_v57 = vpop.xlane.xlu2 %3024 }
0x1488   :  { %v3033_v58 = vmul.f32 %v3025_v57, %v4653_v31 }
0x148a   :  { %v3039_v42 = vadd.f32 1e-12, %v3033_v58  ;;  %v3484_v58 = vld [vmem:[%s6985_s10 + $0xc0] sm:$0xff] }
0x148b   :  { %3625 = vmatpush.msra.mxu1 %v3484_v58  ;;  %v3475_v58 = vld [vmem:[%s6985_s10 + $0x78] sm:$0xff] }
0x148c   :  { %4447 = vrsqrt.f32 %v3039_v42  ;;  %vm3087_vm15 = vweird.f32 %v3039_v42 }
0x1492   :  { %v4448_v46 = vpop.eup %4447 }
0x1493   :  { %v3082_v17 = vmul.f32 %v4448_v46, %v3039_v42  ;;  %vm3088_vm12 = vweird.f32 %v4448_v46  ;;  %v3516_v42 = vld [vmem:[%s6985_s10 + $0x1c0] sm:$0xff] }
0x1494   :  { %vm3089_vm0 = vmor %vm3087_vm15, %vm3088_vm12  ;;  %3645 = vmatpush.msra.mxu0 %v3516_v42  ;;  %v3515_v42 = vld [vmem:[%s6985_s10 + $0x1b8] sm:$0xff] }
0x1495   :  { %v3083_v16 = vmul.f32 %v4448_v46, %v3082_v17  ;;  %v3482_v17 = vld [vmem:[%s6985_s10 + $0xb0] sm:$0xff] }
0x1496   :  { %3626 = vmatpush.msra.mxu1 %v3482_v17  ;;  %v3473_v17 = vld [vmem:[%s6985_s10 + $0x68] sm:$0xff] }
0x1497   :  { %v3084_v59 = vmul.f32 0.5, %v3083_v16  ;;  %v3512_v16 = vld [vmem:[%s6985_s10 + $0x1a0] sm:$0xff] }
0x1498   :  { %3627 = vmatpush.msra.mxu1 %v3480_v9  ;;  %v3560_v9 = vld [vmem:[%s6985_s10 + $0x320] sm:$0xff] }
0x1499   :  { %v3085_v55 = vsub.f32 1.5, %v3084_v59 }
0x149a   :  { %v3325_v36 = vpop.xlane.xlu1 %3324  ;;  %3628 = vmatpush.msra.mxu1 %v3478_v30  ;;  %v3511_v30 = vld [vmem:[%s6985_s10 + $0x198] sm:$0xff] }
0x149b   :  { %v3086_v61 = vmul.f32 %v4448_v46, %v3085_v55  ;;  %v3326_v21 = vmul.f32 %v3325_v36, %v4653_v31  ;;  %v3472_v36 = vld [vmem:[%s6985_s10 + $0x60] sm:$0xff] }
0x149c   :  { %3629 = vmatpush.msra.mxu1 %v3476_v4 }
0x149d   :  { %v3090_v41 = vsel %vm3089_vm0, %v4448_v46, %v3086_v61  ;;  %v3327_v13 = vadd.f32 1e-12, %v3326_v21 }
0x149e   :  { %v3105_v23 = vmul.f32 %v3090_v41, %v3003_v28  ;;  %3630 = vmatpush.msra.mxu1 %v3474_v34 }
0x149f   :  { %4449 = vrsqrt.f32 %v3327_v13  ;;  %vm3334_vm3 = vweird.f32 %v3327_v13 }
0x14a0   :  { %v3112_v62 = vmul.f32 %v6276_v0, %v3105_v23  ;;  %3631 = vmatpush.msra.mxu1 %v3472_v36  ;;  %v3509_v36 = vld [vmem:[%s6985_s10 + $0x188] sm:$0xff] }
0x14a2   :  { %v3119_v1 = vadd.f32 %v6279_v44, %v3112_v62  ;;  %v3510_v62 = vld [vmem:[%s6985_s10 + $0x190] sm:$0xff]  ;;  %3632 = vmatpush.msra.mxu1 %v3470_v10  ;;  %v3505_v10 = vld [vmem:[%s6985_s10 + $0x168] sm:$0xff] }
0x14a4   :  { %4151 = vmatmul.msk.f32.gmra.mxu0 %vm131_vm1, %v3119_v1  ;;  %v3468_v1 = vld [vmem:[%s6985_s10 + $0x40] sm:$0xff] }
0x14a5   :  { %v4450_v33 = vpop.eup %4449  ;;  %3633 = vmatpush.msra.mxu1 %v3468_v1  ;;  %v3463_v1 = vld [vmem:[%s6985_s10 + $0x18] sm:$0xff] }
0x14a6   :  { %v3329_v14 = vmul.f32 %v4450_v33, %v3327_v13  ;;  %vm3335_vm4 = vweird.f32 %v4450_v33 }
0x14a7   :  { %vm3336_vm5 = vmor %vm3334_vm3, %vm3335_vm4 }
0x14a8   :  { %v3330_v27 = vmul.f32 %v4450_v33, %v3329_v14  ;;  %v3464_v14 = vld [vmem:[%s6985_s10 + $0x20] sm:$0xff] }
0x14aa   :  { %v3331_v18 = vmul.f32 0.5, %v3330_v27  ;;  %v3504_v27 = vld [vmem:[%s6985_s10 + $0x160] sm:$0xff] }
0x14ac   :  { %v3332_v29 = vsub.f32 1.5, %v3331_v18  ;;  %v3584_v18 = vld [vmem:[%s6985_s10 + $0x3e0] sm:$0xff] }
0x14ae   :  { %v3333_v50 = vmul.f32 %v4450_v33, %v3332_v29  ;;  %v3462_v29 = vld [vmem:[%s6985_s10 + $0x10] sm:$0xff] }
0x14b0   :  { %v3337_v52 = vsel %vm3336_vm5, %v4450_v33, %v3333_v50  ;;  %v3586_v33 = vld [vmem:[%s6985_s10 + $0x3f0] sm:$0xff] }
0x14b1   :  { %v3339_v48 = vrot.slane %v3337_v52, 1  ;;  %v3342_v19 = vmul.f32 %v3337_v52, %v6363_v63  ;;  %v3365_v63 = vld [vmem:[%s6984_s9 + $0x78] sm:$0xff]  ;;  %v3502_v50 = vld [vmem:[%s6985_s10 + $0x150] sm:$0xff] }
0x14b2   :  { %v3582_v52 = vld [vmem:[%s6985_s10 + $0x3d0] sm:$0xff] }
0x14b3   :  { %v3343_v54 = vmul.f32 %v3339_v48, %v6365_v6  ;;  %v3345_v15 = vmul.f32 %v3344_v35, %v3342_v19  ;;  %v3361_v6 = vld [vmem:[%s6984_s9 + $0x58] sm:$0xff]  ;;  %v3500_v48 = vld [vmem:[%s6985_s10 + $0x140] sm:$0xff] }
0x14b4   :  { %v3580_v19 = vld [vmem:[%s6985_s10 + $0x3c0] sm:$0xff] }
0x14b5   :  { %v3346_v38 = vmul.f32 %v3344_v35, %v3343_v54  ;;  %v3348_v26 = vadd.f32 %v3347_v53, %v3345_v15  ;;  %v3460_v35 = vld [vmem:[%s6985_s10] sm:$0xff]  ;;  %v3491_v54 = vld [vmem:[%s6985_s10 + $0xf8] sm:$0xff]  ;;  %v3498_v15 = vld [vmem:[%s6985_s10 + $0x130] sm:$0xff] }
0x14b7   :  { %v3349_v5 = vadd.f32 %v3347_v53, %v3346_v38  ;;  %v3578_v38 = vld [vmem:[%s6985_s10 + $0x3b0] sm:$0xff]  ;;  %v3489_v53 = vld [vmem:[%s6985_s10 + $0xe8] sm:$0xff] }
0x14b9   :  { %v3372_v28 = vrot.slane %v3349_v5, 7  ;;  %v3496_v5 = vld [vmem:[%s6985_s10 + $0x120] sm:$0xff] }
0x14bb   :  { %v3373_v22 = vsel %vm3302_vm11, %v3372_v28, %v3348_v26  ;;  %v3576_v26 = vld [vmem:[%s6985_s10 + $0x3a0] sm:$0xff]  ;;  %v3487_v28 = vld [vmem:[%s6985_s10 + $0xd8] sm:$0xff] }
0x14bc   :  { %4167 = vmatmul.msk.f32.vlgmr.msrb.gmra.mxu3 %vm131_vm1, %v3373_v22 }
0x14bd   :  { %3428 = vmatpush.msrb.mxu3 %v3364_v11  ;;  %v3574_v11 = vld [vmem:[%s6985_s10 + $0x390] sm:$0xff] }
0x14bf   :  { %3429 = vmatpush.msrb.mxu3 %v3360_v43  ;;  %v3485_v43 = vld [vmem:[%s6985_s10 + $0xc8] sm:$0xff] }
0x14c1   :  { %3430 = vmatpush.msrb.mxu3 %v3356_v37  ;;  %v3572_v37 = vld [vmem:[%s6985_s10 + $0x380] sm:$0xff] }
0x14c3   :  { %3431 = vmatpush.msrb.mxu3 %v3352_v40  ;;  %v3492_v40 = vld [vmem:[%s6985_s10 + $0x100] sm:$0xff] }
0x14c4   :  { %4168 = vmatmul.msk.f32.vlgmr.msra.gmra.mxu3 %vm131_vm1, %v3373_v22 }
0x14c5   :  { %3448 = vmatpush.msra.mxu3 %v3365_v63  ;;  %v3483_v63 = vld [vmem:[%s6985_s10 + $0xb8] sm:$0xff] }
0x14c7   :  { %3449 = vmatpush.msra.mxu3 %v3361_v6  ;;  %v3523_v6 = vld [vmem:[%s6985_s10 + $0x1f8] sm:$0xff] }
0x14c9   :  { %3450 = vmatpush.msra.mxu3 %v3357_v7  ;;  %v3570_v7 = vld [vmem:[%s6985_s10 + $0x370] sm:$0xff] }
0x14cb   :  { %3451 = vmatpush.msra.mxu3 %v3353_v45  ;;  %v3481_v45 = vld [vmem:[%s6985_s10 + $0xa8] sm:$0xff] }
0x14cc   :  { %4169 = vmatmul.msk.f32.vlgmr.msrb.gmra.mxu3 %vm131_vm1, %v3373_v22 }
0x14cd   :  { %3682 = vmatpush.msrb.mxu3 %v3586_v33  ;;  %v3461_v33 = vld [vmem:[%s6985_s10 + $0x8] sm:$0xff] }
0x14cf   :  { %3683 = vmatpush.msrb.mxu3 %v3584_v18 }
0x14d1   :  { %3684 = vmatpush.msrb.mxu3 %v3582_v52  ;;  %v3497_v52 = vld [vmem:[%s6985_s10 + $0x128] sm:$0xff] }
0x14d3   :  { %3685 = vmatpush.msrb.mxu3 %v3580_v19  ;;  %v3575_v19 = vld [vmem:[%s6985_s10 + $0x398] sm:$0xff] }
0x14d4   :  { %4170 = vmatmul.msk.f32.vlgmr.msra.gmra.mxu3 %vm131_vm1, %v3373_v22  ;;  %v3494_v22 = vld [vmem:[%s6985_s10 + $0x110] sm:$0xff] }
0x14d5   :  { %3686 = vmatpush.msrb.mxu3 %v3578_v38 }
0x14d7   :  { %3687 = vmatpush.msrb.mxu3 %v3576_v26  ;;  %v3569_v26 = vld [vmem:[%s6985_s10 + $0x368] sm:$0xff] }
0x14d9   :  { %3688 = vmatpush.msrb.mxu3 %v3574_v11  ;;  %v3567_v11 = vld [vmem:[%s6985_s10 + $0x358] sm:$0xff] }
0x14db   :  { %3689 = vmatpush.msrb.mxu3 %v3572_v37  ;;  %v3366_v37 = vperm.slane %v6411_v51, 2 }
0x14dd   :  { %3690 = vmatpush.msrb.mxu3 %v3570_v7 }
0x14df   :  { %3691 = vmatpush.msrb.mxu3 %v3568_v47  ;;  %v6752_v47 = vld [vmem:[%s6983_s8 + $0x8] sm:$0xff] }
0x14e1   :  { %3692 = vmatpush.msrb.mxu3 %v3566_v39  ;;  %v3554_v39 = vld [vmem:[%s6985_s10 + $0x2f0] sm:$0xff] }
0x14e2   :  { %3662 = vmatpush.msra.mxu2 %v3554_v39  ;;  %v3618_v39 = vld [vmem:[%s6985_s10 + $0x5e0] sm:$0xff] }
0x14e7   :  { %v3028_v25 = vpop.xlane.xlu0 %3027 }
0x14e8   :  { %v3034_v57 = vmul.f32 %v3028_v25, %v4653_v31  ;;  %v3514_v31 = vld [vmem:[%s6985_s10 + $0x1b0] sm:$0xff]  ;;  %v3477_v25 = vld [vmem:[%s6985_s10 + $0x88] sm:$0xff] }
0x14e9   :  { %3646 = vmatpush.msra.mxu0 %v3514_v31  ;;  %v3513_v31 = vld [vmem:[%s6985_s10 + $0x1a8] sm:$0xff] }
0x14ea   :  { %v3040_v46 = vadd.f32 1e-12, %v3034_v57  ;;  %v3564_v57 = vld [vmem:[%s6985_s10 + $0x340] sm:$0xff] }
0x14eb   :  { %3647 = vmatpush.msra.mxu0 %v3512_v16  ;;  %3693 = vmatpush.msrb.mxu3 %v3564_v57  ;;  %v3471_v16 = vld [vmem:[%s6985_s10 + $0x58] sm:$0xff] }
0x14ec   :  { %4451 = vrsqrt.f32 %v3040_v46  ;;  %vm3097_vm7 = vweird.f32 %v3040_v46 }
0x14ed   :  { %3648 = vmatpush.msra.mxu0 %v3510_v62  ;;  %v3585_v62 = vld [vmem:[%s6985_s10 + $0x3e8] sm:$0xff] }
0x14f2   :  { %v4452_v59 = vpop.eup %4451 }
0x14f3   :  { %v3092_v55 = vmul.f32 %v4452_v59, %v3040_v46  ;;  %vm3098_vm6 = vweird.f32 %v4452_v59  ;;  %v3562_v46 = vld [vmem:[%s6985_s10 + $0x330] sm:$0xff] }
0x14f4   :  { %vm3099_vm8 = vmor %vm3097_vm7, %vm3098_vm6  ;;  %3694 = vmatpush.msrb.mxu3 %v3562_v46 }
0x14f5   :  { %v3093_v61 = vmul.f32 %v4452_v59, %v3092_v55  ;;  %v3469_v55 = vld [vmem:[%s6985_s10 + $0x48] sm:$0xff] }
0x14f6   :  { %3695 = vmatpush.msrb.mxu3 %v3560_v9  ;;  %v3542_v9 = vld [vmem:[%s6985_s10 + $0x290] sm:$0xff] }
0x14f7   :  { %v3094_v21 = vmul.f32 0.5, %v3093_v61  ;;  %v3556_v61 = vld [vmem:[%s6985_s10 + $0x300] sm:$0xff] }
0x14f9   :  { %v3095_v2 = vsub.f32 1.5, %v3094_v21 }
0x14fb   :  { %v3096_v24 = vmul.f32 %v4452_v59, %v3095_v2  ;;  %v3467_v2 = vld [vmem:[%s6985_s10 + $0x38] sm:$0xff] }
0x14fd   :  { %v3100_v41 = vsel %vm3099_vm8, %v4452_v59, %v3096_v24  ;;  %v3558_v59 = vld [vmem:[%s6985_s10 + $0x310] sm:$0xff]  ;;  %v3507_v24 = vld [vmem:[%s6985_s10 + $0x178] sm:$0xff] }
0x14fe   :  { %v3106_v13 = vmul.f32 %v3100_v41, %v6374_v3  ;;  %v3466_v3 = vld [vmem:[%s6985_s10 + $0x30] sm:$0xff]  ;;  %3696 = vmatpush.msrb.mxu3 %v3558_v59  ;;  %v3587_v41 = vld [vmem:[%s6985_s10 + $0x3f8] sm:$0xff] }
0x14ff   :  { %3634 = vmatpush.msra.mxu1 %v3466_v3  ;;  %v3583_v3 = vld [vmem:[%s6985_s10 + $0x3d8] sm:$0xff]  ;;  %v3538_v59 = vld [vmem:[%s6985_s10 + $0x270] sm:$0xff] }
0x1500   :  { %v3113_v23 = vmul.f32 %v6276_v0, %v3106_v13  ;;  %v3508_v0 = vld [vmem:[%s6985_s10 + $0x180] sm:$0xff]  ;;  %3697 = vmatpush.msrb.mxu3 %v3556_v61 }
0x1501   :  { %3649 = vmatpush.msra.mxu0 %v3508_v0  ;;  %3635 = vmatpush.msra.mxu1 %v3464_v14  ;;  %v3503_v0 = vld [vmem:[%s6985_s10 + $0x158] sm:$0xff]  ;;  %v3501_v14 = vld [vmem:[%s6985_s10 + $0x148] sm:$0xff] }
0x1502   :  { %v3120_v12 = vadd.f32 %v6279_v44, %v3113_v23  ;;  %v3506_v44 = vld [vmem:[%s6985_s10 + $0x170] sm:$0xff]  ;;  %3762 = vmatpush.msra.mxu3 %v3587_v41  ;;  %v3465_v23 = vld [vmem:[%s6985_s10 + $0x28] sm:$0xff] }
0x1503   :  { %3650 = vmatpush.msra.mxu0 %v3506_v44  ;;  %3636 = vmatpush.msra.mxu1 %v3462_v29  ;;  %v3499_v29 = vld [vmem:[%s6985_s10 + $0x138] sm:$0xff]  ;;  %v3530_v41 = vld [vmem:[%s6985_s10 + $0x230] sm:$0xff] }
0x1504   :  { %4152 = vmatmul.msk.f32.gmra.mxu0 %vm131_vm1, %v3120_v12  ;;  %3763 = vmatpush.msra.mxu3 %v3585_v62  ;;  %v3555_v62 = vld [vmem:[%s6985_s10 + $0x2f8] sm:$0xff]  ;;  %vm3825_vm1 = vcmask 9216  }
0x1505   :  { %3651 = vmatpush.msra.mxu0 %v3504_v27  ;;  %3637 = vmatpush.msra.mxu1 %v3460_v35  ;;  %v3581_v27 = vld [vmem:[%s6985_s10 + $0x3c8] sm:$0xff] }
0x1506   :  { %3764 = vmatpush.msra.mxu3 %v3583_v3  ;;  %v3577_v35 = vld [vmem:[%s6985_s10 + $0x3a8] sm:$0xff]  ;;  %v3547_v3 = vld [vmem:[%s6985_s10 + $0x2b8] sm:$0xff] }
0x1507   :  { %3652 = vmatpush.msra.mxu0 %v3502_v50  ;;  %3702 = vmatpush.msrb.mxu1 %v3491_v54  ;;  %v3579_v50 = vld [vmem:[%s6985_s10 + $0x3b8] sm:$0xff]  ;;  %v3493_v54 = vld [vmem:[%s6985_s10 + $0x108] sm:$0xff] }
0x1508   :  { %3765 = vmatpush.msra.mxu3 %v3581_v27  ;;  %v3539_v27 = vld [vmem:[%s6985_s10 + $0x278] sm:$0xff] }
0x1509   :  { %3653 = vmatpush.msra.mxu0 %v3500_v48  ;;  %3703 = vmatpush.msrb.mxu1 %v3489_v53  ;;  %v3495_v48 = vld [vmem:[%s6985_s10 + $0x118] sm:$0xff] }
0x150a   :  { %3766 = vmatpush.msra.mxu3 %v3579_v50  ;;  %v3571_v53 = vld [vmem:[%s6985_s10 + $0x378] sm:$0xff]  ;;  %v3533_v50 = vld [vmem:[%s6985_s10 + $0x248] sm:$0xff] }
0x150b   :  { %3654 = vmatpush.msra.mxu0 %v3498_v15  ;;  %3704 = vmatpush.msrb.mxu1 %v3487_v28  ;;  %v3573_v15 = vld [vmem:[%s6985_s10 + $0x388] sm:$0xff] }
0x150c   :  { %3767 = vmatpush.msra.mxu3 %v3577_v35 }
0x150d   :  { %3655 = vmatpush.msra.mxu0 %v3496_v5  ;;  %3705 = vmatpush.msrb.mxu1 %v3485_v43  ;;  %v3565_v43 = vld [vmem:[%s6985_s10 + $0x348] sm:$0xff] }
0x150e   :  { %3768 = vmatpush.msra.mxu3 %v3575_v19 }
0x150f   :  { %3656 = vmatpush.msra.mxu0 %v3494_v22  ;;  %3706 = vmatpush.msrb.mxu1 %v3483_v63  ;;  %v3561_v63 = vld [vmem:[%s6985_s10 + $0x328] sm:$0xff] }
0x1510   :  { %3769 = vmatpush.msra.mxu3 %v3573_v15 }
0x1511   :  { %3657 = vmatpush.msra.mxu0 %v3492_v40  ;;  %3707 = vmatpush.msrb.mxu1 %v3481_v45  ;;  %v3563_v40 = vld [vmem:[%s6985_s10 + $0x338] sm:$0xff] }
0x1512   :  { %3770 = vmatpush.msra.mxu3 %v3571_v53 }
0x1513   :  { %3722 = vmatpush.msrb.mxu0 %v3523_v6  ;;  %3708 = vmatpush.msrb.mxu1 %v3479_v20  ;;  %v3559_v6 = vld [vmem:[%s6985_s10 + $0x318] sm:$0xff] }
0x1514   :  { %3771 = vmatpush.msra.mxu3 %v3569_v26 }
0x1515   :  { %3723 = vmatpush.msrb.mxu0 %v3521_v32  ;;  %3709 = vmatpush.msrb.mxu1 %v3477_v25  ;;  %v3557_v32 = vld [vmem:[%s6985_s10 + $0x308] sm:$0xff]  ;;  %v3552_v25 = vld [vmem:[%s6985_s10 + $0x2e0] sm:$0xff] }
0x1516   :  { %3772 = vmatpush.msra.mxu3 %v3567_v11  ;;  %3663 = vmatpush.msra.mxu2 %v3552_v25  ;;  %v3617_v25 = vld [vmem:[%s6985_s10 + $0x5d0] sm:$0xff] }
0x1517   :  { %3724 = vmatpush.msrb.mxu0 %v3519_v60  ;;  %3710 = vmatpush.msrb.mxu1 %v3475_v58  ;;  %v3367_v60 = vperm.slane %v6752_v47, 2 }
0x1518   :  { %3773 = vmatpush.msra.mxu3 %v3565_v43 }
0x1519   :  { %3725 = vmatpush.msrb.mxu0 %v3517_v49  ;;  %3711 = vmatpush.msrb.mxu1 %v3473_v17  ;;  %v3550_v49 = vld [vmem:[%s6985_s10 + $0x2d0] sm:$0xff] }
0x151a   :  { %3774 = vmatpush.msra.mxu3 %v3563_v40  ;;  %3664 = vmatpush.msra.mxu2 %v3550_v49  ;;  %v3546_v17 = vld [vmem:[%s6985_s10 + $0x2b0] sm:$0xff]  ;;  %v3600_v49 = vld [vmem:[%s6985_s10 + $0x4c0] sm:$0xff] }
0x151b   :  { %3726 = vmatpush.msrb.mxu0 %v3515_v42  ;;  %3712 = vmatpush.msrb.mxu1 %v3471_v16  ;;  %v3548_v42 = vld [vmem:[%s6985_s10 + $0x2c0] sm:$0xff] }
0x151c   :  { %3775 = vmatpush.msra.mxu3 %v3561_v63  ;;  %3665 = vmatpush.msra.mxu2 %v3548_v42  ;;  %v3598_v42 = vld [vmem:[%s6985_s10 + $0x4a0] sm:$0xff] }
0x151d   :  { %3727 = vmatpush.msrb.mxu0 %v3513_v31  ;;  %3713 = vmatpush.msrb.mxu1 %v3469_v55  ;;  %v3544_v31 = vld [vmem:[%s6985_s10 + $0x2a0] sm:$0xff] }
0x151e   :  { %3776 = vmatpush.msra.mxu3 %v3559_v6  ;;  %3666 = vmatpush.msra.mxu2 %v3546_v17  ;;  %v3536_v55 = vld [vmem:[%s6985_s10 + $0x260] sm:$0xff] }
0x151f   :  { %3728 = vmatpush.msrb.mxu0 %v3511_v30  ;;  %3714 = vmatpush.msrb.mxu1 %v3467_v2  ;;  %v3540_v30 = vld [vmem:[%s6985_s10 + $0x280] sm:$0xff]  ;;  %v3534_v2 = vld [vmem:[%s6985_s10 + $0x250] sm:$0xff] }
0x1520   :  { %3777 = vmatpush.msra.mxu3 %v3557_v32  ;;  %3667 = vmatpush.msra.mxu2 %v3544_v31  ;;  %v3602_v32 = vld [vmem:[%s6985_s10 + $0x4e0] sm:$0xff]  ;;  %v3595_v31 = vld [vmem:[%s6985_s10 + $0x470] sm:$0xff] }
0x1521   :  { %v3174_v4 = vpop.f32.mrf.mxu0  ;;  %3729 = vmatpush.msrb.mxu0 %v3509_v36  ;;  %3715 = vmatpush.msrb.mxu1 %v3465_v23  ;;  %v3526_v23 = vld [vmem:[%s6985_s10 + $0x210] sm:$0xff]  ;;  %v3596_v17 = vld [vmem:[%s6985_s10 + $0x480] sm:$0xff] }
0x1522   :  { %v6647_v34 = vadd.f32 %v3174_v4, %v6331_v56  ;;  %v3298_v4 = vld [vmem:[%s6983_s8 + $0x18] sm:$0xff]  ;;  %3668 = vmatpush.msra.mxu2 %v3542_v9  ;;  %v3615_v9 = vld [vmem:[%s6985_s10 + $0x5b0] sm:$0xff] }
0x1523   :  { %3730 = vmatpush.msrb.mxu0 %v3507_v24  ;;  %3716 = vmatpush.msrb.mxu1 %v3463_v1  ;;  %v3532_v24 = vld [vmem:[%s6985_s10 + $0x240] sm:$0xff]  ;;  %v3551_v1 = vld [vmem:[%s6985_s10 + $0x2d8] sm:$0xff] }
0x1524   :  { %v3184_v21 = vmul.f32 %v6647_v34, %v6647_v34  ;;  %3669 = vmatpush.msra.mxu2 %v3540_v30  ;;  %v3614_v30 = vld [vmem:[%s6985_s10 + $0x5a0] sm:$0xff] }
0x1525   :  { %3731 = vmatpush.msrb.mxu0 %v3505_v10  ;;  %3717 = vmatpush.msrb.mxu1 %v3461_v33  ;;  %v3524_v10 = vld [vmem:[%s6985_s10 + $0x200] sm:$0xff]  ;;  %v3543_v33 = vld [vmem:[%s6985_s10 + $0x298] sm:$0xff] }
0x1526   :  { %v3190_v13 = vmul.f32 %v3184_v21, %v6647_v34  ;;  %3670 = vmatpush.msra.mxu2 %v3538_v59  ;;  %v3613_v59 = vld [vmem:[%s6985_s10 + $0x590] sm:$0xff] }
0x1527   :  { %3732 = vmatpush.msrb.mxu0 %v3503_v0  ;;  %v3549_v0 = vld [vmem:[%s6985_s10 + $0x2c8] sm:$0xff] }
0x1528   :  { %v3196_v12 = vmul.f32 0.044715, %v3190_v13  ;;  %3671 = vmatpush.msra.mxu2 %v3536_v55  ;;  %v3528_v13 = vld [vmem:[%s6985_s10 + $0x220] sm:$0xff] }
0x1529   :  { %3733 = vmatpush.msrb.mxu0 %v3501_v14  ;;  %v3541_v14 = vld [vmem:[%s6985_s10 + $0x288] sm:$0xff]  ;;  %v3612_v55 = vld [vmem:[%s6985_s10 + $0x580] sm:$0xff] }
0x152a   :  { %v3202_v44 = vadd.f32 %v3196_v12, %v6647_v34  ;;  %3672 = vmatpush.msra.mxu2 %v3534_v2  ;;  %v3553_v12 = vld [vmem:[%s6985_s10 + $0x2e8] sm:$0xff]  ;;  %v3610_v2 = vld [vmem:[%s6985_s10 + $0x560] sm:$0xff] }
0x152b   :  { %3734 = vmatpush.msrb.mxu0 %v3499_v29  ;;  %v3535_v29 = vld [vmem:[%s6985_s10 + $0x258] sm:$0xff] }
0x152c   :  { %v3208_v18 = vmul.f32 0.7978846, %v3202_v44  ;;  %3673 = vmatpush.msra.mxu2 %v3532_v24  ;;  %v3545_v44 = vld [vmem:[%s6985_s10 + $0x2a8] sm:$0xff]  ;;  %v3589_v24 = vld [vmem:[%s6985_s10 + $0x410] sm:$0xff] }
0x152d   :  { %3735 = vmatpush.msrb.mxu0 %v3497_v52 }
0x152e   :  { %4453 = vtanh.f32 %v3208_v18  ;;  %3674 = vmatpush.msra.mxu2 %v3530_v41  ;;  %v3537_v18 = vld [vmem:[%s6985_s10 + $0x268] sm:$0xff]  ;;  %v3609_v41 = vld [vmem:[%s6985_s10 + $0x550] sm:$0xff] }
0x152f   :  { %3736 = vmatpush.msrb.mxu0 %v3495_v48  ;;  %v3531_v48 = vld [vmem:[%s6985_s10 + $0x238] sm:$0xff] }
0x1530   :  { %3675 = vmatpush.msra.mxu2 %v3528_v13  ;;  %v3588_v13 = vld [vmem:[%s6985_s10 + $0x400] sm:$0xff] }
0x1531   :  { %3737 = vmatpush.msrb.mxu0 %v3493_v54  ;;  %v3529_v54 = vld [vmem:[%s6985_s10 + $0x228] sm:$0xff] }
0x1532   :  { %3676 = vmatpush.msra.mxu2 %v3526_v23  ;;  %v3608_v23 = vld [vmem:[%s6985_s10 + $0x540] sm:$0xff] }
0x1534   :  { %v4454_v38 = vpop.eup %4453  ;;  %3677 = vmatpush.msra.mxu2 %v3524_v10  ;;  %v3607_v10 = vld [vmem:[%s6985_s10 + $0x530] sm:$0xff] }
0x1535   :  { %v3220_v5 = vadd.f32 1.0, %v4454_v38  ;;  %v3527_v38 = vld [vmem:[%s6985_s10 + $0x218] sm:$0xff] }
0x1536   :  { %3742 = vmatpush.msrb.mxu2 %v3555_v62  ;;  %v3606_v62 = vld [vmem:[%s6985_s10 + $0x520] sm:$0xff] }
0x1537   :  { %v3226_v28 = vmul.f32 0.5, %v3220_v5 }
0x1538   :  { %3743 = vmatpush.msrb.mxu2 %v3553_v12  ;;  %v3605_v12 = vld [vmem:[%s6985_s10 + $0x510] sm:$0xff] }
0x1539   :  { %v3232_v22 = vmul.f32 %v3226_v28, %v6647_v34  ;;  %v3369_v34 = vperm.slane %v3298_v4, 2  ;;  %v3593_v4 = vld [vmem:[%s6985_s10 + $0x450] sm:$0xff] }
0x153a   :  { %3744 = vmatpush.msrb.mxu2 %v3551_v1  ;;  %v3604_v1 = vld [vmem:[%s6985_s10 + $0x500] sm:$0xff] }
0x153b   :  { %4165 = vmatmul.msk.f32.gmra.mxu2 %vm1663_vm2, %v3232_v22  ;;  %v3297_v22 = vld [vmem:[%s6983_s8 + $0x10] sm:$0xff] }
0x153c   :  { %3745 = vmatpush.msrb.mxu2 %v3549_v0  ;;  %v3827_v0 = vld [vmem:[%s6976_s1] sm:$0x3] }
0x153e   :  { %3746 = vmatpush.msrb.mxu2 %v3547_v3  ;;  %v4521_v3 = vmov 0  }
0x153f   :  { %v3393_v7 = vpop.f32.mrf.mxu3  ;;  %4187 = vset.pattern.permute.xlu1 %v4521_v3  ;;  %4188 = vset.pattern.permute.xlu0 %v4521_v3 }
0x1540   :  { %v3394_v45 = vadd.f32 %v3393_v7, %v3366_v37  ;;  %3747 = vmatpush.msrb.mxu2 %v3545_v44  ;;  %v3368_v37 = vperm.slane %v3297_v22, 2  ;;  %3829 = vperm.xlu1 %4187, %v3827_v0  }
0x1542   :  { %v3456_v20 = vmax.f32 %v3394_v45, 0.0  ;;  %3748 = vmatpush.msrb.mxu2 %v3543_v33  ;;  %v3603_v45 = vld [vmem:[%s6985_s10 + $0x4f0] sm:$0xff] }
0x1544   :  { %3638 = vmatmul.f32.vlgmr.msra.gmra.mxu1 %v3456_v20  ;;  %3749 = vmatpush.msrb.mxu2 %v3541_v14  ;;  %v3620_v14 = vperm.slane %v6411_v51, 3 }
0x1545   :  { %3785 = vmatpush.msra.mxu1 %v3603_v45  ;;  %v4522_v45 = vmov 0.0  }
0x1546   :  { %3750 = vmatpush.msrb.mxu2 %v3539_v27 }
0x1547   :  { %v3413_v57 = vpop.f32.mrf.mxu3  ;;  %3786 = vmatpush.msra.mxu1 %v3602_v32 }
0x1548   :  { %v3414_v58 = vadd.f32 %v3413_v57, %v3367_v60  ;;  %3751 = vmatpush.msrb.mxu2 %v3537_v18  ;;  %v3601_v60 = vld [vmem:[%s6985_s10 + $0x4d0] sm:$0xff]  ;;  %v3616_v57 = vld [vmem:[%s6985_s10 + $0x5c0] sm:$0xff] }
0x1549   :  { %3787 = vmatpush.msra.mxu1 %v3601_v60 }
0x154a   :  { %v3457_v46 = vmax.f32 %v3414_v58, 0.0  ;;  %3752 = vmatpush.msrb.mxu2 %v3535_v29  ;;  %v3599_v58 = vld [vmem:[%s6985_s10 + $0x4b0] sm:$0xff] }
0x154b   :  { %3788 = vmatpush.msra.mxu1 %v3600_v49 }
0x154c   :  { %3658 = vmatmul.f32.vlgmr.msra.gmra.mxu0 %v3457_v46  ;;  %3718 = vmatmul.f32.vlgmr.msrb.gmra.mxu1 %v3456_v20  ;;  %v3619_v20 = vld [vmem:[%s6985_s10 + $0x5f0] sm:$0xff] }
0x154d   :  { %3753 = vmatpush.msrb.mxu2 %v3533_v50  ;;  %3805 = vmatpush.msra.mxu0 %v3619_v20 }
0x154e   :  { %3789 = vmatpush.msra.mxu1 %v3599_v58 }
0x154f   :  { %v6776_v16 = vpop.f32.mrf.mxu3  ;;  %3754 = vmatpush.msrb.mxu2 %v3531_v48  ;;  %3806 = vmatpush.msra.mxu0 %v3618_v39 }
0x1550   :  { %v3434_v63 = vadd.f32 %v6776_v16, %v3368_v37  ;;  %3790 = vmatpush.msra.mxu1 %v3598_v42  ;;  %v3594_v16 = vld [vmem:[%s6985_s10 + $0x460] sm:$0xff] }
0x1551   :  { %3755 = vmatpush.msrb.mxu2 %v3529_v54  ;;  %3807 = vmatpush.msra.mxu0 %v3617_v25 }
0x1552   :  { %v3458_v6 = vmax.f32 %v3434_v63, 0.0 }
0x1553   :  { %3756 = vmatpush.msrb.mxu2 %v3527_v38  ;;  %3808 = vmatpush.msra.mxu0 %v3616_v57 }
0x1554   :  { %3738 = vmatmul.f32.vlgmr.msrb.gmra.mxu0 %v3457_v46  ;;  %v3597_v46 = vld [vmem:[%s6985_s10 + $0x490] sm:$0xff] }
0x1555   :  { %3791 = vmatpush.msra.mxu1 %v3597_v46  ;;  %3809 = vmatpush.msra.mxu0 %v3615_v9 }
0x1557   :  { %v3453_v36 = vpop.f32.mrf.mxu3  ;;  %3792 = vmatpush.msra.mxu1 %v3596_v17  ;;  %3810 = vmatpush.msra.mxu0 %v3614_v30 }
0x1558   :  { %v3454_v61 = vadd.f32 %v3453_v36, %v3369_v34  ;;  %v3592_v34 = vld [vmem:[%s6985_s10 + $0x440] sm:$0xff]  ;;  %v3591_v36 = vld [vmem:[%s6985_s10 + $0x430] sm:$0xff] }
0x1559   :  { %3793 = vmatpush.msra.mxu1 %v3595_v31  ;;  %3811 = vmatpush.msra.mxu0 %v3613_v59 }
0x155a   :  { %v3459_v21 = vmax.f32 %v3454_v61, 0.0  ;;  %v3611_v61 = vld [vmem:[%s6985_s10 + $0x570] sm:$0xff] }
0x155b   :  { %3794 = vmatpush.msra.mxu1 %v3594_v16  ;;  %3812 = vmatpush.msra.mxu0 %v3612_v55 }
0x155c   :  { %3698 = vmatmul.f32.vlgmr.msrb.gmra.mxu3 %v3459_v21 }
0x155d   :  { %3795 = vmatpush.msra.mxu1 %v3593_v4  ;;  %3813 = vmatpush.msra.mxu0 %v3611_v61 }
0x155f   :  { %3796 = vmatpush.msra.mxu1 %v3592_v34  ;;  %3814 = vmatpush.msra.mxu0 %v3610_v2 }
0x1561   :  { %3797 = vmatpush.msra.mxu1 %v3591_v36  ;;  %3815 = vmatpush.msra.mxu0 %v3609_v41 }
0x1563   :  { %3816 = vmatpush.msra.mxu0 %v3608_v23 }
0x1564   :  { %3778 = vmatmul.f32.vlgmr.msra.gmra.mxu3 %v3459_v21  ;;  %v3590_v21 = vld [vmem:[%s6985_s10 + $0x420] sm:$0xff] }
0x1565   :  { %3798 = vmatpush.msra.mxu1 %v3590_v21  ;;  %3817 = vmatpush.msra.mxu0 %v3607_v10 }
0x1567   :  { %3799 = vmatpush.msra.mxu1 %v3589_v24  ;;  %3818 = vmatpush.msra.mxu0 %v3606_v62 }
0x1569   :  { %3800 = vmatpush.msra.mxu1 %v3588_v13  ;;  %3819 = vmatpush.msra.mxu0 %v3605_v12 }
0x156b   :  { %3820 = vmatpush.msra.mxu0 %v3604_v1 }
0x1581   :  { %v3177_v52 = vpop.f32.mrf.mxu0 }
0x1582   :  { %v3178_v35 = vadd.f32 %v3177_v52, %v6331_v56  ;;  %v3525_v56 = vld [vmem:[%s6985_s10 + $0x208] sm:$0xff] }
0x1583   :  { %3757 = vmatpush.msrb.mxu2 %v3525_v56 }
0x1584   :  { %v3185_v19 = vmul.f32 %v3178_v35, %v3178_v35 }
0x1586   :  { %v3191_v15 = vmul.f32 %v3185_v19, %v3178_v35 }
0x1588   :  { %v3197_v53 = vmul.f32 0.044715, %v3191_v15 }
0x158a   :  { %v3203_v5 = vadd.f32 %v3197_v53, %v3178_v35 }
0x158c   :  { %v3209_v26 = vmul.f32 0.7978846, %v3203_v5 }
0x158e   :  { %4455 = vtanh.f32 %v3209_v26 }
0x1594   :  { %v4456_v28 = vpop.eup %4455 }
0x1595   :  { %v3221_v11 = vadd.f32 1.0, %v4456_v28 }
0x1597   :  { %v3227_v43 = vmul.f32 0.5, %v3221_v11 }
0x1599   :  { %v3233_v40 = vmul.f32 %v3227_v43, %v3178_v35  ;;  %v3621_v35 = vperm.slane %v6752_v47, 3  ;;  %v3784_v43 = vperm.slane %v6411_v51, 4 }
0x159b   :  { %4166 = vmatmul.msk.f32.gmra.mxu2 %vm1663_vm2, %v3233_v40 }
0x15a3   :  { %3678 = vmatmul.f32.vlgmr.msra.gmra.mxu2 %v3458_v6 }
0x15ab   :  { %3758 = vmatmul.f32.vlgmr.msrb.gmra.mxu2 %v3458_v6 }
0x15b2   :  { %v3830_v40 = vpop.permute.xlu1 %3829 }
0x15b3   :  { %vm3831_vm2 = vcmp.eq.s32.totalorder %v4775_v8, %v3830_v40 }
0x15b4   :  { %v4171_v32 = vsel %vm3831_vm2, 1.0, %v4522_v45 }
0x15be   :  { %v3289_v7 = vpop.f32.mrf.mxu2 }
0x15c1   :  { %v3639_v44 = vpop.f32.mrf.mxu1 }
0x15c2   :  { %v3640_v18 = vadd.f32 %v3639_v44, %v3620_v14 }
0x15c9   :  { %v3659_v27 = vpop.f32.mrf.mxu0  ;;  %v3719_v19 = vpop.f32.mrf.mxu1 }
0x15ca   :  { %v3660_v29 = vadd.f32 %v3659_v27, %v3640_v18  ;;  %v3720_v38 = vadd.f32 %v3719_v19, %v3621_v35 }
0x15d1   :  { %v3739_v15 = vpop.f32.mrf.mxu0 }
0x15d2   :  { %v3740_v56 = vadd.f32 %v3739_v15, %v3720_v38 }
0x15df   :  { %v3699_v50 = vpop.f32.mrf.mxu3 }
0x15e7   :  { %v3779_v28 = vpop.f32.mrf.mxu3 }
0x161e   :  { %v3291_v33 = vpop.f32.mrf.mxu2 }
0x1626   :  { %v3679_v52 = vpop.f32.mrf.mxu2 }
0x1627   :  { %v3680_v48 = vadd.f32 %v3679_v52, %v3660_v29 }
0x1629   :  { %v3700_v54 = vadd.f32 %v3699_v50, %v3680_v48 }
0x162b   :  { %v3782_v53 = vmax.f32 %v3700_v54, 0.0 }
0x162d   :  { %3801 = vmatmul.f32.vlgmr.msra.gmra.mxu1 %v3782_v53 }
0x162e   :  { %v3759_v5 = vpop.f32.mrf.mxu2 }
0x162f   :  { %v3760_v26 = vadd.f32 %v3759_v5, %v3740_v56 }
0x1631   :  { %v3780_v11 = vadd.f32 %v3779_v28, %v3760_v26 }
0x1633   :  { %v3783_v22 = vmax.f32 %v3780_v11, 0.0 }
0x1635   :  { %3821 = vmatmul.f32.vlgmr.msra.gmra.mxu0 %v3783_v22 }
0x16aa   :  { %v3802_v37 = vpop.f32.mrf.mxu1 }
0x16ab   :  { %v3803_v63 = vadd.f32 %v3802_v37, %v3784_v43 }
0x16b2   :  { %v3822_v47 = vpop.f32.mrf.mxu0 }
0x16b3   :  { %v3823_v6 = vadd.f32 %v3822_v47, %v3803_v63 }
0x16b5   :  { %v3834_v7 = vsel %vm3825_vm1, %v3823_v6, -inf  ;;  %3826 = vst.msk [vmem:[#allocation2] sm:$0x3] %vm3825_vm1, %v3823_v6  ;;  %v3846_v20 = vmul.f32 %v4171_v32, %v3823_v6 }
0x16b6   :  { %3835 = vmax.xlane.f32.xlu2 %v3834_v7  ;;  %3878 = dma.vmem_to_hbm [thread:$0]  %s3874_s5, 32, %s3876_s23, [#allocation3]  }
0x16b7   :  { %v3847_v60 = vsel %vm3825_vm1, %v3846_v20, 0.0 }
0x16be   :  { %3848 = vadd.xlane.f32.xlu2 %v3847_v60 }
0x1729   :  { %v3836_v51 = vpop.xlane.xlu2 %3835 }
0x172a   :  { %v3837_v39 = vsub.f32 %v3823_v6, %v3836_v51 }
0x172c   :  { %v3838_v25 = vmul.f32 1.442695, %v3837_v39 }
0x172e   :  { %4457 = vpow2.f32 %v3838_v25 }
0x1731   :  { %v3849_v17 = vpop.xlane.xlu2 %3848 }
0x1734   :  { %v4458_v49 = vpop.eup %4457 }
0x1735   :  { %v3840_v57 = vsel %vm3825_vm1, %v4458_v49, 0.0 }
0x1736   :  { %3841 = vadd.xlane.f32.xlu0 %v3840_v57 }
0x17a9   :  { %v3842_v8 = vpop.xlane.xlu0 %3841 }
0x17aa   :  { %4459 = vlog2.f32 %v3842_v8 }
0x17b0   :  { %v4460_v58 = vpop.eup %4459 }
0x17b1   :  { %v3844_v42 = vmul.f32 0.6931472, %v4460_v58 }
0x17b3   :  { %v3845_v46 = vadd.f32 %v3844_v42, %v3836_v51 }
0x17b5   :  { %v3850_v31 = vsub.f32 %v3845_v46, %v3849_v17 }
0x17b7   :  { %v3851_v9 = vsub.f32 0.0, %v3850_v31 }
0x17b9   :  { %v3852_v16 = vmul.f32 1.442695, %v3851_v9 }
0x17bb   :  { %4461 = vpow2.f32 %v3852_v16 }
0x17c1   :  { %v4462_v30 = vpop.eup %4461 }
0x17c2   :  { %v3854_v4 = vsub.f32 1.0, %v4462_v30 }
0x17c4   :  { %v3855_v59 = vmul.f32 %v3854_v4, %v3854_v4 }
0x17c6   :  { %v3856_v34 = vmul.f32 %v3855_v59, %v3850_v31 }
0x17c8   :  { %v3858_v55 = vsel %vm3857_vm9, %v3856_v34, 0.0 }
0x17c9   :  { %v3859_v36 = vrot.slane %v3858_v55, 4 }
0x17cb   :  { %v3860_v61 = vadd.f32 %v3859_v36, %v3858_v55 }
0x17cd   :  { %v3861_v21 = vrot.slane %v3860_v61, 2 }
0x17cf   :  { %v3862_v2 = vadd.f32 %v3861_v21, %v3860_v61 }
0x17d1   :  { %v3863_v24 = vrot.slane %v3862_v2, 1 }
0x17d3   :  { %v3864_v41 = vadd.f32 %v3863_v24, %v3862_v2 }
0x17d5   :  { %v3865_v13 = vmul.f32 0.5, %v3864_v41 }
0x17d7   :  { %3867 = vst.msk [vmem:[#allocation4] sm:$0x1] %vm3866_vm10, %v3865_v13 }
0x17d8   :  { %3889 = dma.vmem_to_hbm [thread:$0]  %s3885_s24, 16, %s3887_s25, [#allocation5]  }
0x17d9   :  { %4513 = dma.done.wait [#allocation3], 32  }
0x17da   :  { %4514 = vsyncadd [#allocation3], 4294967264 }
0x17db   :  { %4515 = dma.done.wait [#allocation5], 16  }
0x17dc   :  { %4516 = vsyncadd [#allocation5], 4294967280 }
0x17dd   :  { %3898 = vsyncpa [#allocation3], 1 }
0x17de   :  { %3899 = vsyncpa [#allocation5], 1 }

</bundles_post_ra>
